<compile_context>
chip_gen: v7x
topology: tpu7x:2x2x1
jax: 0.10.0
libtpu: 0.0.40
codegen_flags: <defaults>
</compile_context>

<pallas_src>
import numpy as np

import jax
import jax.numpy as jnp
from jax.experimental import pallas as pl
from jax.experimental.pallas import tpu as pltpu

# ----------------------------- module constants -----------------------------
NUM_JOINT = 20
INPUT_FEATURE = 6
NUM_FEATURE = 16
HIDDEN_SIZE = 128
NUM_CLASSES = 27

FIVE_KEY_POINT = [1, 7, 11, 15, 19]
INWARD_ORI_INDEX = [(1, 2), (3, 2), (4, 3), (5, 2), (6, 5), (7, 6), (8, 7),
                    (9, 2), (10, 9), (11, 10), (12, 11), (13, 4), (14, 13),
                    (15, 14), (16, 15), (17, 4), (18, 17), (19, 18), (20, 19)]
INWARD = [(i - 1, j - 1) for i, j in INWARD_ORI_INDEX]
OUTWARD = [(j, i) for i, j in INWARD]


def gen_adj_np():
    """Replicates gen_adj()/normalize() from the PyTorch script."""
    A = np.zeros((3, NUM_JOINT, NUM_JOINT), dtype=np.float32)
    for i, j in INWARD:
        A[0, j, i] = 1.0
    for i, j in OUTWARD:
        A[1, j, i] = 1.0
    for i in FIVE_KEY_POINT:
        for j in FIVE_KEY_POINT:
            A[2, i, j] = 1.0
    for i in range(NUM_JOINT):
        A[:, i, i] = 1.0
    for g in range(3):
        rowsum = A[g].sum(axis=0)
        r_inv = rowsum ** -0.5
        D = np.diag(r_inv).astype(np.float32)
        A[g] = D @ A[g] @ D
    return A


# ------------------------------ fused kernel --------------------------------
def _gclstm_kernel(x_ref, nf_ref,
                   k1_ref, s1_ref, k2_ref, s2_ref, k3_ref, s3_ref,
                   k4_ref, s4_ref,
                   wih_ref, whh_ref, bl_ref, wc_ref, bc_ref, wd_ref, bd_ref,
                   probs_ref, disc_ref):
    """Fused 4x GraphConvolution + LSTM + heads.  Runs once; all data in VMEM.

    Activation layout: rows = t*N + n (time-major), cols = v*C + c.
    """
    f32 = jnp.float32
    N = nf_ref.shape[0]
    H = whh_ref.shape[0]
    TN = x_ref.shape[0]
    T = TN // N

    def gc_layer(act, k_ref, shift_ref, resid=None):
        # relu( BN( sum_g A_g^T @ X @ W_g + b ) ) folded into one matmul+shift.
        y = jnp.dot(act, k_ref[...], preferred_element_type=f32) + shift_ref[...]
        y = jnp.maximum(y, 0.0)
        return y if resid is None else y + resid

    x = x_ref[...]                                   # (T*N, V*Cin)
    o1 = gc_layer(x, k1_ref, s1_ref)
    o2 = gc_layer(o1, k2_ref, s2_ref)
    o3 = gc_layer(o2, k3_ref, s3_ref, o1)            # + output1 (GCLayers skip)
    o4 = gc_layer(o3, k4_ref, s4_ref, o2)            # + output2
    # TODO(synk): Dropout(0.25) is identity in eval mode (no sampling here).

    # LSTM: hoisted input projection (single big matmul); only h @ Whh remains
    # on the serial dependence chain.  Batched over N, unrolled over T.
    gates_x = jnp.dot(o4, wih_ref[...], preferred_element_type=f32) + bl_ref[...]
    whh = whh_ref[...]
    nf = nf_ref[...]                                 # (N, 1) int32 frame counts
    h = jnp.zeros((N, H), f32)
    c = jnp.zeros((N, H), f32)
    for t in range(T):                               # static unroll (T small)
        gates = (gates_x[t * N:(t + 1) * N, :]
                 + jnp.dot(h, whh, preferred_element_type=f32))
        i_g = jax.nn.sigmoid(gates[:, 0:H])
        f_g = jax.nn.sigmoid(gates[:, H:2 * H])
        g_g = jnp.tanh(gates[:, 2 * H:3 * H])
        o_g = jax.nn.sigmoid(gates[:, 3 * H:4 * H])
        c_new = f_g * c + i_g * g_g
        h_new = o_g * jnp.tanh(c_new)
        valid = t < nf                               # keep h at step num_frame-1
        h = jnp.where(valid, h_new, h)
        c = jnp.where(valid, c_new, c)

    # Heads fused into the epilogue: classifier softmax + discriminator sigmoid.
    logits = jnp.dot(h, wc_ref[...], preferred_element_type=f32) + bc_ref[...]
    m = jnp.max(logits, axis=-1, keepdims=True)
    e = jnp.exp(logits - m)
    probs_ref[...] = (e / jnp.sum(e, axis=-1, keepdims=True)).astype(probs_ref.dtype)
    d = jnp.dot(h, wd_ref[...], preferred_element_type=f32) + bd_ref[...]
    disc_ref[...] = jax.nn.sigmoid(d).astype(disc_ref.dtype)


# ------------------------- host-side weight folding -------------------------
def _fold_gc_layer(adj, w, b3, bn):
    """Fold one GraphConvolution (+ eval-mode BatchNorm) into (K, shift).

      K[(v,c),(w,d)]  = sum_g adj[g,v,w] * W[g,c,d] * bn_scale[d]
      shift[(w,d)]    = (sum_g b[g,d]) * bn_scale[d] + beta[d] - mean[d]*bn_scale[d]
    so that  relu(BN(sum_g A_g^T X W_g + b)) == relu(X_flat @ K + shift).
    Parameters-only preprocessing (no input-dependent work moved out of kernel).
    """
    gamma, beta, mean, var = bn
    cin, cout = w.shape[1], w.shape[2]
    V = adj.shape[-1]
    s = gamma / jnp.sqrt(var + 1e-5)
    K = jnp.einsum("gvw,gcd->vcwd", adj, w).reshape(V * cin, V * cout)
    K = K * jnp.tile(s, V)[None, :]
    shift = jnp.tile(jnp.sum(b3, axis=0) * s + beta - mean * s, V)[None, :]
    return K.astype(jnp.float32), shift.astype(jnp.float32)


# ------------------------------- full forward --------------------------------
def gc_lstm_forward(x_nchw, num_frame, params, adj):
    """x_nchw: (N, C=6, T, V=20) PyTorch NCHW.  Returns (softmax probs, sigmoid disc)."""
    N, C, T, V = x_nchw.shape
    H = HIDDEN_SIZE

    # layout: (N,C,T,V) -> time-major rows (t*N+n), joint-major cols (v*C+c).
    xk = jnp.transpose(x_nchw, (2, 0, 3, 1)).astype(jnp.float32).reshape(T * N, V * C)

    # TODO(synk): GraphConvolution.mask is all-ones at init, so adj*mask == adj.
    folded = []
    for name in ("gc1", "gc2", "gc3", "gc4"):
        K, shift = _fold_gc_layer(adj, params[f"{name}_w"], params[f"{name}_b"],
                                  params[f"{name}_bn"])
        folded += [K, shift]

    # Re-order Wih rows from the PyTorch feature order (c*V + v, from
    # permute(0,2,1,3).view) to the kernel's joint-major order (v*C + c).
    wih_k = (params["wih"].reshape(NUM_FEATURE, V, 4 * H)
             .transpose(1, 0, 2).reshape(NUM_FEATURE * V, 4 * H))

    nf = num_frame.astype(jnp.int32).reshape(N, 1)

    vmem = pl.BlockSpec(memory_space=pltpu.MemorySpace.VMEM)
    probs, disc = pl.pallas_call(
        _gclstm_kernel,
        out_shape=(jax.ShapeDtypeStruct((N, NUM_CLASSES), jnp.float32),
                   jax.ShapeDtypeStruct((N, 1), jnp.float32)),
        in_specs=[vmem] * 17,
        out_specs=(vmem, vmem),
    )(xk, nf, *folded,
      wih_k, params["whh"], params["b_lstm"],
      params["wc"], params["bc"], params["wd"], params["bd"])
    return probs, disc


# ---------------------------- pure-JAX reference -----------------------------
def _reference_forward(x_nchw, num_frame, params, adj):
    """Unfused, layout-naive reference used only to validate the fused kernel."""
    N, C, T, V = x_nchw.shape
    H = HIDDEN_SIZE
    x = jnp.transpose(x_nchw, (0, 2, 3, 1)).astype(jnp.float32)   # (N,T,V,C)
    adjT = jnp.swapaxes(adj, 1, 2)

    def gc(name, xin, resid):
        w = params[f"{name}_w"]; b3 = params[f"{name}_b"]
        gamma, beta, mean, var = params[f"{name}_bn"]
        y = jnp.einsum("gwv,ntvc,gcd->ntwd", adjT, xin, w) + jnp.sum(b3, axis=0)
        s = gamma / jnp.sqrt(var + 1e-5)
        y = jnp.maximum(y * s + (beta - mean * s), 0.0)
        return y if resid is None else y + resid

    o1 = gc("gc1", x, None)
    o2 = gc("gc2", o1, None)
    o3 = gc("gc3", o2, o1)
    o4 = gc("gc4", o3, o2)
    feats = jnp.transpose(o4, (0, 1, 3, 2)).reshape(N, T, -1)     # (N,T,C*V)

    wih, whh, b = params["wih"], params["whh"], params["b_lstm"]
    h = jnp.zeros((N, H), jnp.float32)
    c = jnp.zeros((N, H), jnp.float32)
    for t in range(T):
        g = feats[:, t, :] @ wih + h @ whh + b
        i_g = jax.nn.sigmoid(g[:, 0:H]); f_g = jax.nn.sigmoid(g[:, H:2 * H])
        g_g = jnp.tanh(g[:, 2 * H:3 * H]); o_g = jax.nn.sigmoid(g[:, 3 * H:4 * H])
        c_new = f_g * c + i_g * g_g
        h_new = o_g * jnp.tanh(c_new)
        valid = (t < num_frame).reshape(N, 1)
        h = jnp.where(valid, h_new, h)
        c = jnp.where(valid, c_new, c)
    probs = jax.nn.softmax(h @ params["wc"] + params["bc"], axis=-1)
    disc = jax.nn.sigmoid(h @ params["wd"] + params["bd"])
    return probs, disc


# ----------------------------- parameter init -------------------------------
def init_params(key):
    ks = jax.random.split(key, 16)
    params = {}
    layers_io = [(INPUT_FEATURE, NUM_FEATURE)] + [(NUM_FEATURE, NUM_FEATURE)] * 3
    for idx, (cin, cout) in enumerate(layers_io):
        name = f"gc{idx + 1}"
        # TODO(synk): BayesianConv2d samples weights each forward; we use
        # deterministic (mean) weights for the 1x1 convolutions.
        params[f"{name}_w"] = 0.1 * jax.random.normal(ks[idx], (3, cin, cout), jnp.float32)
        params[f"{name}_b"] = 0.05 * jax.random.normal(ks[4 + idx], (3, cout), jnp.float32)
        # BatchNorm2d eval-mode params (PyTorch defaults).
        params[f"{name}_bn"] = (jnp.ones((cout,), jnp.float32),   # gamma
                                jnp.zeros((cout,), jnp.float32),  # beta
                                jnp.zeros((cout,), jnp.float32),  # running_mean
                                jnp.ones((cout,), jnp.float32))   # running_var
    D = NUM_FEATURE * NUM_JOINT
    H = HIDDEN_SIZE
    # TODO(synk): PyTorch nn.LSTM has both bias_ih and bias_hh; when porting
    # real weights, sum them into this single bias row.
    params["wih"] = 0.05 * jax.random.normal(ks[8], (D, 4 * H), jnp.float32)
    params["whh"] = 0.05 * jax.random.normal(ks[9], (H, 4 * H), jnp.float32)
    params["b_lstm"] = 0.05 * jax.random.normal(ks[10], (1, 4 * H), jnp.float32)
    params["wc"] = 0.1 * jax.random.normal(ks[11], (H, NUM_CLASSES), jnp.float32)
    params["bc"] = jnp.zeros((1, NUM_CLASSES), jnp.float32)
    params["wd"] = 0.1 * jax.random.normal(ks[12], (H, 1), jnp.float32)
    params["bd"] = jnp.zeros((1, 1), jnp.float32)
    return params


# ----------------------------------- main ------------------------------------
if __name__ == "__main__":
    key = jax.random.PRNGKey(0)
    kx, kp = jax.random.split(key)

    N, C, T, V = 2, INPUT_FEATURE, 8, NUM_JOINT
    x = jax.random.normal(kx, (N, C, T, V), jnp.float32)          # PyTorch NCHW input
    num_frame = jnp.array([8, 5], dtype=jnp.int32)                # valid frames per sample

    adj = jnp.asarray(gen_adj_np())                               # (3, 20, 20)
    params = init_params(kp)

    probs, disc = gc_lstm_forward(x, num_frame, params, adj)
    probs, disc = jax.block_until_ready((probs, disc))

    assert probs.shape == (N, NUM_CLASSES) and disc.shape == (N, 1)
    assert np.allclose(np.asarray(jnp.sum(probs, axis=1)), 1.0, atol=1e-5)

    ref_probs, ref_disc = _reference_forward(x, num_frame, params, adj)
    assert np.allclose(np.asarray(probs), np.asarray(ref_probs), atol=2e-3, rtol=2e-3)
    assert np.allclose(np.asarray(disc), np.asarray(ref_disc), atol=2e-3, rtol=2e-3)

    print("KERNEL_OK")
</pallas_src>

<mosaic_0001>
module attributes {stable_mosaic.version = 11 : i64} {
  func.func @_gclstm_kernel(%arg0: memref<16x120xf32, #tpu.memory_space<vmem>>, %arg1: memref<2x1xi32, #tpu.memory_space<vmem>>, %arg2: memref<120x320xf32, #tpu.memory_space<vmem>>, %arg3: memref<1x320xf32, #tpu.memory_space<vmem>>, %arg4: memref<320x320xf32, #tpu.memory_space<vmem>>, %arg5: memref<1x320xf32, #tpu.memory_space<vmem>>, %arg6: memref<320x320xf32, #tpu.memory_space<vmem>>, %arg7: memref<1x320xf32, #tpu.memory_space<vmem>>, %arg8: memref<320x320xf32, #tpu.memory_space<vmem>>, %arg9: memref<1x320xf32, #tpu.memory_space<vmem>>, %arg10: memref<320x512xf32, #tpu.memory_space<vmem>>, %arg11: memref<128x512xf32, #tpu.memory_space<vmem>>, %arg12: memref<1x512xf32, #tpu.memory_space<vmem>>, %arg13: memref<128x27xf32, #tpu.memory_space<vmem>>, %arg14: memref<1x27xf32, #tpu.memory_space<vmem>>, %arg15: memref<128x1xf32, #tpu.memory_space<vmem>>, %arg16: memref<1x1xf32, #tpu.memory_space<vmem>>, %arg17: memref<2x27xf32, #tpu.memory_space<vmem>>, %arg18: memref<2x1xf32, #tpu.memory_space<vmem>>) attributes {dimension_semantics = [], scalar_prefetch = 0 : i64, scratch_operands = 0 : i64, tpu.core_type = #tpu.core_type<tc>} {
    %c0 = arith.constant 0 : index
    %c0_0 = arith.constant 0 : index
    %0 = vector.load %arg0[%c0, %c0_0] : memref<16x120xf32, #tpu.memory_space<vmem>>, vector<16x120xf32>
    %c0_1 = arith.constant 0 : index
    %c0_2 = arith.constant 0 : index
    %1 = vector.load %arg2[%c0_1, %c0_2] : memref<120x320xf32, #tpu.memory_space<vmem>>, vector<120x320xf32>
    %cst = arith.constant dense<0.000000e+00> : vector<16x320xf32>
    %2 = tpu.matmul %0, %1, %cst {dimension_numbers = #tpu.dot_dimension_numbers<[1], [0], [0], [1], [0, 0, 1, 1], [], []>} : vector<16x120xf32>, vector<120x320xf32>, vector<16x320xf32> -> vector<16x320xf32>
    %c0_3 = arith.constant 0 : index
    %c0_4 = arith.constant 0 : index
    %3 = vector.load %arg3[%c0_3, %c0_4] : memref<1x320xf32, #tpu.memory_space<vmem>>, vector<1x320xf32>
    %4 = vector.broadcast %3 : vector<1x320xf32> to vector<16x320xf32>
    %5 = arith.addf %2, %4 : vector<16x320xf32>
    %cst_5 = arith.constant 0.000000e+00 : f32
    %6 = vector.broadcast %cst_5 : f32 to vector<16x320xf32>
    %7 = arith.maximumf %5, %6 : vector<16x320xf32>
    %c0_6 = arith.constant 0 : index
    %c0_7 = arith.constant 0 : index
    %8 = vector.load %arg4[%c0_6, %c0_7] : memref<320x320xf32, #tpu.memory_space<vmem>>, vector<320x320xf32>
    %cst_8 = arith.constant dense<0.000000e+00> : vector<16x320xf32>
    %9 = tpu.matmul %7, %8, %cst_8 {dimension_numbers = #tpu.dot_dimension_numbers<[1], [0], [0], [1], [0, 0, 1, 1], [], []>} : vector<16x320xf32>, vector<320x320xf32>, vector<16x320xf32> -> vector<16x320xf32>
    %c0_9 = arith.constant 0 : index
    %c0_10 = arith.constant 0 : index
    %10 = vector.load %arg5[%c0_9, %c0_10] : memref<1x320xf32, #tpu.memory_space<vmem>>, vector<1x320xf32>
    %11 = vector.broadcast %10 : vector<1x320xf32> to vector<16x320xf32>
    %12 = arith.addf %9, %11 : vector<16x320xf32>
    %cst_11 = arith.constant 0.000000e+00 : f32
    %13 = vector.broadcast %cst_11 : f32 to vector<16x320xf32>
    %14 = arith.maximumf %12, %13 : vector<16x320xf32>
    %c0_12 = arith.constant 0 : index
    %c0_13 = arith.constant 0 : index
    %15 = vector.load %arg6[%c0_12, %c0_13] : memref<320x320xf32, #tpu.memory_space<vmem>>, vector<320x320xf32>
    %cst_14 = arith.constant dense<0.000000e+00> : vector<16x320xf32>
    %16 = tpu.matmul %14, %15, %cst_14 {dimension_numbers = #tpu.dot_dimension_numbers<[1], [0], [0], [1], [0, 0, 1, 1], [], []>} : vector<16x320xf32>, vector<320x320xf32>, vector<16x320xf32> -> vector<16x320xf32>
    %c0_15 = arith.constant 0 : index
    %c0_16 = arith.constant 0 : index
    %17 = vector.load %arg7[%c0_15, %c0_16] : memref<1x320xf32, #tpu.memory_space<vmem>>, vector<1x320xf32>
    %18 = vector.broadcast %17 : vector<1x320xf32> to vector<16x320xf32>
    %19 = arith.addf %16, %18 : vector<16x320xf32>
    %cst_17 = arith.constant 0.000000e+00 : f32
    %20 = vector.broadcast %cst_17 : f32 to vector<16x320xf32>
    %21 = arith.maximumf %19, %20 : vector<16x320xf32>
    %22 = arith.addf %21, %7 : vector<16x320xf32>
    %c0_18 = arith.constant 0 : index
    %c0_19 = arith.constant 0 : index
    %23 = vector.load %arg8[%c0_18, %c0_19] : memref<320x320xf32, #tpu.memory_space<vmem>>, vector<320x320xf32>
    %cst_20 = arith.constant dense<0.000000e+00> : vector<16x320xf32>
    %24 = tpu.matmul %22, %23, %cst_20 {dimension_numbers = #tpu.dot_dimension_numbers<[1], [0], [0], [1], [0, 0, 1, 1], [], []>} : vector<16x320xf32>, vector<320x320xf32>, vector<16x320xf32> -> vector<16x320xf32>
    %c0_21 = arith.constant 0 : index
    %c0_22 = arith.constant 0 : index
    %25 = vector.load %arg9[%c0_21, %c0_22] : memref<1x320xf32, #tpu.memory_space<vmem>>, vector<1x320xf32>
    %26 = vector.broadcast %25 : vector<1x320xf32> to vector<16x320xf32>
    %27 = arith.addf %24, %26 : vector<16x320xf32>
    %cst_23 = arith.constant 0.000000e+00 : f32
    %28 = vector.broadcast %cst_23 : f32 to vector<16x320xf32>
    %29 = arith.maximumf %27, %28 : vector<16x320xf32>
    %30 = arith.addf %29, %14 : vector<16x320xf32>
    %c0_24 = arith.constant 0 : index
    %c0_25 = arith.constant 0 : index
    %31 = vector.load %arg10[%c0_24, %c0_25] : memref<320x512xf32, #tpu.memory_space<vmem>>, vector<320x512xf32>
    %cst_26 = arith.constant dense<0.000000e+00> : vector<16x512xf32>
    %32 = tpu.matmul %30, %31, %cst_26 {dimension_numbers = #tpu.dot_dimension_numbers<[1], [0], [0], [1], [0, 0, 1, 1], [], []>} : vector<16x320xf32>, vector<320x512xf32>, vector<16x512xf32> -> vector<16x512xf32>
    %c0_27 = arith.constant 0 : index
    %c0_28 = arith.constant 0 : index
    %33 = vector.load %arg12[%c0_27, %c0_28] : memref<1x512xf32, #tpu.memory_space<vmem>>, vector<1x512xf32>
    %34 = vector.broadcast %33 : vector<1x512xf32> to vector<16x512xf32>
    %35 = arith.addf %32, %34 : vector<16x512xf32>
    %c0_29 = arith.constant 0 : index
    %c0_30 = arith.constant 0 : index
    %36 = vector.load %arg11[%c0_29, %c0_30] : memref<128x512xf32, #tpu.memory_space<vmem>>, vector<128x512xf32>
    %c0_31 = arith.constant 0 : index
    %c0_32 = arith.constant 0 : index
    %37 = vector.load %arg1[%c0_31, %c0_32] : memref<2x1xi32, #tpu.memory_space<vmem>>, vector<2x1xi32>
    %cst_33 = arith.constant 0.000000e+00 : f32
    %38 = vector.broadcast %cst_33 : f32 to vector<2x128xf32>
    %cst_34 = arith.constant 0.000000e+00 : f32
    %39 = vector.broadcast %cst_34 : f32 to vector<2x128xf32>
    %40 = vector.extract_strided_slice %35 {offsets = [0, 0], sizes = [2, 512], strides = [1, 1]} : vector<16x512xf32> to vector<2x512xf32>
    %cst_35 = arith.constant dense<0.000000e+00> : vector<2x512xf32>
    %41 = tpu.matmul %38, %36, %cst_35 {dimension_numbers = #tpu.dot_dimension_numbers<[1], [0], [0], [1], [0, 0, 1, 1], [], []>} : vector<2x128xf32>, vector<128x512xf32>, vector<2x512xf32> -> vector<2x512xf32>
    %42 = arith.addf %40, %41 : vector<2x512xf32>
    %43 = vector.extract_strided_slice %42 {offsets = [0, 0], sizes = [2, 128], strides = [1, 1]} : vector<2x512xf32> to vector<2x128xf32>
    %44 = arith.negf %43 : vector<2x128xf32>
    %45 = math.exp %44 : vector<2x128xf32>
    %cst_36 = arith.constant 1.000000e+00 : f32
    %46 = vector.broadcast %cst_36 : f32 to vector<2x128xf32>
    %47 = arith.addf %46, %45 : vector<2x128xf32>
    %48 = arith.divf %46, %47 : vector<2x128xf32>
    %49 = vector.extract_strided_slice %42 {offsets = [0, 128], sizes = [2, 128], strides = [1, 1]} : vector<2x512xf32> to vector<2x128xf32>
    %50 = arith.negf %49 : vector<2x128xf32>
    %51 = math.exp %50 : vector<2x128xf32>
    %cst_37 = arith.constant 1.000000e+00 : f32
    %52 = vector.broadcast %cst_37 : f32 to vector<2x128xf32>
    %53 = arith.addf %52, %51 : vector<2x128xf32>
    %54 = arith.divf %52, %53 : vector<2x128xf32>
    %55 = vector.extract_strided_slice %42 {offsets = [0, 256], sizes = [2, 128], strides = [1, 1]} : vector<2x512xf32> to vector<2x128xf32>
    %56 = math.tanh %55 : vector<2x128xf32>
    %57 = vector.extract_strided_slice %42 {offsets = [0, 384], sizes = [2, 128], strides = [1, 1]} : vector<2x512xf32> to vector<2x128xf32>
    %58 = arith.negf %57 : vector<2x128xf32>
    %59 = math.exp %58 : vector<2x128xf32>
    %cst_38 = arith.constant 1.000000e+00 : f32
    %60 = vector.broadcast %cst_38 : f32 to vector<2x128xf32>
    %61 = arith.addf %60, %59 : vector<2x128xf32>
    %62 = arith.divf %60, %61 : vector<2x128xf32>
    %63 = arith.mulf %54, %39 : vector<2x128xf32>
    %64 = arith.mulf %48, %56 : vector<2x128xf32>
    %65 = arith.addf %63, %64 : vector<2x128xf32>
    %66 = math.tanh %65 : vector<2x128xf32>
    %67 = arith.mulf %62, %66 : vector<2x128xf32>
    %c0_i32 = arith.constant 0 : i32
    %68 = vector.broadcast %c0_i32 : i32 to vector<2x1xi32>
    %69 = arith.cmpi sgt, %37, %68 : vector<2x1xi32>
    %70 = vector.shape_cast %69 : vector<2x1xi1> to vector<2x1xi1>
    %71 = vector.broadcast %70 : vector<2x1xi1> to vector<2x128xi1>
    %72 = arith.select %71, %67, %38 : vector<2x128xi1>, vector<2x128xf32>
    %73 = vector.shape_cast %69 : vector<2x1xi1> to vector<2x1xi1>
    %74 = vector.broadcast %73 : vector<2x1xi1> to vector<2x128xi1>
    %75 = arith.select %74, %65, %39 : vector<2x128xi1>, vector<2x128xf32>
    %76 = vector.extract_strided_slice %35 {offsets = [2, 0], sizes = [2, 512], strides = [1, 1]} : vector<16x512xf32> to vector<2x512xf32>
    %cst_39 = arith.constant dense<0.000000e+00> : vector<2x512xf32>
    %77 = tpu.matmul %72, %36, %cst_39 {dimension_numbers = #tpu.dot_dimension_numbers<[1], [0], [0], [1], [0, 0, 1, 1], [], []>} : vector<2x128xf32>, vector<128x512xf32>, vector<2x512xf32> -> vector<2x512xf32>
    %78 = arith.addf %76, %77 : vector<2x512xf32>
    %79 = vector.extract_strided_slice %78 {offsets = [0, 0], sizes = [2, 128], strides = [1, 1]} : vector<2x512xf32> to vector<2x128xf32>
    %80 = arith.negf %79 : vector<2x128xf32>
    %81 = math.exp %80 : vector<2x128xf32>
    %cst_40 = arith.constant 1.000000e+00 : f32
    %82 = vector.broadcast %cst_40 : f32 to vector<2x128xf32>
    %83 = arith.addf %82, %81 : vector<2x128xf32>
    %84 = arith.divf %82, %83 : vector<2x128xf32>
    %85 = vector.extract_strided_slice %78 {offsets = [0, 128], sizes = [2, 128], strides = [1, 1]} : vector<2x512xf32> to vector<2x128xf32>
    %86 = arith.negf %85 : vector<2x128xf32>
    %87 = math.exp %86 : vector<2x128xf32>
    %cst_41 = arith.constant 1.000000e+00 : f32
    %88 = vector.broadcast %cst_41 : f32 to vector<2x128xf32>
    %89 = arith.addf %88, %87 : vector<2x128xf32>
    %90 = arith.divf %88, %89 : vector<2x128xf32>
    %91 = vector.extract_strided_slice %78 {offsets = [0, 256], sizes = [2, 128], strides = [1, 1]} : vector<2x512xf32> to vector<2x128xf32>
    %92 = math.tanh %91 : vector<2x128xf32>
    %93 = vector.extract_strided_slice %78 {offsets = [0, 384], sizes = [2, 128], strides = [1, 1]} : vector<2x512xf32> to vector<2x128xf32>
    %94 = arith.negf %93 : vector<2x128xf32>
    %95 = math.exp %94 : vector<2x128xf32>
    %cst_42 = arith.constant 1.000000e+00 : f32
    %96 = vector.broadcast %cst_42 : f32 to vector<2x128xf32>
    %97 = arith.addf %96, %95 : vector<2x128xf32>
    %98 = arith.divf %96, %97 : vector<2x128xf32>
    %99 = arith.mulf %90, %75 : vector<2x128xf32>
    %100 = arith.mulf %84, %92 : vector<2x128xf32>
    %101 = arith.addf %99, %100 : vector<2x128xf32>
    %102 = math.tanh %101 : vector<2x128xf32>
    %103 = arith.mulf %98, %102 : vector<2x128xf32>
    %c1_i32 = arith.constant 1 : i32
    %104 = vector.broadcast %c1_i32 : i32 to vector<2x1xi32>
    %105 = arith.cmpi sgt, %37, %104 : vector<2x1xi32>
    %106 = vector.shape_cast %105 : vector<2x1xi1> to vector<2x1xi1>
    %107 = vector.broadcast %106 : vector<2x1xi1> to vector<2x128xi1>
    %108 = arith.select %107, %103, %72 : vector<2x128xi1>, vector<2x128xf32>
    %109 = vector.shape_cast %105 : vector<2x1xi1> to vector<2x1xi1>
    %110 = vector.broadcast %109 : vector<2x1xi1> to vector<2x128xi1>
    %111 = arith.select %110, %101, %75 : vector<2x128xi1>, vector<2x128xf32>
    %112 = vector.extract_strided_slice %35 {offsets = [4, 0], sizes = [2, 512], strides = [1, 1]} : vector<16x512xf32> to vector<2x512xf32>
    %cst_43 = arith.constant dense<0.000000e+00> : vector<2x512xf32>
    %113 = tpu.matmul %108, %36, %cst_43 {dimension_numbers = #tpu.dot_dimension_numbers<[1], [0], [0], [1], [0, 0, 1, 1], [], []>} : vector<2x128xf32>, vector<128x512xf32>, vector<2x512xf32> -> vector<2x512xf32>
    %114 = arith.addf %112, %113 : vector<2x512xf32>
    %115 = vector.extract_strided_slice %114 {offsets = [0, 0], sizes = [2, 128], strides = [1, 1]} : vector<2x512xf32> to vector<2x128xf32>
    %116 = arith.negf %115 : vector<2x128xf32>
    %117 = math.exp %116 : vector<2x128xf32>
    %cst_44 = arith.constant 1.000000e+00 : f32
    %118 = vector.broadcast %cst_44 : f32 to vector<2x128xf32>
    %119 = arith.addf %118, %117 : vector<2x128xf32>
    %120 = arith.divf %118, %119 : vector<2x128xf32>
    %121 = vector.extract_strided_slice %114 {offsets = [0, 128], sizes = [2, 128], strides = [1, 1]} : vector<2x512xf32> to vector<2x128xf32>
    %122 = arith.negf %121 : vector<2x128xf32>
    %123 = math.exp %122 : vector<2x128xf32>
    %cst_45 = arith.constant 1.000000e+00 : f32
    %124 = vector.broadcast %cst_45 : f32 to vector<2x128xf32>
    %125 = arith.addf %124, %123 : vector<2x128xf32>
    %126 = arith.divf %124, %125 : vector<2x128xf32>
    %127 = vector.extract_strided_slice %114 {offsets = [0, 256], sizes = [2, 128], strides = [1, 1]} : vector<2x512xf32> to vector<2x128xf32>
    %128 = math.tanh %127 : vector<2x128xf32>
    %129 = vector.extract_strided_slice %114 {offsets = [0, 384], sizes = [2, 128], strides = [1, 1]} : vector<2x512xf32> to vector<2x128xf32>
    %130 = arith.negf %129 : vector<2x128xf32>
    %131 = math.exp %130 : vector<2x128xf32>
    %cst_46 = arith.constant 1.000000e+00 : f32
    %132 = vector.broadcast %cst_46 : f32 to vector<2x128xf32>
    %133 = arith.addf %132, %131 : vector<2x128xf32>
    %134 = arith.divf %132, %133 : vector<2x128xf32>
    %135 = arith.mulf %126, %111 : vector<2x128xf32>
    %136 = arith.mulf %120, %128 : vector<2x128xf32>
    %137 = arith.addf %135, %136 : vector<2x128xf32>
    %138 = math.tanh %137 : vector<2x128xf32>
    %139 = arith.mulf %134, %138 : vector<2x128xf32>
    %c2_i32 = arith.constant 2 : i32
    %140 = vector.broadcast %c2_i32 : i32 to vector<2x1xi32>
    %141 = arith.cmpi sgt, %37, %140 : vector<2x1xi32>
    %142 = vector.shape_cast %141 : vector<2x1xi1> to vector<2x1xi1>
    %143 = vector.broadcast %142 : vector<2x1xi1> to vector<2x128xi1>
    %144 = arith.select %143, %139, %108 : vector<2x128xi1>, vector<2x128xf32>
    %145 = vector.shape_cast %141 : vector<2x1xi1> to vector<2x1xi1>
    %146 = vector.broadcast %145 : vector<2x1xi1> to vector<2x128xi1>
    %147 = arith.select %146, %137, %111 : vector<2x128xi1>, vector<2x128xf32>
    %148 = vector.extract_strided_slice %35 {offsets = [6, 0], sizes = [2, 512], strides = [1, 1]} : vector<16x512xf32> to vector<2x512xf32>
    %cst_47 = arith.constant dense<0.000000e+00> : vector<2x512xf32>
    %149 = tpu.matmul %144, %36, %cst_47 {dimension_numbers = #tpu.dot_dimension_numbers<[1], [0], [0], [1], [0, 0, 1, 1], [], []>} : vector<2x128xf32>, vector<128x512xf32>, vector<2x512xf32> -> vector<2x512xf32>
    %150 = arith.addf %148, %149 : vector<2x512xf32>
    %151 = vector.extract_strided_slice %150 {offsets = [0, 0], sizes = [2, 128], strides = [1, 1]} : vector<2x512xf32> to vector<2x128xf32>
    %152 = arith.negf %151 : vector<2x128xf32>
    %153 = math.exp %152 : vector<2x128xf32>
    %cst_48 = arith.constant 1.000000e+00 : f32
    %154 = vector.broadcast %cst_48 : f32 to vector<2x128xf32>
    %155 = arith.addf %154, %153 : vector<2x128xf32>
    %156 = arith.divf %154, %155 : vector<2x128xf32>
    %157 = vector.extract_strided_slice %150 {offsets = [0, 128], sizes = [2, 128], strides = [1, 1]} : vector<2x512xf32> to vector<2x128xf32>
    %158 = arith.negf %157 : vector<2x128xf32>
    %159 = math.exp %158 : vector<2x128xf32>
    %cst_49 = arith.constant 1.000000e+00 : f32
    %160 = vector.broadcast %cst_49 : f32 to vector<2x128xf32>
    %161 = arith.addf %160, %159 : vector<2x128xf32>
    %162 = arith.divf %160, %161 : vector<2x128xf32>
    %163 = vector.extract_strided_slice %150 {offsets = [0, 256], sizes = [2, 128], strides = [1, 1]} : vector<2x512xf32> to vector<2x128xf32>
    %164 = math.tanh %163 : vector<2x128xf32>
    %165 = vector.extract_strided_slice %150 {offsets = [0, 384], sizes = [2, 128], strides = [1, 1]} : vector<2x512xf32> to vector<2x128xf32>
    %166 = arith.negf %165 : vector<2x128xf32>
    %167 = math.exp %166 : vector<2x128xf32>
    %cst_50 = arith.constant 1.000000e+00 : f32
    %168 = vector.broadcast %cst_50 : f32 to vector<2x128xf32>
    %169 = arith.addf %168, %167 : vector<2x128xf32>
    %170 = arith.divf %168, %169 : vector<2x128xf32>
    %171 = arith.mulf %162, %147 : vector<2x128xf32>
    %172 = arith.mulf %156, %164 : vector<2x128xf32>
    %173 = arith.addf %171, %172 : vector<2x128xf32>
    %174 = math.tanh %173 : vector<2x128xf32>
    %175 = arith.mulf %170, %174 : vector<2x128xf32>
    %c3_i32 = arith.constant 3 : i32
    %176 = vector.broadcast %c3_i32 : i32 to vector<2x1xi32>
    %177 = arith.cmpi sgt, %37, %176 : vector<2x1xi32>
    %178 = vector.shape_cast %177 : vector<2x1xi1> to vector<2x1xi1>
    %179 = vector.broadcast %178 : vector<2x1xi1> to vector<2x128xi1>
    %180 = arith.select %179, %175, %144 : vector<2x128xi1>, vector<2x128xf32>
    %181 = vector.shape_cast %177 : vector<2x1xi1> to vector<2x1xi1>
    %182 = vector.broadcast %181 : vector<2x1xi1> to vector<2x128xi1>
    %183 = arith.select %182, %173, %147 : vector<2x128xi1>, vector<2x128xf32>
    %184 = vector.extract_strided_slice %35 {offsets = [8, 0], sizes = [2, 512], strides = [1, 1]} : vector<16x512xf32> to vector<2x512xf32>
    %cst_51 = arith.constant dense<0.000000e+00> : vector<2x512xf32>
    %185 = tpu.matmul %180, %36, %cst_51 {dimension_numbers = #tpu.dot_dimension_numbers<[1], [0], [0], [1], [0, 0, 1, 1], [], []>} : vector<2x128xf32>, vector<128x512xf32>, vector<2x512xf32> -> vector<2x512xf32>
    %186 = arith.addf %184, %185 : vector<2x512xf32>
    %187 = vector.extract_strided_slice %186 {offsets = [0, 0], sizes = [2, 128], strides = [1, 1]} : vector<2x512xf32> to vector<2x128xf32>
    %188 = arith.negf %187 : vector<2x128xf32>
    %189 = math.exp %188 : vector<2x128xf32>
    %cst_52 = arith.constant 1.000000e+00 : f32
    %190 = vector.broadcast %cst_52 : f32 to vector<2x128xf32>
    %191 = arith.addf %190, %189 : vector<2x128xf32>
    %192 = arith.divf %190, %191 : vector<2x128xf32>
    %193 = vector.extract_strided_slice %186 {offsets = [0, 128], sizes = [2, 128], strides = [1, 1]} : vector<2x512xf32> to vector<2x128xf32>
    %194 = arith.negf %193 : vector<2x128xf32>
    %195 = math.exp %194 : vector<2x128xf32>
    %cst_53 = arith.constant 1.000000e+00 : f32
    %196 = vector.broadcast %cst_53 : f32 to vector<2x128xf32>
    %197 = arith.addf %196, %195 : vector<2x128xf32>
    %198 = arith.divf %196, %197 : vector<2x128xf32>
    %199 = vector.extract_strided_slice %186 {offsets = [0, 256], sizes = [2, 128], strides = [1, 1]} : vector<2x512xf32> to vector<2x128xf32>
    %200 = math.tanh %199 : vector<2x128xf32>
    %201 = vector.extract_strided_slice %186 {offsets = [0, 384], sizes = [2, 128], strides = [1, 1]} : vector<2x512xf32> to vector<2x128xf32>
    %202 = arith.negf %201 : vector<2x128xf32>
    %203 = math.exp %202 : vector<2x128xf32>
    %cst_54 = arith.constant 1.000000e+00 : f32
    %204 = vector.broadcast %cst_54 : f32 to vector<2x128xf32>
    %205 = arith.addf %204, %203 : vector<2x128xf32>
    %206 = arith.divf %204, %205 : vector<2x128xf32>
    %207 = arith.mulf %198, %183 : vector<2x128xf32>
    %208 = arith.mulf %192, %200 : vector<2x128xf32>
    %209 = arith.addf %207, %208 : vector<2x128xf32>
    %210 = math.tanh %209 : vector<2x128xf32>
    %211 = arith.mulf %206, %210 : vector<2x128xf32>
    %c4_i32 = arith.constant 4 : i32
    %212 = vector.broadcast %c4_i32 : i32 to vector<2x1xi32>
    %213 = arith.cmpi sgt, %37, %212 : vector<2x1xi32>
    %214 = vector.shape_cast %213 : vector<2x1xi1> to vector<2x1xi1>
    %215 = vector.broadcast %214 : vector<2x1xi1> to vector<2x128xi1>
    %216 = arith.select %215, %211, %180 : vector<2x128xi1>, vector<2x128xf32>
    %217 = vector.shape_cast %213 : vector<2x1xi1> to vector<2x1xi1>
    %218 = vector.broadcast %217 : vector<2x1xi1> to vector<2x128xi1>
    %219 = arith.select %218, %209, %183 : vector<2x128xi1>, vector<2x128xf32>
    %220 = vector.extract_strided_slice %35 {offsets = [10, 0], sizes = [2, 512], strides = [1, 1]} : vector<16x512xf32> to vector<2x512xf32>
    %cst_55 = arith.constant dense<0.000000e+00> : vector<2x512xf32>
    %221 = tpu.matmul %216, %36, %cst_55 {dimension_numbers = #tpu.dot_dimension_numbers<[1], [0], [0], [1], [0, 0, 1, 1], [], []>} : vector<2x128xf32>, vector<128x512xf32>, vector<2x512xf32> -> vector<2x512xf32>
    %222 = arith.addf %220, %221 : vector<2x512xf32>
    %223 = vector.extract_strided_slice %222 {offsets = [0, 0], sizes = [2, 128], strides = [1, 1]} : vector<2x512xf32> to vector<2x128xf32>
    %224 = arith.negf %223 : vector<2x128xf32>
    %225 = math.exp %224 : vector<2x128xf32>
    %cst_56 = arith.constant 1.000000e+00 : f32
    %226 = vector.broadcast %cst_56 : f32 to vector<2x128xf32>
    %227 = arith.addf %226, %225 : vector<2x128xf32>
    %228 = arith.divf %226, %227 : vector<2x128xf32>
    %229 = vector.extract_strided_slice %222 {offsets = [0, 128], sizes = [2, 128], strides = [1, 1]} : vector<2x512xf32> to vector<2x128xf32>
    %230 = arith.negf %229 : vector<2x128xf32>
    %231 = math.exp %230 : vector<2x128xf32>
    %cst_57 = arith.constant 1.000000e+00 : f32
    %232 = vector.broadcast %cst_57 : f32 to vector<2x128xf32>
    %233 = arith.addf %232, %231 : vector<2x128xf32>
    %234 = arith.divf %232, %233 : vector<2x128xf32>
    %235 = vector.extract_strided_slice %222 {offsets = [0, 256], sizes = [2, 128], strides = [1, 1]} : vector<2x512xf32> to vector<2x128xf32>
    %236 = math.tanh %235 : vector<2x128xf32>
    %237 = vector.extract_strided_slice %222 {offsets = [0, 384], sizes = [2, 128], strides = [1, 1]} : vector<2x512xf32> to vector<2x128xf32>
    %238 = arith.negf %237 : vector<2x128xf32>
    %239 = math.exp %238 : vector<2x128xf32>
    %cst_58 = arith.constant 1.000000e+00 : f32
    %240 = vector.broadcast %cst_58 : f32 to vector<2x128xf32>
    %241 = arith.addf %240, %239 : vector<2x128xf32>
    %242 = arith.divf %240, %241 : vector<2x128xf32>
    %243 = arith.mulf %234, %219 : vector<2x128xf32>
    %244 = arith.mulf %228, %236 : vector<2x128xf32>
    %245 = arith.addf %243, %244 : vector<2x128xf32>
    %246 = math.tanh %245 : vector<2x128xf32>
    %247 = arith.mulf %242, %246 : vector<2x128xf32>
    %c5_i32 = arith.constant 5 : i32
    %248 = vector.broadcast %c5_i32 : i32 to vector<2x1xi32>
    %249 = arith.cmpi sgt, %37, %248 : vector<2x1xi32>
    %250 = vector.shape_cast %249 : vector<2x1xi1> to vector<2x1xi1>
    %251 = vector.broadcast %250 : vector<2x1xi1> to vector<2x128xi1>
    %252 = arith.select %251, %247, %216 : vector<2x128xi1>, vector<2x128xf32>
    %253 = vector.shape_cast %249 : vector<2x1xi1> to vector<2x1xi1>
    %254 = vector.broadcast %253 : vector<2x1xi1> to vector<2x128xi1>
    %255 = arith.select %254, %245, %219 : vector<2x128xi1>, vector<2x128xf32>
    %256 = vector.extract_strided_slice %35 {offsets = [12, 0], sizes = [2, 512], strides = [1, 1]} : vector<16x512xf32> to vector<2x512xf32>
    %cst_59 = arith.constant dense<0.000000e+00> : vector<2x512xf32>
    %257 = tpu.matmul %252, %36, %cst_59 {dimension_numbers = #tpu.dot_dimension_numbers<[1], [0], [0], [1], [0, 0, 1, 1], [], []>} : vector<2x128xf32>, vector<128x512xf32>, vector<2x512xf32> -> vector<2x512xf32>
    %258 = arith.addf %256, %257 : vector<2x512xf32>
    %259 = vector.extract_strided_slice %258 {offsets = [0, 0], sizes = [2, 128], strides = [1, 1]} : vector<2x512xf32> to vector<2x128xf32>
    %260 = arith.negf %259 : vector<2x128xf32>
    %261 = math.exp %260 : vector<2x128xf32>
    %cst_60 = arith.constant 1.000000e+00 : f32
    %262 = vector.broadcast %cst_60 : f32 to vector<2x128xf32>
    %263 = arith.addf %262, %261 : vector<2x128xf32>
    %264 = arith.divf %262, %263 : vector<2x128xf32>
    %265 = vector.extract_strided_slice %258 {offsets = [0, 128], sizes = [2, 128], strides = [1, 1]} : vector<2x512xf32> to vector<2x128xf32>
    %266 = arith.negf %265 : vector<2x128xf32>
    %267 = math.exp %266 : vector<2x128xf32>
    %cst_61 = arith.constant 1.000000e+00 : f32
    %268 = vector.broadcast %cst_61 : f32 to vector<2x128xf32>
    %269 = arith.addf %268, %267 : vector<2x128xf32>
    %270 = arith.divf %268, %269 : vector<2x128xf32>
    %271 = vector.extract_strided_slice %258 {offsets = [0, 256], sizes = [2, 128], strides = [1, 1]} : vector<2x512xf32> to vector<2x128xf32>
    %272 = math.tanh %271 : vector<2x128xf32>
    %273 = vector.extract_strided_slice %258 {offsets = [0, 384], sizes = [2, 128], strides = [1, 1]} : vector<2x512xf32> to vector<2x128xf32>
    %274 = arith.negf %273 : vector<2x128xf32>
    %275 = math.exp %274 : vector<2x128xf32>
    %cst_62 = arith.constant 1.000000e+00 : f32
    %276 = vector.broadcast %cst_62 : f32 to vector<2x128xf32>
    %277 = arith.addf %276, %275 : vector<2x128xf32>
    %278 = arith.divf %276, %277 : vector<2x128xf32>
    %279 = arith.mulf %270, %255 : vector<2x128xf32>
    %280 = arith.mulf %264, %272 : vector<2x128xf32>
    %281 = arith.addf %279, %280 : vector<2x128xf32>
    %282 = math.tanh %281 : vector<2x128xf32>
    %283 = arith.mulf %278, %282 : vector<2x128xf32>
    %c6_i32 = arith.constant 6 : i32
    %284 = vector.broadcast %c6_i32 : i32 to vector<2x1xi32>
    %285 = arith.cmpi sgt, %37, %284 : vector<2x1xi32>
    %286 = vector.shape_cast %285 : vector<2x1xi1> to vector<2x1xi1>
    %287 = vector.broadcast %286 : vector<2x1xi1> to vector<2x128xi1>
    %288 = arith.select %287, %283, %252 : vector<2x128xi1>, vector<2x128xf32>
    %289 = vector.shape_cast %285 : vector<2x1xi1> to vector<2x1xi1>
    %290 = vector.broadcast %289 : vector<2x1xi1> to vector<2x128xi1>
    %291 = arith.select %290, %281, %255 : vector<2x128xi1>, vector<2x128xf32>
    %292 = vector.extract_strided_slice %35 {offsets = [14, 0], sizes = [2, 512], strides = [1, 1]} : vector<16x512xf32> to vector<2x512xf32>
    %cst_63 = arith.constant dense<0.000000e+00> : vector<2x512xf32>
    %293 = tpu.matmul %288, %36, %cst_63 {dimension_numbers = #tpu.dot_dimension_numbers<[1], [0], [0], [1], [0, 0, 1, 1], [], []>} : vector<2x128xf32>, vector<128x512xf32>, vector<2x512xf32> -> vector<2x512xf32>
    %294 = arith.addf %292, %293 : vector<2x512xf32>
    %295 = vector.extract_strided_slice %294 {offsets = [0, 0], sizes = [2, 128], strides = [1, 1]} : vector<2x512xf32> to vector<2x128xf32>
    %296 = arith.negf %295 : vector<2x128xf32>
    %297 = math.exp %296 : vector<2x128xf32>
    %cst_64 = arith.constant 1.000000e+00 : f32
    %298 = vector.broadcast %cst_64 : f32 to vector<2x128xf32>
    %299 = arith.addf %298, %297 : vector<2x128xf32>
    %300 = arith.divf %298, %299 : vector<2x128xf32>
    %301 = vector.extract_strided_slice %294 {offsets = [0, 128], sizes = [2, 128], strides = [1, 1]} : vector<2x512xf32> to vector<2x128xf32>
    %302 = arith.negf %301 : vector<2x128xf32>
    %303 = math.exp %302 : vector<2x128xf32>
    %cst_65 = arith.constant 1.000000e+00 : f32
    %304 = vector.broadcast %cst_65 : f32 to vector<2x128xf32>
    %305 = arith.addf %304, %303 : vector<2x128xf32>
    %306 = arith.divf %304, %305 : vector<2x128xf32>
    %307 = vector.extract_strided_slice %294 {offsets = [0, 256], sizes = [2, 128], strides = [1, 1]} : vector<2x512xf32> to vector<2x128xf32>
    %308 = math.tanh %307 : vector<2x128xf32>
    %309 = vector.extract_strided_slice %294 {offsets = [0, 384], sizes = [2, 128], strides = [1, 1]} : vector<2x512xf32> to vector<2x128xf32>
    %310 = arith.negf %309 : vector<2x128xf32>
    %311 = math.exp %310 : vector<2x128xf32>
    %cst_66 = arith.constant 1.000000e+00 : f32
    %312 = vector.broadcast %cst_66 : f32 to vector<2x128xf32>
    %313 = arith.addf %312, %311 : vector<2x128xf32>
    %314 = arith.divf %312, %313 : vector<2x128xf32>
    %315 = arith.mulf %306, %291 : vector<2x128xf32>
    %316 = arith.mulf %300, %308 : vector<2x128xf32>
    %317 = arith.addf %315, %316 : vector<2x128xf32>
    %318 = math.tanh %317 : vector<2x128xf32>
    %319 = arith.mulf %314, %318 : vector<2x128xf32>
    %c7_i32 = arith.constant 7 : i32
    %320 = vector.broadcast %c7_i32 : i32 to vector<2x1xi32>
    %321 = arith.cmpi sgt, %37, %320 : vector<2x1xi32>
    %322 = vector.shape_cast %321 : vector<2x1xi1> to vector<2x1xi1>
    %323 = vector.broadcast %322 : vector<2x1xi1> to vector<2x128xi1>
    %324 = arith.select %323, %319, %288 : vector<2x128xi1>, vector<2x128xf32>
    %c0_67 = arith.constant 0 : index
    %c0_68 = arith.constant 0 : index
    %325 = vector.load %arg13[%c0_67, %c0_68] : memref<128x27xf32, #tpu.memory_space<vmem>>, vector<128x27xf32>
    %cst_69 = arith.constant dense<0.000000e+00> : vector<2x27xf32>
    %326 = tpu.matmul %324, %325, %cst_69 {dimension_numbers = #tpu.dot_dimension_numbers<[1], [0], [0], [1], [0, 0, 1, 1], [], []>} : vector<2x128xf32>, vector<128x27xf32>, vector<2x27xf32> -> vector<2x27xf32>
    %c0_70 = arith.constant 0 : index
    %c0_71 = arith.constant 0 : index
    %327 = vector.load %arg14[%c0_70, %c0_71] : memref<1x27xf32, #tpu.memory_space<vmem>>, vector<1x27xf32>
    %328 = vector.broadcast %327 : vector<1x27xf32> to vector<2x27xf32>
    %329 = arith.addf %326, %328 : vector<2x27xf32>
    %cst_72 = arith.constant dense<0xFF800000> : vector<2xf32>
    %330 = vector.multi_reduction <maximumf>, %329, %cst_72 [1] : vector<2x27xf32> to vector<2xf32>
    %331 = vector.shape_cast %330 : vector<2xf32> to vector<2x1xf32>
    %332 = vector.broadcast %331 : vector<2x1xf32> to vector<2x27xf32>
    %333 = arith.subf %329, %332 : vector<2x27xf32>
    %334 = math.exp %333 : vector<2x27xf32>
    %cst_73 = arith.constant dense<0.000000e+00> : vector<2xf32>
    %335 = vector.multi_reduction <add>, %334, %cst_73 [1] : vector<2x27xf32> to vector<2xf32>
    %336 = vector.shape_cast %335 : vector<2xf32> to vector<2x1xf32>
    %337 = vector.broadcast %336 : vector<2x1xf32> to vector<2x27xf32>
    %338 = arith.divf %334, %337 : vector<2x27xf32>
    %c0_74 = arith.constant 0 : index
    %c0_75 = arith.constant 0 : index
    %339 = vector.load %arg17[%c0_74, %c0_75] : memref<2x27xf32, #tpu.memory_space<vmem>>, vector<2x27xf32>
    tpu.vector_store %arg17[%c0_74, %c0_75], %338 {strides = array<i32>} : memref<2x27xf32, #tpu.memory_space<vmem>>, vector<2x27xf32>,
    %c0_76 = arith.constant 0 : index
    %c0_77 = arith.constant 0 : index
    %340 = vector.load %arg15[%c0_76, %c0_77] : memref<128x1xf32, #tpu.memory_space<vmem>>, vector<128x1xf32>
    %cst_78 = arith.constant dense<0.000000e+00> : vector<2x1xf32>
    %341 = tpu.matmul %324, %340, %cst_78 {dimension_numbers = #tpu.dot_dimension_numbers<[1], [0], [0], [1], [0, 0, 1, 1], [], []>} : vector<2x128xf32>, vector<128x1xf32>, vector<2x1xf32> -> vector<2x1xf32>
    %c0_79 = arith.constant 0 : index
    %c0_80 = arith.constant 0 : index
    %342 = vector.load %arg16[%c0_79, %c0_80] : memref<1x1xf32, #tpu.memory_space<vmem>>, vector<1x1xf32>
    %343 = vector.broadcast %342 : vector<1x1xf32> to vector<2x1xf32>
    %344 = arith.addf %341, %343 : vector<2x1xf32>
    %345 = arith.negf %344 : vector<2x1xf32>
    %346 = math.exp %345 : vector<2x1xf32>
    %cst_81 = arith.constant 1.000000e+00 : f32
    %347 = vector.broadcast %cst_81 : f32 to vector<2x1xf32>
    %348 = arith.addf %347, %346 : vector<2x1xf32>
    %349 = arith.divf %347, %348 : vector<2x1xf32>
    %c0_82 = arith.constant 0 : index
    %c0_83 = arith.constant 0 : index
    %350 = vector.load %arg18[%c0_82, %c0_83] : memref<2x1xf32, #tpu.memory_space<vmem>>, vector<2x1xf32>
    tpu.vector_store %arg18[%c0_82, %c0_83], %349 {strides = array<i32>} : memref<2x1xf32, #tpu.memory_space<vmem>>, vector<2x1xf32>,
    return
  }
}

</mosaic_0001>

<bundles_post_ra>
// kernel: tpu_custom_call.1
= control target key start
LH: loop header
LB: loop body
LE: loop exit
PB: predicated region body
PF: predicated region fallthrough
CT: control target
= control target key end

     0   :  { %s7393_s0 = inlined_call_operand.vmem [shape: f32[16,120], index: 0, kind: input, shape index: {}]   ;;  %s7394_s1 = inlined_call_operand.vmem [shape: s32[2,1], index: 1, kind: input, shape index: {}]   ;;  %s7395_s2 = inlined_call_operand.vmem [shape: f32[120,320], index: 2, kind: input, shape index: {}]   ;;  %s7396_s3 = inlined_call_operand.vmem [shape: f32[1,320], index: 3, kind: input, shape index: {}]   ;;  %s7397_s4 = inlined_call_operand.vmem [shape: f32[320,320], index: 4, kind: input, shape index: {}]   ;;  %s7398_s5 = inlined_call_operand.vmem [shape: f32[1,320], index: 5, kind: input, shape index: {}]   ;;  %s7399_s6 = inlined_call_operand.hbm [shape: f32[320,320], index: 6, kind: input, shape index: {}]   ;;  %s7400_s7 = inlined_call_operand.vmem [shape: f32[1,320], index: 7, kind: input, shape index: {}]   ;;  %s7401_s8 = inlined_call_operand.hbm [shape: f32[320,320], index: 8, kind: input, shape index: {}]   ;;  %s7402_s9 = inlined_call_operand.vmem [shape: f32[1,320], index: 9, kind: input, shape index: {}]   ;;  %s7403_s10 = inlined_call_operand.hbm [shape: f32[320,512], index: 10, kind: input, shape index: {}]   ;;  %s7404_s11 = inlined_call_operand.hbm [shape: f32[128,512], index: 11, kind: input, shape index: {}]   ;;  %s7405_s12 = inlined_call_operand.vmem [shape: f32[1,512], index: 12, kind: input, shape index: {}]   ;;  %s7406_s13 = inlined_call_operand.vmem [shape: f32[128,27], index: 13, kind: input, shape index: {}]   ;;  %s7407_s14 = inlined_call_operand.hbm [shape: f32[1,27], index: 14, kind: input, shape index: {}]   ;;  %s7408_s15 = inlined_call_operand.vmem [shape: f32[128,1], index: 15, kind: input, shape index: {}]   ;;  %s7409_s16 = inlined_call_operand.<no memory space> [shape: f32[1,1], index: 16, kind: input, shape index: {}]   ;;  %s7410_s17 = inlined_call_operand.hbm [shape: f32[2,27], index: 17, kind: output, shape index: {0}]   ;;  %s7411_s18 = inlined_call_operand.vmem [shape: f32[2,1], index: 18, kind: output, shape index: {1}]  }
   0x1   :  { %7414 = sst [smem:[#allocation17_spill]] %s7393_s0  ;;  %v24_v0 = vstv %s7409_s16 }
   0x2   :  { %7415 = sst [smem:[#allocation18_spill]] %s7394_s1  ;;  %25 = vst [vmem:[#allocation2] sm:$0x1] %v24_v0 }
   0x3   :  { %7416 = sst [smem:[#allocation19_spill]] %s7395_s2 }
   0x4   :  { %26 = vsyncpa [#allocation4], 0 }
   0x5   :  { %27 = vsyncpa [#allocation7], 0 }
   0x6   :  { %28 = vsyncpa [#allocation10], 0 }
   0x7   :  { %29 = vsyncpa [#allocation5], 0  ;;  %s5959_s29 = smov [#allocation6]   ;;  %s5819_s1 = scalar_lea.hbm %s7401_s8, 15360 }
   0x8   :  { %s61_s30 = sshll.u32 %s5959_s29, 4  ;;  %p5820_p0 = scmp.ne.s32.totalorder %s7401_s8, %s5819_s1  ;;  %s62_s30 = int_to_ptr.vmem [resolvable:$true] %s61_s30 }
   0x9   :  { %p5823_p1 = scmp.lt.u32.totalorder %s5819_s1, %s7401_s8 }
   0xb   :  { %p5825_p2 = pnand %p5823_p1, %p5820_p0 }
   0xd   :  { %5828 = shalt.err (!%p5825_p2)
}
   0xe   :  { %s5829_s16 = scalar_lea.vmem %s62_s30, 15360  ;;  %p5834_p4 = scmp.lt.s32.totalorder %s62_s30, %s62_s30 }
   0xf   :  { %p5830_p3 = scmp.ne.s32.totalorder %s62_s30, %s5829_s16  ;;  %p5835_p5 = scmp.lt.s32.totalorder %s5829_s16, %s5829_s16 }
  0x11   :  { %p5836_p6 = por %p5835_p5, %p5834_p4 }
  0x13   :  { %p5837_p7 = pnand %p5836_p6, %p5830_p3 }
  0x15   :  { %5840 = shalt.err (!%p5837_p7)
}
  0x16   :  { %s5960_s23 = smov 384   ;;  %s5961_s24 = smov 24  }
  0x17   :  { %67 = dma.hbm_to_vmem [thread:$0]  %s7401_s8, 15360, %s62_s30, [#allocation7], %s5960_s23, %s5960_s23, %s5961_s24  }
  0x18   :  { %s5962_s27 = smov [#allocation9]   ;;  %s5963_s29 = smov [#allocation3]  }
  0x19   :  { %s87_s28 = sshll.u32 %s5962_s27, 4  ;;  %s47_s0 = sshll.u32 %s5963_s29, 4  ;;  %s88_s28 = int_to_ptr.vmem [resolvable:$true] %s87_s28  ;;  %s48_s0 = int_to_ptr.vmem [resolvable:$true] %s47_s0 }
  0x1a   :  { %s5841_s20 = scalar_lea.hbm %s7404_s11, 8192 }
  0x1b   :  { %p5842_p8 = scmp.ne.s32.totalorder %s7404_s11, %s5841_s20  ;;  %p5845_p9 = scmp.lt.u32.totalorder %s5841_s20, %s7404_s11 }
  0x1d   :  { %p5847_p10 = pnand %p5845_p9, %p5842_p8 }
  0x1f   :  { %5850 = shalt.err (!%p5847_p10)
}
  0x20   :  { %s5851_s8 = scalar_lea.vmem %s88_s28, 8192  ;;  %p5856_p12 = scmp.lt.s32.totalorder %s88_s28, %s88_s28 }
  0x21   :  { %p5852_p11 = scmp.ne.s32.totalorder %s88_s28, %s5851_s8  ;;  %p5857_p13 = scmp.lt.s32.totalorder %s5851_s8, %s5851_s8 }
  0x23   :  { %p5858_p0 = por %p5857_p13, %p5856_p12 }
  0x25   :  { %p5859_p1 = pnand %p5858_p0, %p5852_p11 }
  0x27   :  { %5862 = shalt.err (!%p5859_p1)
}
  0x28   :  { %s5964_s30 = smov 512   ;;  %s5965_s25 = smov 32  }
  0x29   :  { %93 = dma.hbm_to_vmem [thread:$0]  %s7404_s11, 8192, %s88_s28, [#allocation10], %s5964_s30, %s5964_s30, %s5965_s25  }
  0x2a   :  { %s5863_s1 = scalar_lea.hbm %s7399_s6, 15360 }
  0x2b   :  { %p5864_p2 = scmp.ne.s32.totalorder %s7399_s6, %s5863_s1  ;;  %p5867_p3 = scmp.lt.u32.totalorder %s5863_s1, %s7399_s6 }
  0x2d   :  { %p5869_p4 = pnand %p5867_p3, %p5864_p2 }
  0x2f   :  { %5872 = shalt.err (!%p5869_p4)
}
  0x30   :  { %s5873_s16 = scalar_lea.vmem %s48_s0, 15360  ;;  %p5878_p6 = scmp.lt.s32.totalorder %s48_s0, %s48_s0 }
  0x31   :  { %p5874_p5 = scmp.ne.s32.totalorder %s48_s0, %s5873_s16  ;;  %p5879_p7 = scmp.lt.s32.totalorder %s5873_s16, %s5873_s16 }
  0x33   :  { %p5880_p8 = por %p5879_p7, %p5878_p6 }
  0x35   :  { %p5881_p9 = pnand %p5880_p8, %p5874_p5 }
  0x37   :  { %5884 = shalt.err (!%p5881_p9)
}
  0x38   :  { %53 = dma.hbm_to_vmem [thread:$0]  %s7399_s6, 15360, %s48_s0, [#allocation4], %s5960_s23, %s5960_s23, %s5961_s24  }
  0x39   :  { %s5966_s8 = smov [#allocation8]   ;;  %s5967_s27 = smov [#allocation11]  }
  0x3a   :  { %s75_s26 = sshll.u32 %s5966_s8, 4  ;;  %s104_s29 = sshll.u32 %s5967_s27, 4  ;;  %s76_s26 = int_to_ptr.vmem [resolvable:$true] %s75_s26  ;;  %s105_s29 = int_to_ptr.vmem [resolvable:$true] %s104_s29 }
  0x3b   :  { %s5885_s20 = scalar_lea.hbm %s7403_s10, 20480 }
  0x3c   :  { %p5886_p10 = scmp.ne.s32.totalorder %s7403_s10, %s5885_s20  ;;  %p5889_p11 = scmp.lt.u32.totalorder %s5885_s20, %s7403_s10 }
  0x3e   :  { %p5891_p12 = pnand %p5889_p11, %p5886_p10 }
  0x40   :  { %5894 = shalt.err (!%p5891_p12)
}
  0x41   :  { %s5895_s6 = scalar_lea.vmem %s76_s26, 20480  ;;  %p5900_p0 = scmp.lt.s32.totalorder %s76_s26, %s76_s26 }
  0x42   :  { %p5896_p13 = scmp.ne.s32.totalorder %s76_s26, %s5895_s6  ;;  %p5901_p1 = scmp.lt.s32.totalorder %s5895_s6, %s5895_s6 }
  0x44   :  { %p5902_p2 = por %p5901_p1, %p5900_p0 }
  0x46   :  { %p5903_p3 = pnand %p5902_p2, %p5896_p13 }
  0x48   :  { %5906 = shalt.err (!%p5903_p3)
}
  0x49   :  { %81 = dma.hbm_to_vmem [thread:$0]  %s7403_s10, 20480, %s76_s26, [#allocation7], %s5964_s30, %s5964_s30, %s5965_s25  }
  0x4a   :  { %s5907_s28 = scalar_lea.hbm %s7407_s14, 16 }
  0x4b   :  { %p5908_p4 = scmp.ne.s32.totalorder %s7407_s14, %s5907_s28  ;;  %p5911_p5 = scmp.lt.u32.totalorder %s5907_s28, %s7407_s14 }
  0x4d   :  { %p5913_p6 = pnand %p5911_p5, %p5908_p4 }
  0x4f   :  { %5916 = shalt.err (!%p5913_p6)
}
  0x50   :  { %s5917_s20 = scalar_lea.vmem %s105_s29, 16  ;;  %s5921_s21 = scalar_lea.vmem %s105_s29, 32 }
  0x51   :  { %p5918_p7 = scmp.ne.s32.totalorder %s105_s29, %s5917_s20  ;;  %p5922_p8 = scmp.lt.s32.totalorder %s105_s29, %s105_s29 }
  0x52   :  { %p5923_p9 = scmp.lt.s32.totalorder %s5921_s21, %s5917_s20 }
  0x54   :  { %p5924_p10 = por %p5923_p9, %p5922_p8 }
  0x56   :  { %p5925_p11 = pnand %p5924_p10, %p5918_p7 }
  0x58   :  { %5928 = shalt.err (!%p5925_p11)
}
  0x59   :  { %107 = dma.hbm_to_vmem [thread:$0]  %s7407_s14, 16, %s105_s29, [#allocation10]  }
  0x5a   :  { %5951 = dma.done.wait [#allocation4], 15360  }
  0x5b   :  { %5952 = vsyncadd [#allocation4], 4294951936 }
  0x5c   :  { %5953 = dma.done.wait [#allocation7], 35840  }
  0x5d   :  { %5954 = vsyncadd [#allocation7], 4294931456 }
  0x5e   :  { %5955 = dma.done.wait [#allocation10], 8208  }
  0x5f   :  { %5956 = vsyncadd [#allocation10], 4294959088  ;;  %v5968_v1 = vmov 0.0   ;;  %s7417_s22 = sld [smem:[#allocation19_spill]]  ;;  %vm191_vm0 = vcmask 982016   ;;  %s7418_s11 = sld [smem:[#allocation17_spill]] }
  0x60   :  { %262 = vmatprep.mubr.f32.mxu0 %v5968_v1  ;;  %vm493_vm1 = vcmask 523264   ;;  %s7419_s14 = sld [smem:[#allocation18_spill]] }
  0x65   :  { %v130_v2 = vld [vmem:[%s7417_s22 + $0x8] sm:$0xff]  ;;  %v133_v3 = vld [vmem:[%s7417_s22 + $0x20] sm:$0xff]  ;;  %v131_v4 = vld [vmem:[%s7417_s22 + $0x10] sm:$0xff] }
  0x66   :  { %v4467_v5 = vpack.c.bf16 %v133_v3, %v130_v2  ;;  %v134_v6 = vld [vmem:[%s7417_s22 + $0x28] sm:$0xff]  ;;  %v129_v7 = vld [vmem:[%s7417_s22] sm:$0xff]  ;;  %v132_v8 = vld [vmem:[%s7417_s22 + $0x18] sm:$0xff] }
  0x67   :  { %v4495_v9 = vpack.c.bf16 %v134_v6, %v131_v4  ;;  %v4469_v10 = vpack.c.bf16 %v132_v8, %v129_v7  ;;  %v136_v11 = vld [vmem:[%s7417_s22 + $0x38] sm:$0xff]  ;;  %v139_v12 = vld [vmem:[%s7417_s22 + $0x50] sm:$0xff]  ;;  %v137_v13 = vld [vmem:[%s7417_s22 + $0x40] sm:$0xff] }
  0x68   :  { %4468 = vmatprep.subr.bf16.mxu0 %v4467_v5  ;;  %v4471_v14 = vpack.c.bf16 %v139_v12, %v136_v11  ;;  %v140_v15 = vld [vmem:[%s7417_s22 + $0x58] sm:$0xff]  ;;  %v135_v16 = vld [vmem:[%s7417_s22 + $0x30] sm:$0xff]  ;;  %v138_v17 = vld [vmem:[%s7417_s22 + $0x48] sm:$0xff] }
  0x69   :  { %4496 = vmatprep.subr.bf16.mxu1 %v4495_v9  ;;  %4470 = vmatpush1.bf16.msra.mxu0 %v4469_v10  ;;  %v4499_v18 = vpack.c.bf16 %v140_v15, %v137_v13  ;;  %v4473_v19 = vpack.c.bf16 %v138_v17, %v135_v16  ;;  %v142_v20 = vld [vmem:[%s7417_s22 + $0x68] sm:$0xff]  ;;  %v145_v21 = vld [vmem:[%s7417_s22 + $0x80] sm:$0xff]  ;;  %v143_v22 = vld [vmem:[%s7417_s22 + $0x70] sm:$0xff] }
  0x6a   :  { %4498 = vmatpush3.bf16.msra.mxu1 %v4495_v9  ;;  %4472 = vmatprep.subr.bf16.mxu0 %v4471_v14  ;;  %v4475_v23 = vpack.c.bf16 %v145_v21, %v142_v20  ;;  %v146_v24 = vld [vmem:[%s7417_s22 + $0x88] sm:$0xff]  ;;  %v141_v25 = vld [vmem:[%s7417_s22 + $0x60] sm:$0xff]  ;;  %v144_v26 = vld [vmem:[%s7417_s22 + $0x78] sm:$0xff] }
  0x6b   :  { %4500 = vmatprep.subr.bf16.mxu1 %v4499_v18  ;;  %v4503_v27 = vpack.c.bf16 %v146_v24, %v143_v22  ;;  %v148_v28 = vld [vmem:[%s7417_s22 + $0x98] sm:$0xff]  ;;  %v151_v29 = vld [vmem:[%s7417_s22 + $0xb0] sm:$0xff]  ;;  %v149_v30 = vld [vmem:[%s7417_s22 + $0xa0] sm:$0xff]  ;;  %v4477_v32 = vpack.c.bf16 %v144_v26, %v141_v25 }
  0x6c   :  { %v152_v31 = vld [vmem:[%s7417_s22 + $0xb8] sm:$0xff]  ;;  %v4479_v33 = vpack.c.bf16 %v151_v29, %v148_v28  ;;  %v147_v34 = vld [vmem:[%s7417_s22 + $0x90] sm:$0xff]  ;;  %v150_v35 = vld [vmem:[%s7417_s22 + $0xa8] sm:$0xff] }
  0x6d   :  { %4474 = vmatpush1.bf16.msra.mxu0 %v4473_v19  ;;  %v4507_v36 = vpack.c.bf16 %v152_v31, %v149_v30  ;;  %v154_v37 = vld [vmem:[%s7417_s22 + $0xc8] sm:$0xff]  ;;  %v157_v38 = vld [vmem:[%s7417_s22 + $0xe0] sm:$0xff]  ;;  %v155_v39 = vld [vmem:[%s7417_s22 + $0xd0] sm:$0xff]  ;;  %v4481_v41 = vpack.c.bf16 %v150_v35, %v147_v34 }
  0x6e   :  { %4502 = vmatpush3.bf16.msra.mxu1 %v4499_v18  ;;  %4476 = vmatprep.subr.bf16.mxu0 %v4475_v23  ;;  %v158_v40 = vld [vmem:[%s7417_s22 + $0xe8] sm:$0xff]  ;;  %v4483_v42 = vpack.c.bf16 %v157_v38, %v154_v37  ;;  %v153_v43 = vld [vmem:[%s7417_s22 + $0xc0] sm:$0xff]  ;;  %v156_v44 = vld [vmem:[%s7417_s22 + $0xd8] sm:$0xff] }
  0x6f   :  { %4504 = vmatprep.subr.bf16.mxu1 %v4503_v27  ;;  %v4511_v45 = vpack.c.bf16 %v158_v40, %v155_v39  ;;  %v160_v46 = vld [vmem:[%s7417_s22 + $0xf8] sm:$0xff]  ;;  %v163_v47 = vld [vmem:[%s7417_s22 + $0x110] sm:$0xff]  ;;  %v161_v48 = vld [vmem:[%s7417_s22 + $0x100] sm:$0xff]  ;;  %v4485_v51 = vpack.c.bf16 %v156_v44, %v153_v43 }
  0x70   :  { %v164_v49 = vld [vmem:[%s7417_s22 + $0x118] sm:$0xff]  ;;  %v127_v50 = vld [vmem:[%s7418_s11] sm:$0xff]  ;;  %v4487_v52 = vpack.c.bf16 %v163_v47, %v160_v46  ;;  %v159_v53 = vld [vmem:[%s7417_s22 + $0xf0] sm:$0xff] }
  0x71   :  { %4478 = vmatpush1.bf16.msra.mxu0 %v4477_v32  ;;  %4337 = vmatprep.mubr.msk.f32.mxu1 %vm191_vm0, %v127_v50  ;;  %v162_v54 = vld [vmem:[%s7417_s22 + $0x108] sm:$0xff]  ;;  %v4515_v55 = vpack.c.bf16 %v164_v49, %v161_v48  ;;  %v169_v57 = vld [vmem:[%s7417_s22 + $0x140] sm:$0xff]  ;;  %v167_v58 = vld [vmem:[%s7417_s22 + $0x130] sm:$0xff] }
  0x72   :  { %4506 = vmatpush3.bf16.msra.mxu1 %v4503_v27  ;;  %4480 = vmatprep.subr.bf16.mxu0 %v4479_v33  ;;  %v166_v56 = vld [vmem:[%s7417_s22 + $0x128] sm:$0xff]  ;;  %v4489_v60 = vpack.c.bf16 %v162_v54, %v159_v53  ;;  %v165_v62 = vld [vmem:[%s7417_s22 + $0x120] sm:$0xff]  ;;  %v168_v63 = vld [vmem:[%s7417_s22 + $0x138] sm:$0xff] }
  0x73   :  { %4508 = vmatprep.subr.bf16.mxu1 %v4507_v36  ;;  %v170_v59 = vld [vmem:[%s7417_s22 + $0x148] sm:$0xff]  ;;  %v4491_v61 = vpack.c.bf16 %v169_v57, %v166_v56  ;;  %v4493_v2 = vpack.c.bf16 %v168_v63, %v165_v62  ;;  %v172_v3 = vld [vmem:[%s7417_s22 + $0x158] sm:$0xff]  ;;  %v173_v4 = vld [vmem:[%s7417_s22 + $0x160] sm:$0xff] }
  0x74   :  { %v4519_v0 = vpack.c.bf16 %v170_v59, %v167_v58  ;;  %v357_v5 = vld [vmem:[%s7397_s4 + $0x8] sm:$0xff]  ;;  %v360_v6 = vld [vmem:[%s7397_s4 + $0x20] sm:$0xff]  ;;  %v171_v7 = vld [vmem:[%s7417_s22 + $0x150] sm:$0xff] }
  0x75   :  { %4482 = vmatpush1.bf16.msra.mxu0 %v4481_v41  ;;  %v356_v8 = vld [vmem:[%s7397_s4] sm:$0xff]  ;;  %v359_v9 = vld [vmem:[%s7397_s4 + $0x18] sm:$0xff]  ;;  %v366_v11 = vld [vmem:[%s7397_s4 + $0x50] sm:$0xff]  ;;  %v4523_v13 = vpack.c.bf16 %v360_v6, %v357_v5 }
  0x76   :  { %4510 = vmatpush3.bf16.msra.mxu1 %v4507_v36  ;;  %4484 = vmatprep.subr.bf16.mxu0 %v4483_v42  ;;  %v363_v10 = vld [vmem:[%s7397_s4 + $0x38] sm:$0xff]  ;;  %v128_v12 = vld [vmem:[%s7418_s11 + $0x8] sm:$0xff]  ;;  %v4525_v15 = vpack.c.bf16 %v359_v9, %v356_v8  ;;  %v456_v16 = vld [vmem:[%s7397_s4 + $0x320] sm:$0xff] }
  0x77   :  { %4512 = vmatprep.subr.bf16.mxu1 %v4511_v45  ;;  %v453_v14 = vld [vmem:[%s7397_s4 + $0x308] sm:$0xff]  ;;  %v452_v17 = vld [vmem:[%s7397_s4 + $0x300] sm:$0xff]  ;;  %v455_v18 = vld [vmem:[%s7397_s4 + $0x318] sm:$0xff]  ;;  %v4527_v19 = vpack.c.bf16 %v366_v11, %v363_v10 }
  0x78   :  { %v362_v20 = vld [vmem:[%s7397_s4 + $0x30] sm:$0xff]  ;;  %v365_v21 = vld [vmem:[%s7397_s4 + $0x48] sm:$0xff]  ;;  %v4587_v23 = vpack.c.bf16 %v456_v16, %v453_v14  ;;  %v4589_v24 = vpack.c.bf16 %v455_v18, %v452_v17  ;;  %v372_v25 = vld [vmem:[%s7397_s4 + $0x80] sm:$0xff] }
  0x79   :  { %4486 = vmatpush1.bf16.msra.mxu0 %v4485_v51  ;;  %v369_v22 = vld [vmem:[%s7397_s4 + $0x68] sm:$0xff]  ;;  %v459_v26 = vld [vmem:[%s7397_s4 + $0x338] sm:$0xff]  ;;  %v462_v27 = vld [vmem:[%s7397_s4 + $0x350] sm:$0xff]  ;;  %v4529_v31 = vpack.c.bf16 %v365_v21, %v362_v20 }
  0x7a   :  { %4514 = vmatpush3.bf16.msra.mxu1 %v4511_v45  ;;  %4488 = vmatprep.subr.bf16.mxu0 %v4487_v52  ;;  %v4591_v28 = vpack.c.bf16 %v462_v27, %v459_v26  ;;  %v458_v29 = vld [vmem:[%s7397_s4 + $0x330] sm:$0xff]  ;;  %v461_v30 = vld [vmem:[%s7397_s4 + $0x348] sm:$0xff]  ;;  %v368_v32 = vld [vmem:[%s7397_s4 + $0x60] sm:$0xff]  ;;  %v4531_v35 = vpack.c.bf16 %v372_v25, %v369_v22 }
  0x7b   :  { %4516 = vmatprep.subr.bf16.mxu1 %v4515_v55  ;;  %v371_v33 = vld [vmem:[%s7397_s4 + $0x78] sm:$0xff]  ;;  %v4593_v34 = vpack.c.bf16 %v461_v30, %v458_v29  ;;  %v465_v36 = vld [vmem:[%s7397_s4 + $0x368] sm:$0xff]  ;;  %v468_v37 = vld [vmem:[%s7397_s4 + $0x380] sm:$0xff] }
  0x7c   :  { %v464_v38 = vld [vmem:[%s7397_s4 + $0x360] sm:$0xff]  ;;  %v375_v39 = vld [vmem:[%s7397_s4 + $0x98] sm:$0xff]  ;;  %v378_v40 = vld [vmem:[%s7397_s4 + $0xb0] sm:$0xff]  ;;  %v4595_v41 = vpack.c.bf16 %v468_v37, %v465_v36  ;;  %v4533_v43 = vpack.c.bf16 %v371_v33, %v368_v32 }
  0x7d   :  { %4490 = vmatpush1.bf16.msra.mxu0 %v4489_v60  ;;  %v467_v42 = vld [vmem:[%s7397_s4 + $0x378] sm:$0xff]  ;;  %v4535_v45 = vpack.c.bf16 %v378_v40, %v375_v39  ;;  %v374_v46 = vld [vmem:[%s7397_s4 + $0x90] sm:$0xff]  ;;  %v377_v47 = vld [vmem:[%s7397_s4 + $0xa8] sm:$0xff] }
  0x7e   :  { %4518 = vmatpush3.bf16.msra.mxu1 %v4515_v55  ;;  %4492 = vmatprep.subr.bf16.mxu0 %v4491_v61  ;;  %v4597_v44 = vpack.c.bf16 %v467_v42, %v464_v38  ;;  %v381_v48 = vld [vmem:[%s7397_s4 + $0xc8] sm:$0xff]  ;;  %v384_v49 = vld [vmem:[%s7397_s4 + $0xe0] sm:$0xff]  ;;  %v383_v53 = vld [vmem:[%s7397_s4 + $0xd8] sm:$0xff] }
  0x7f   :  { %4520 = vmatprep.subr.bf16.mxu1 %v4519_v0  ;;  %v4539_v51 = vpack.c.bf16 %v384_v49, %v381_v48  ;;  %v380_v52 = vld [vmem:[%s7397_s4 + $0xc0] sm:$0xff]  ;;  %v387_v54 = vld [vmem:[%s7397_s4 + $0xf8] sm:$0xff]  ;;  %v390_v55 = vld [vmem:[%s7397_s4 + $0x110] sm:$0xff] }
  0x80   :  { %v4541_v56 = vpack.c.bf16 %v383_v53, %v380_v52  ;;  %v4543_v57 = vpack.c.bf16 %v390_v55, %v387_v54  ;;  %v386_v58 = vld [vmem:[%s7397_s4 + $0xf0] sm:$0xff]  ;;  %v389_v59 = vld [vmem:[%s7397_s4 + $0x108] sm:$0xff]  ;;  %v396_v61 = vld [vmem:[%s7397_s4 + $0x140] sm:$0xff] }
  0x81   :  { %4494 = vmatpush1.bf16.msra.mxu0 %v4493_v2  ;;  %v393_v60 = vld [vmem:[%s7397_s4 + $0x128] sm:$0xff]  ;;  %v4545_v62 = vpack.c.bf16 %v389_v59, %v386_v58  ;;  %v395_v2 = vld [vmem:[%s7397_s4 + $0x138] sm:$0xff]  ;;  %v408_v10 = vld [vmem:[%s7397_s4 + $0x1a0] sm:$0xff] }
  0x82   :  { %4522 = vmatpush3.bf16.msra.mxu1 %v4519_v0  ;;  %226 = vmatprep.subr.mxu0 %v172_v3  ;;  %v4547_v63 = vpack.c.bf16 %v396_v61, %v393_v60  ;;  %v392_v0 = vld [vmem:[%s7397_s4 + $0x120] sm:$0xff]  ;;  %v399_v3 = vld [vmem:[%s7397_s4 + $0x158] sm:$0xff]  ;;  %v401_v8 = vld [vmem:[%s7397_s4 + $0x168] sm:$0xff] }
  0x83   :  { %4335 = vmatprep.subr.mxu1 %v173_v4  ;;  %v4549_v5 = vpack.c.bf16 %v395_v2, %v392_v0  ;;  %v405_v9 = vld [vmem:[%s7397_s4 + $0x188] sm:$0xff]  ;;  %v407_v14 = vld [vmem:[%s7397_s4 + $0x198] sm:$0xff]  ;;  %v414_v16 = vld [vmem:[%s7397_s4 + $0x1d0] sm:$0xff] }
  0x84   :  { %v413_v20 = vld [vmem:[%s7397_s4 + $0x1c8] sm:$0xff]  ;;  %v420_v22 = vld [vmem:[%s7397_s4 + $0x200] sm:$0xff]  ;;  %v419_v26 = vld [vmem:[%s7397_s4 + $0x1f8] sm:$0xff] }
  0x85   :  { %227 = vmatpush1.msra.mxu0 %v171_v7  ;;  %v398_v7 = vld [vmem:[%s7397_s4 + $0x150] sm:$0xff]  ;;  %v417_v21 = vld [vmem:[%s7397_s4 + $0x1e8] sm:$0xff]  ;;  %v416_v25 = vld [vmem:[%s7397_s4 + $0x1e0] sm:$0xff] }
  0x86   :  { %4336 = vmatpush3.msra.mxu1 %v173_v4  ;;  %4063 = vmatmul.mubr.msk.f32.vlgmr.msra.gmra.mrb[0].mxu0 %vm191_vm0, %v127_v50  ;;  %v4537_v50 = vpack.c.bf16 %v377_v47, %v374_v46  ;;  %v402_v4 = vld [vmem:[%s7397_s4 + $0x170] sm:$0xff]  ;;  %v4553_v11 = vpack.c.bf16 %v401_v8, %v398_v7  ;;  %v423_v27 = vld [vmem:[%s7397_s4 + $0x218] sm:$0xff]  ;;  %v4565_v29 = vpack.c.bf16 %v419_v26, %v416_v25  ;;  %v425_v32 = vld [vmem:[%s7397_s4 + $0x228] sm:$0xff]  ;;  %v176_v7 = vlaneseq }
  0x87   :  { %4338 = vmatmul.mubr.msk.f32.vlgmr.msra.gmra.mrb[0].mxu1 %vm191_vm0, %v128_v12  ;;  %268 = vmatprep.mubr.f32.mxu0 %v5968_v1  ;;  %v4551_v6 = vpack.c.bf16 %v402_v4, %v399_v3  ;;  %v429_v33 = vld [vmem:[%s7397_s4 + $0x248] sm:$0xff]  ;;  %v428_v37 = vld [vmem:[%s7397_s4 + $0x240] sm:$0xff]  ;;  %v431_v38 = vld [vmem:[%s7397_s4 + $0x258] sm:$0xff] }
  0x88   :  { %4524 = vmatprep.subr.bf16.mxu0 %v4523_v13  ;;  %4588 = vmatprep.subr.bf16.mxu1 %v4587_v23  ;;  %v404_v13 = vld [vmem:[%s7397_s4 + $0x180] sm:$0xff]  ;;  %v435_v39 = vld [vmem:[%s7397_s4 + $0x278] sm:$0xff]  ;;  %v438_v40 = vld [vmem:[%s7397_s4 + $0x290] sm:$0xff]  ;;  %v6537_v8 = vshrl.u32 %v176_v7, 7 }
  0x89   :  { %4526 = vmatpush1.bf16.msra.mxu0 %v4525_v15  ;;  %4590 = vmatpush1.bf16.msra.mxu1 %v4589_v24  ;;  %v411_v15 = vld [vmem:[%s7397_s4 + $0x1b8] sm:$0xff]  ;;  %v4557_v17 = vpack.c.bf16 %v407_v14, %v404_v13  ;;  %v4563_v24 = vpack.c.bf16 %v420_v22, %v417_v21  ;;  %v4575_v42 = vpack.c.bf16 %v438_v40, %v435_v39  ;;  %v444_v46 = vld [vmem:[%s7397_s4 + $0x2c0] sm:$0xff]  ;;  %v474_v53 = vld [vmem:[%s7397_s4 + $0x3b0] sm:$0xff] }
  0x8a   :  { %4064 = vmatmul.mubr.msk.f32.gmra.mrb[2].mxu0 %vm191_vm0, %v128_v12  ;;  %4528 = vmatprep.subr.bf16.mxu0 %v4527_v19  ;;  %v4555_v12 = vpack.c.bf16 %v408_v10, %v405_v9  ;;  %v4559_v18 = vpack.c.bf16 %v414_v16, %v411_v15  ;;  %v410_v19 = vld [vmem:[%s7397_s4 + $0x1b0] sm:$0xff]  ;;  %v440_v49 = vld [vmem:[%s7397_s4 + $0x2a0] sm:$0xff]  ;;  %v471_v52 = vld [vmem:[%s7397_s4 + $0x398] sm:$0xff]  ;;  %v6540_v9 = vsub.s32 0, %v6537_v8  ;;  %v6543_v10 = vsub.s32 1, %v6537_v8 }
  0x8b   :  { %4592 = vmatprep.subr.bf16.mxu1 %v4591_v28  ;;  %641 = vmatprep.mubr.f32.mxu1 %v5968_v1  ;;  %v4561_v23 = vpack.c.bf16 %v413_v20, %v410_v19  ;;  %v426_v28 = vld [vmem:[%s7397_s4 + $0x230] sm:$0xff]  ;;  %v4599_v54 = vpack.c.bf16 %v474_v53, %v471_v52  ;;  %v447_v58 = vld [vmem:[%s7397_s4 + $0x2d8] sm:$0xff]  ;;  %v409_v2 = vld [vmem:[%s7397_s4 + $0x1a8] sm:$0xff] }
  0x8c   :  { %v4567_v30 = vpack.c.bf16 %v426_v28, %v423_v27  ;;  %v470_v55 = vld [vmem:[%s7397_s4 + $0x390] sm:$0xff]  ;;  %v361_v21 = vld [vmem:[%s7397_s4 + $0x28] sm:$0xff]  ;;  %v412_v22 = vld [vmem:[%s7397_s4 + $0x1c0] sm:$0xff] }
  0x8d   :  { %4530 = vmatpush1.bf16.msra.mxu0 %v4529_v31  ;;  %4594 = vmatpush1.bf16.msra.mxu1 %v4593_v34  ;;  %v422_v31 = vld [vmem:[%s7397_s4 + $0x210] sm:$0xff]  ;;  %v432_v34 = vld [vmem:[%s7397_s4 + $0x260] sm:$0xff] }
  0x8e   :  { %4532 = vmatprep.subr.bf16.mxu0 %v4531_v35  ;;  %4596 = vmatprep.subr.bf16.mxu1 %v4595_v41  ;;  %v4569_v35 = vpack.c.bf16 %v425_v32, %v422_v31  ;;  %v4571_v36 = vpack.c.bf16 %v432_v34, %v429_v33  ;;  %v4573_v41 = vpack.c.bf16 %v431_v38, %v428_v37  ;;  %v450_v59 = vld [vmem:[%s7397_s4 + $0x2f0] sm:$0xff]  ;;  %v869_v31 = vld [vmem:[#allocation3 + $0x1d8] sm:$0xff] }
  0x8f   :  { %v4583_v60 = vpack.c.bf16 %v450_v59, %v447_v58  ;;  %v446_v61 = vld [vmem:[%s7397_s4 + $0x2d0] sm:$0xff]  ;;  %v364_v40 = vld [vmem:[%s7397_s4 + $0x40] sm:$0xff] }
  0x90   :  { %v406_v0 = vld [vmem:[%s7397_s4 + $0x190] sm:$0xff]  ;;  %v424_v58 = vld [vmem:[%s7397_s4 + $0x220] sm:$0xff] }
  0x91   :  { %4534 = vmatpush1.bf16.msra.mxu0 %v4533_v43  ;;  %4598 = vmatpush1.bf16.msra.mxu1 %v4597_v44  ;;  %v434_v43 = vld [vmem:[%s7397_s4 + $0x270] sm:$0xff]  ;;  %v437_v44 = vld [vmem:[%s7397_s4 + $0x288] sm:$0xff]  ;;  %v4603_v3 = vpack.c.bf16 %v409_v2, %v406_v0  ;;  %v881_v2 = vld [vmem:[#allocation3 + $0x238] sm:$0xff] }
  0x92   :  { %4536 = vmatprep.subr.bf16.mxu0 %v4535_v45  ;;  %v441_v45 = vld [vmem:[%s7397_s4 + $0x2a8] sm:$0xff]  ;;  %v4577_v47 = vpack.c.bf16 %v437_v44, %v434_v43  ;;  %4600 = vmatprep.subr.bf16.mxu1 %v4599_v54  ;;  %v860_v4 = vld [vmem:[#allocation3 + $0x190] sm:$0xff] }
  0x93   :  { %v4579_v48 = vpack.c.bf16 %v444_v46, %v441_v45  ;;  %v812_v26 = vld [vmem:[#allocation3 + $0x10] sm:$0xff]  ;;  %v815_v27 = vld [vmem:[#allocation3 + $0x28] sm:$0xff]  ;;  %v878_v0 = vld [vmem:[#allocation3 + $0x220] sm:$0xff] }
  0x94   :  { %v4733_v43 = vpack.c.bf16 %v815_v27, %v812_v26  ;;  %v421_v45 = vld [vmem:[%s7397_s4 + $0x208] sm:$0xff]  ;;  %v430_v7 = vld [vmem:[%s7397_s4 + $0x250] sm:$0xff] }
  0x95   :  { %4538 = vmatpush1.bf16.msra.mxu0 %v4537_v50  ;;  %v443_v50 = vld [vmem:[%s7397_s4 + $0x2b8] sm:$0xff] }
  0x96   :  { %4540 = vmatprep.subr.bf16.mxu0 %v4539_v51  ;;  %v4581_v51 = vpack.c.bf16 %v443_v50, %v440_v49  ;;  %v872_v50 = vld [vmem:[#allocation3 + $0x1f0] sm:$0xff] }
  0x97   :  { %v836_v27 = vld [vmem:[#allocation3 + $0xd0] sm:$0xff] }
  0x99   :  { %4542 = vmatpush1.bf16.msra.mxu0 %v4541_v56  ;;  %v473_v56 = vld [vmem:[%s7397_s4 + $0x3a8] sm:$0xff] }
  0x9a   :  { %4544 = vmatprep.subr.bf16.mxu0 %v4543_v57  ;;  %v4601_v57 = vpack.c.bf16 %v473_v56, %v470_v55  ;;  %v370_v56 = vld [vmem:[%s7397_s4 + $0x70] sm:$0xff] }
  0x9c   :  { %4602 = vmatpush1.bf16.msra.mxu1 %v4601_v57  ;;  %v373_v57 = vld [vmem:[%s7397_s4 + $0x88] sm:$0xff] }
  0x9d   :  { %4546 = vmatpush1.bf16.msra.mxu0 %v4545_v62  ;;  %v449_v62 = vld [vmem:[%s7397_s4 + $0x2e8] sm:$0xff]  ;;  %4604 = vmatprep.subr.bf16.mxu1 %v4603_v3  ;;  %v4613_v3 = vpack.c.bf16 %v373_v57, %v370_v56  ;;  %v400_v56 = vld [vmem:[%s7397_s4 + $0x160] sm:$0xff]  ;;  %v403_v57 = vld [vmem:[%s7397_s4 + $0x178] sm:$0xff] }
  0x9e   :  { %4548 = vmatprep.subr.bf16.mxu0 %v4547_v63  ;;  %v4585_v63 = vpack.c.bf16 %v449_v62, %v446_v61  ;;  %v824_v62 = vld [vmem:[#allocation3 + $0x70] sm:$0xff] }
  0xa1   :  { %4550 = vmatpush1.bf16.msra.mxu0 %v4549_v5  ;;  %v863_v5 = vld [vmem:[#allocation3 + $0x1a8] sm:$0xff] }
  0xa2   :  { %4552 = vmatprep.subr.bf16.mxu0 %v4551_v6  ;;  %v4731_v6 = vpack.c.bf16 %v863_v5, %v860_v4  ;;  %v376_v5 = vld [vmem:[%s7397_s4 + $0xa0] sm:$0xff] }
  0xa5   :  { %4554 = vmatpush1.bf16.msra.mxu0 %v4553_v11  ;;  %v174_v11 = vld [vmem:[%s7396_s3] sm:$0x7]  ;;  %s5972_s3 = smov [#allocation12]  }
  0xa6   :  { %4556 = vmatprep.subr.bf16.mxu0 %v4555_v12  ;;  %v6549_v12 = vsub.s32 2, %v6537_v8  ;;  %v179_v13 = vrot.slane %v174_v11, %v6540_v9  ;;  %v183_v14 = vrot.slane %v174_v11, %v6543_v10  ;;  %s4048_s10 = sshll.u32 %s5972_s3, 4  ;;  %s4049_s10 = int_to_ptr.vmem [resolvable:$true] %s4048_s10 }
  0xa7   :  { %s5929_s30 = scalar_lea.vmem %s4049_s10, 32  ;;  %p5934_p13 = scmp.lt.s32.totalorder %s4049_s10, %s4049_s10 }
  0xa8   :  { %v187_v15 = vrot.slane %v174_v11, %v6549_v12  ;;  %p5930_p12 = scmp.ne.s32.totalorder %s4049_s10, %s5929_s30  ;;  %p5935_p0 = scmp.lt.s32.totalorder %s5929_s30, %s5929_s30 }
  0xa9   :  { %4558 = vmatpush1.bf16.msra.mxu0 %v4557_v17  ;;  %v358_v17 = vld [vmem:[%s7397_s4 + $0x10] sm:$0xff] }
  0xaa   :  { %4560 = vmatprep.subr.bf16.mxu0 %v4559_v18  ;;  %v4605_v34 = vpack.c.bf16 %v361_v21, %v358_v17  ;;  %v884_v17 = vld [vmem:[#allocation3 + $0x250] sm:$0xff]  ;;  %p5936_p1 = por %p5935_p0, %p5934_p13 }
  0xab   :  { %v382_v21 = vld [vmem:[%s7397_s4 + $0xd0] sm:$0xff] }
  0xac   :  { %p5937_p2 = pnand %p5936_p1, %p5930_p12 }
  0xad   :  { %4562 = vmatpush1.bf16.msra.mxu0 %v4561_v23  ;;  %v415_v23 = vld [vmem:[%s7397_s4 + $0x1d8] sm:$0xff] }
  0xae   :  { %4564 = vmatprep.subr.bf16.mxu0 %v4563_v24 }
  0xb1   :  { %4566 = vmatpush1.bf16.msra.mxu0 %v4565_v29 }
  0xb2   :  { %4568 = vmatprep.subr.bf16.mxu0 %v4567_v30  ;;  %v866_v30 = vld [vmem:[#allocation3 + $0x1c0] sm:$0xff] }
  0xb3   :  { %v4735_v46 = vpack.c.bf16 %v869_v31, %v866_v30  ;;  %v890_v30 = vld [vmem:[#allocation3 + $0x280] sm:$0xff]  ;;  %v893_v31 = vld [vmem:[#allocation3 + $0x298] sm:$0xff] }
  0xb5   :  { %4570 = vmatpush1.bf16.msra.mxu0 %v4569_v35  ;;  %v4607_v35 = vpack.c.bf16 %v415_v23, %v412_v22  ;;  %v385_v22 = vld [vmem:[%s7397_s4 + $0xe8] sm:$0xff]  ;;  %v436_v23 = vld [vmem:[%s7397_s4 + $0x280] sm:$0xff] }
  0xb6   :  { %4572 = vmatprep.subr.bf16.mxu0 %v4571_v36 }
  0xb9   :  { %4574 = vmatpush1.bf16.msra.mxu0 %v4573_v41  ;;  %v367_v41 = vld [vmem:[%s7397_s4 + $0x58] sm:$0xff] }
  0xba   :  { %4576 = vmatprep.subr.bf16.mxu0 %v4575_v42  ;;  %v418_v42 = vld [vmem:[%s7397_s4 + $0x1f0] sm:$0xff]  ;;  %v4609_v53 = vpack.c.bf16 %v367_v41, %v364_v40  ;;  %v445_v40 = vld [vmem:[%s7397_s4 + $0x2c8] sm:$0xff]  ;;  %v4751_v41 = vpack.c.bf16 %v893_v31, %v890_v30  ;;  %v829_v30 = vld [vmem:[#allocation3 + $0x98] sm:$0xff] }
  0xbb   :  { %v4611_v55 = vpack.c.bf16 %v421_v45, %v418_v42  ;;  %v842_v42 = vld [vmem:[#allocation3 + $0x100] sm:$0xff]  ;;  %v832_v31 = vld [vmem:[#allocation3 + $0xb0] sm:$0xff] }
  0xbd   :  { %4578 = vmatpush1.bf16.msra.mxu0 %v4577_v47  ;;  %v818_v47 = vld [vmem:[#allocation3 + $0x40] sm:$0xff] }
  0xbe   :  { %4580 = vmatprep.subr.bf16.mxu0 %v4579_v48  ;;  %v821_v48 = vld [vmem:[#allocation3 + $0x58] sm:$0xff] }
  0xbf   :  { %v4737_v59 = vpack.c.bf16 %v821_v48, %v818_v47  ;;  %v397_v47 = vld [vmem:[%s7397_s4 + $0x148] sm:$0xff] }
  0xc1   :  { %4582 = vmatpush1.bf16.msra.mxu0 %v4581_v51  ;;  %v875_v51 = vld [vmem:[#allocation3 + $0x208] sm:$0xff] }
  0xc2   :  { %4584 = vmatprep.subr.bf16.mxu0 %v4583_v60  ;;  %v427_v60 = vld [vmem:[%s7397_s4 + $0x238] sm:$0xff]  ;;  %v4739_v61 = vpack.c.bf16 %v875_v51, %v872_v50  ;;  %v448_v50 = vld [vmem:[%s7397_s4 + $0x2e0] sm:$0xff] }
  0xc3   :  { %v4615_v4 = vpack.c.bf16 %v427_v60, %v424_v58  ;;  %v451_v51 = vld [vmem:[%s7397_s4 + $0x2f8] sm:$0xff]  ;;  %v454_v58 = vld [vmem:[%s7397_s4 + $0x310] sm:$0xff]  ;;  %v4633_v60 = vpack.c.bf16 %v403_v57, %v400_v56  ;;  %v846_v57 = vld [vmem:[#allocation3 + $0x120] sm:$0xff] }
  0xc5   :  { %4586 = vmatpush1.bf16.msra.mxu0 %v4585_v63  ;;  %v827_v63 = vld [vmem:[#allocation3 + $0x88] sm:$0xff] }
  0xc6   :  { %4732 = vmatprep.subr.bf16.mxu0 %v4731_v6  ;;  %v379_v6 = vld [vmem:[%s7397_s4 + $0xb8] sm:$0xff]  ;;  %v4741_v11 = vpack.c.bf16 %v827_v63, %v824_v62  ;;  %v460_v62 = vld [vmem:[%s7397_s4 + $0x340] sm:$0xff] }
  0xc7   :  { %v463_v63 = vld [vmem:[%s7397_s4 + $0x358] sm:$0xff] }
 0x159   :  { %v264_v16 = vpop.f32.mrb[0].mxu0 }
 0x15a   :  { %v265_v18 = vadd.f32 %v264_v16, %v179_v13  ;;  %v4339_v19 = vpop.f32.mrb[0].mxu1  ;;  %v266_v20 = vpop.f32.mrb[1].mxu0  ;;  %v833_v16 = vld [vmem:[#allocation3 + $0xb8] sm:$0xff] }
 0x15b   :  { %v267_v24 = vadd.f32 %v266_v20, %v183_v14  ;;  %v341_v25 = vpop.f32.mrb[1].mxu1  ;;  %v347_v36 = vadd.f32 %v4339_v19, %v187_v15  ;;  %v4617_v19 = vpack.c.bf16 %v379_v6, %v376_v5  ;;  %v472_v5 = vld [vmem:[%s7397_s4 + $0x3a0] sm:$0xff]  ;;  %v475_v6 = vld [vmem:[%s7397_s4 + $0x3b8] sm:$0xff] }
 0x15c   :  { %v6566_v28 = vmax.f32 %v265_v18, 0.0  ;;  %v342_v29 = vadd.f32 %v341_v25, %v187_v15  ;;  %v830_v15 = vld [vmem:[#allocation3 + $0xa0] sm:$0xff]  ;;  %v887_v18 = vld [vmem:[#allocation3 + $0x268] sm:$0xff]  ;;  %v439_v25 = vld [vmem:[%s7397_s4 + $0x298] sm:$0xff] }
 0x15d   :  { %v6568_v32 = vmax.f32 %v267_v24, 0.0  ;;  %v270_v33 = vpop.f32.mrb[2].mxu0  ;;  %v6593_v54 = vmax.f32 %v347_v36, 0.0  ;;  %v4745_v24 = vpack.c.bf16 %v833_v16, %v830_v15  ;;  %v4747_v26 = vpack.c.bf16 %v887_v18, %v884_v17  ;;  %v391_v36 = vld [vmem:[%s7397_s4 + $0x118] sm:$0xff]  ;;  %v810_v15 = vld [vmem:[#allocation3] sm:$0xff] }
 0x15e   :  { %v6570_v37 = vmax.f32 %v342_v29, 0.0  ;;  %v271_v38 = vadd.f32 %v270_v33, %v179_v13  ;;  %v272_v39 = vpop.f32.mrb[3].mxu0  ;;  %v433_v13 = vld [vmem:[%s7397_s4 + $0x268] sm:$0xff]  ;;  %v4621_v33 = vpack.c.bf16 %v385_v22, %v382_v21  ;;  %v813_v16 = vld [vmem:[#allocation3 + $0x18] sm:$0xff]  ;;  %v820_v18 = vld [vmem:[#allocation3 + $0x50] sm:$0xff] }
 0x15f   :  { %v273_v44 = vadd.f32 %v272_v39, %v183_v14  ;;  %564 = vmatprep.mubr.f32.mxu0 %v6568_v32  ;;  %v4743_v14 = vpack.c.bf16 %v881_v2, %v878_v0  ;;  %v4619_v20 = vpack.c.bf16 %v433_v13, %v430_v7  ;;  %v839_v29 = vld [vmem:[#allocation3 + $0xe8] sm:$0xff]  ;;  %v4639_v0 = vpack.c.bf16 %v463_v63, %v460_v62  ;;  %v814_v13 = vld [vmem:[#allocation3 + $0x20] sm:$0xff]  ;;  %v817_v17 = vld [vmem:[#allocation3 + $0x38] sm:$0xff] }
 0x160   :  { %v6585_v49 = vmax.f32 %v271_v38, 0.0  ;;  %4067 = vmatmul.mubr.msk.f32.vlgmr.msra.gmra.mrb[2].mxu1 %vm493_vm1, %v6570_v37  ;;  %565 = vmatmul.mubr.f32.vlgmr.msra.gmra.mrb[4].mxu0 %v6566_v28  ;;  %v442_v38 = vld [vmem:[%s7397_s4 + $0x2b0] sm:$0xff]  ;;  %v4749_v39 = vpack.c.bf16 %v839_v29, %v836_v27  ;;  %v4647_v7 = vpack.c.bf16 %v475_v6, %v472_v5  ;;  %v822_v27 = vld [vmem:[#allocation3 + $0x60] sm:$0xff]  ;;  %v825_v29 = vld [vmem:[#allocation3 + $0x78] sm:$0xff] }
 0x161   :  { %v6590_v52 = vmax.f32 %v273_v44, 0.0  ;;  %4606 = vmatpush3.bf16.msra.mxu1 %v4605_v34  ;;  %647 = vmatprep.mubr.f32.mxu1 %v5968_v1  ;;  %v4623_v34 = vpack.c.bf16 %v439_v25, %v436_v23  ;;  %v4627_v45 = vpack.c.bf16 %v445_v40, %v442_v38  ;;  %v466_v2 = vld [vmem:[%s7397_s4 + $0x370] sm:$0xff]  ;;  %v858_v6 = vld [vmem:[#allocation3 + $0x180] sm:$0xff] }
 0x162   :  { %4608 = vmatprep.subr.bf16.mxu1 %v4607_v35  ;;  %4734 = vmatpush3.bf16.msra.mxu0 %v4733_v43  ;;  %v388_v35 = vld [vmem:[%s7397_s4 + $0x100] sm:$0xff]  ;;  %v816_v21 = vld [vmem:[#allocation3 + $0x30] sm:$0xff]  ;;  %v819_v22 = vld [vmem:[#allocation3 + $0x48] sm:$0xff] }
 0x163   :  { %570 = vmatprep.mubr.f32.mxu0 %v6590_v52  ;;  %4736 = vmatprep.subr.bf16.mxu0 %v4735_v46  ;;  %v845_v43 = vld [vmem:[#allocation3 + $0x118] sm:$0xff]  ;;  %v4625_v44 = vpack.c.bf16 %v391_v36, %v388_v35  ;;  %v394_v46 = vld [vmem:[%s7397_s4 + $0x130] sm:$0xff]  ;;  %v4657_v25 = vpack.c.bf16 %v819_v22, %v816_v21  ;;  %v870_v22 = vld [vmem:[#allocation3 + $0x1e0] sm:$0xff] }
 0x164   :  { %4068 = vmatmul.mubr.msk.f32.gmra.mrb[4].mxu1 %vm493_vm1, %v6593_v54  ;;  %571 = vmatmul.mubr.f32.gmra.mrb[6].mxu0 %v6585_v49  ;;  %v4753_v48 = vpack.c.bf16 %v845_v43, %v842_v42  ;;  %v823_v23 = vld [vmem:[#allocation3 + $0x68] sm:$0xff]  ;;  %v828_v35 = vld [vmem:[#allocation3 + $0x90] sm:$0xff]  ;;  %v834_v42 = vld [vmem:[#allocation3 + $0xc0] sm:$0xff] }
 0x165   :  { %4610 = vmatpush3.bf16.msra.mxu1 %v4609_v53  ;;  %718 = vmatprep.mubr.f32.mxu1 %v6568_v32  ;;  %v4629_v53 = vpack.c.bf16 %v397_v47, %v394_v46  ;;  %v831_v36 = vld [vmem:[#allocation3 + $0xa8] sm:$0xff]  ;;  %v837_v43 = vld [vmem:[#allocation3 + $0xd8] sm:$0xff]  ;;  %v852_v63 = vld [vmem:[#allocation3 + $0x150] sm:$0xff] }
 0x166   :  { %4612 = vmatprep.subr.bf16.mxu1 %v4611_v55  ;;  %4738 = vmatpush3.bf16.msra.mxu0 %v4737_v59  ;;  %v4631_v55 = vpack.c.bf16 %v451_v51, %v448_v50  ;;  %v457_v59 = vld [vmem:[%s7397_s4 + $0x328] sm:$0xff]  ;;  %v4665_v40 = vpack.c.bf16 %v831_v36, %v828_v35  ;;  %v4669_v46 = vpack.c.bf16 %v837_v43, %v834_v42  ;;  %v876_v35 = vld [vmem:[#allocation3 + $0x210] sm:$0xff]  ;;  %v905_v42 = vld [vmem:[#allocation3 + $0x2f8] sm:$0xff] }
 0x167   :  { %4740 = vmatprep.subr.bf16.mxu0 %v4739_v61  ;;  %v4635_v61 = vpack.c.bf16 %v457_v59, %v454_v58  ;;  %v835_v38 = vld [vmem:[#allocation3 + $0xc8] sm:$0xff]  ;;  %v849_v58 = vld [vmem:[#allocation3 + $0x138] sm:$0xff] }
 0x168   :  { %v843_v50 = vld [vmem:[#allocation3 + $0x108] sm:$0xff]  ;;  %v853_v59 = vld [vmem:[#allocation3 + $0x158] sm:$0xff] }
 0x169   :  { %4614 = vmatpush3.bf16.msra.mxu1 %v4613_v3  ;;  %v469_v3 = vld [vmem:[%s7397_s4 + $0x388] sm:$0xff] }
 0x16a   :  { %4616 = vmatprep.subr.bf16.mxu1 %v4615_v4  ;;  %4742 = vmatpush3.bf16.msra.mxu0 %v4741_v11  ;;  %v4643_v4 = vpack.c.bf16 %v469_v3, %v466_v2  ;;  %v811_v11 = vld [vmem:[#allocation3 + $0x8] sm:$0xff]  ;;  %v862_v3 = vld [vmem:[#allocation3 + $0x1a0] sm:$0xff] }
 0x16b   :  { %4744 = vmatprep.subr.bf16.mxu0 %v4743_v14  ;;  %v4651_v14 = vpack.c.bf16 %v814_v13, %v811_v11  ;;  %v847_v51 = vld [vmem:[#allocation3 + $0x128] sm:$0xff]  ;;  %v865_v11 = vld [vmem:[#allocation3 + $0x1b8] sm:$0xff]  ;;  %v868_v13 = vld [vmem:[#allocation3 + $0x1d0] sm:$0xff] }
 0x16c   :  { %v859_v2 = vld [vmem:[#allocation3 + $0x188] sm:$0xff] }
 0x16d   :  { %4618 = vmatpush3.bf16.msra.mxu1 %v4617_v19  ;;  %v4653_v19 = vpack.c.bf16 %v813_v16, %v810_v15  ;;  %v4683_v5 = vpack.c.bf16 %v862_v3, %v859_v2  ;;  %v4687_v15 = vpack.c.bf16 %v868_v13, %v865_v11  ;;  %v864_v16 = vld [vmem:[#allocation3 + $0x1b0] sm:$0xff]  ;;  %v879_v36 = vld [vmem:[#allocation3 + $0x228] sm:$0xff]  ;;  %v897_v2 = vld [vmem:[#allocation3 + $0x2b8] sm:$0xff] }
 0x16e   :  { %4620 = vmatprep.subr.bf16.mxu1 %v4619_v20  ;;  %4746 = vmatpush3.bf16.msra.mxu0 %v4745_v24  ;;  %v4655_v20 = vpack.c.bf16 %v820_v18, %v817_v17  ;;  %v826_v24 = vld [vmem:[#allocation3 + $0x80] sm:$0xff]  ;;  %v867_v17 = vld [vmem:[#allocation3 + $0x1c8] sm:$0xff]  ;;  %v4697_v43 = vpack.c.bf16 %v879_v36, %v876_v35  ;;  %v901_v3 = vld [vmem:[#allocation3 + $0x2d8] sm:$0xff] }
 0x16f   :  { %4748 = vmatprep.subr.bf16.mxu0 %v4747_v26  ;;  %v4659_v26 = vpack.c.bf16 %v826_v24, %v823_v23  ;;  %v871_v18 = vld [vmem:[#allocation3 + $0x1e8] sm:$0xff]  ;;  %v873_v23 = vld [vmem:[#allocation3 + $0x1f8] sm:$0xff] }
 0x170   :  { %v877_v24 = vld [vmem:[#allocation3 + $0x218] sm:$0xff]  ;;  %v903_v11 = vld [vmem:[#allocation3 + $0x2e8] sm:$0xff] }
 0x171   :  { %4622 = vmatpush3.bf16.msra.mxu1 %v4621_v33  ;;  %v4661_v33 = vpack.c.bf16 %v825_v29, %v822_v27  ;;  %v899_v27 = vld [vmem:[#allocation3 + $0x2c8] sm:$0xff]  ;;  %v4693_v29 = vpack.c.bf16 %v873_v23, %v870_v22 }
 0x172   :  { %4624 = vmatprep.subr.bf16.mxu1 %v4623_v34  ;;  %4750 = vmatpush3.bf16.msra.mxu0 %v4749_v39  ;;  %v4663_v34 = vpack.c.bf16 %v832_v31, %v829_v30  ;;  %v838_v39 = vld [vmem:[#allocation3 + $0xe0] sm:$0xff]  ;;  %v848_v31 = vld [vmem:[#allocation3 + $0x130] sm:$0xff] }
 0x173   :  { %4752 = vmatprep.subr.bf16.mxu0 %v4751_v41  ;;  %v4667_v41 = vpack.c.bf16 %v838_v39, %v835_v38  ;;  %v883_v39 = vld [vmem:[#allocation3 + $0x248] sm:$0xff] }
 0x175   :  { %4626 = vmatpush3.bf16.msra.mxu1 %v4625_v44  ;;  %v841_v44 = vld [vmem:[#allocation3 + $0xf8] sm:$0xff] }
 0x176   :  { %4628 = vmatprep.subr.bf16.mxu1 %v4627_v45  ;;  %4754 = vmatpush3.bf16.msra.mxu0 %v4753_v48  ;;  %v844_v45 = vld [vmem:[#allocation3 + $0x110] sm:$0xff] }
 0x177   :  { %v4671_v47 = vpack.c.bf16 %v844_v45, %v841_v44  ;;  %v840_v48 = vld [vmem:[#allocation3 + $0xf0] sm:$0xff]  ;;  %v854_v45 = vld [vmem:[#allocation3 + $0x160] sm:$0xff] }
 0x179   :  { %4630 = vmatpush3.bf16.msra.mxu1 %v4629_v53  ;;  %v850_v53 = vld [vmem:[#allocation3 + $0x140] sm:$0xff] }
 0x17a   :  { %4632 = vmatprep.subr.bf16.mxu1 %v4631_v55  ;;  %v4673_v55 = vpack.c.bf16 %v843_v50, %v840_v48  ;;  %v4675_v56 = vpack.c.bf16 %v850_v53, %v847_v51  ;;  %v882_v48 = vld [vmem:[#allocation3 + $0x240] sm:$0xff]  ;;  %v885_v50 = vld [vmem:[#allocation3 + $0x258] sm:$0xff] }
 0x17b   :  { %v889_v53 = vld [vmem:[#allocation3 + $0x278] sm:$0xff] }
 0x17d   :  { %4634 = vmatpush3.bf16.msra.mxu1 %v4633_v60  ;;  %v856_v60 = vld [vmem:[#allocation3 + $0x170] sm:$0xff] }
 0x17e   :  { %4636 = vmatprep.subr.bf16.mxu1 %v4635_v61  ;;  %v4679_v62 = vpack.c.bf16 %v856_v60, %v853_v59  ;;  %v891_v59 = vld [vmem:[#allocation3 + $0x288] sm:$0xff] }
 0x17f   :  { %v895_v60 = vld [vmem:[#allocation3 + $0x2a8] sm:$0xff] }
 0x180   :  { %719 = vmatmul.mubr.f32.vlgmr.msra.gmra.mrb[6].mxu1 %v6566_v28 }
 0x181   :  { %4638 = vmatpush3.bf16.msra.mxu1 %v4635_v61  ;;  %723 = vmatprep.mubr.f32.mxu1 %v6590_v52  ;;  %v4677_v61 = vpack.c.bf16 %v849_v58, %v846_v57  ;;  %v888_v58 = vld [vmem:[#allocation3 + $0x270] sm:$0xff] }
 0x182   :  { %4640 = vmatprep.subr.bf16.mxu1 %v4639_v0 }
 0x184   :  { %724 = vmatmul.mubr.f32.gmra.mrb[8].mxu1 %v6585_v49 }
 0x185   :  { %4642 = vmatpush3.bf16.msra.mxu1 %v4639_v0  ;;  %4356 = vmatprep.mubr.msk.f32.mxu1 %vm493_vm1, %v6570_v37  ;;  %v855_v0 = vld [vmem:[#allocation3 + $0x168] sm:$0xff] }
 0x186   :  { %4644 = vmatprep.subr.bf16.mxu1 %v4643_v4 }
 0x189   :  { %4646 = vmatpush3.bf16.msra.mxu1 %v4643_v4  ;;  %v4681_v4 = vpack.c.bf16 %v855_v0, %v852_v63  ;;  %v894_v0 = vld [vmem:[#allocation3 + $0x2a0] sm:$0xff] }
 0x18a   :  { %4648 = vmatprep.subr.bf16.mxu1 %v4647_v7 }
 0x18d   :  { %4650 = vmatpush3.bf16.msra.mxu1 %v4647_v7  ;;  %v861_v7 = vld [vmem:[#allocation3 + $0x198] sm:$0xff] }
 0x18e   :  { %4652 = vmatprep.subr.bf16.mxu1 %v4651_v14  ;;  %v4685_v14 = vpack.c.bf16 %v861_v7, %v858_v6  ;;  %v900_v7 = vld [vmem:[#allocation3 + $0x2d0] sm:$0xff] }
 0x18f   :  { %v4713_v13 = vpack.c.bf16 %v903_v11, %v900_v7  ;;  %v928_v7 = vld [vmem:[#allocation3 + $0x3b0] sm:$0xff]  ;;  %v926_v11 = vld [vmem:[#allocation3 + $0x3a0] sm:$0xff] }
 0x190   :  { %4357 = vmatmul.mubr.msk.f32.vlgmr.msra.gmra.mrb[10].mxu1 %vm493_vm1, %v6593_v54 }
 0x191   :  { %4654 = vmatpush1.bf16.msra.mxu1 %v4653_v19  ;;  %v874_v19 = vld [vmem:[#allocation3 + $0x200] sm:$0xff] }
 0x192   :  { %4656 = vmatprep.subr.bf16.mxu1 %v4655_v20  ;;  %v4689_v20 = vpack.c.bf16 %v867_v17, %v864_v16  ;;  %v4691_v21 = vpack.c.bf16 %v874_v19, %v871_v18  ;;  %v908_v17 = vld [vmem:[#allocation3 + $0x310] sm:$0xff]  ;;  %v911_v18 = vld [vmem:[#allocation3 + $0x328] sm:$0xff] }
 0x193   :  { %v4763_v19 = vpack.c.bf16 %v911_v18, %v908_v17  ;;  %v927_v17 = vld [vmem:[#allocation3 + $0x3a8] sm:$0xff] }
 0x195   :  { %4658 = vmatpush1.bf16.msra.mxu1 %v4657_v25  ;;  %v880_v25 = vld [vmem:[#allocation3 + $0x230] sm:$0xff] }
 0x196   :  { %4660 = vmatprep.subr.bf16.mxu1 %v4659_v26  ;;  %v896_v26 = vld [vmem:[#allocation3 + $0x2b0] sm:$0xff] }
 0x197   :  { %v4755_v30 = vpack.c.bf16 %v899_v27, %v896_v26 }
 0x199   :  { %4662 = vmatpush1.bf16.msra.mxu1 %v4661_v33  ;;  %v851_v33 = vld [vmem:[#allocation3 + $0x148] sm:$0xff]  ;;  %4756 = vmatprep.subr.bf16.mxu0 %v4755_v30 }
 0x19a   :  { %4664 = vmatprep.subr.bf16.mxu1 %v4663_v34  ;;  %v4695_v34 = vpack.c.bf16 %v880_v25, %v877_v24  ;;  %v4757_v38 = vpack.c.bf16 %v851_v33, %v848_v31  ;;  %v906_v31 = vld [vmem:[#allocation3 + $0x300] sm:$0xff]  ;;  %v909_v33 = vld [vmem:[#allocation3 + $0x318] sm:$0xff] }
 0x19c   :  { %4758 = vmatpush3.bf16.msra.mxu0 %v4757_v38 }
 0x19d   :  { %4666 = vmatpush1.bf16.msra.mxu1 %v4665_v40  ;;  %v886_v40 = vld [vmem:[#allocation3 + $0x260] sm:$0xff] }
 0x19e   :  { %4668 = vmatprep.subr.bf16.mxu1 %v4667_v41  ;;  %v902_v41 = vld [vmem:[#allocation3 + $0x2e0] sm:$0xff] }
 0x19f   :  { %v4759_v44 = vpack.c.bf16 %v905_v42, %v902_v41  ;;  %v917_v41 = vld [vmem:[#allocation3 + $0x358] sm:$0xff] }
 0x1a1   :  { %4670 = vmatpush1.bf16.msra.mxu1 %v4669_v46  ;;  %v857_v46 = vld [vmem:[#allocation3 + $0x178] sm:$0xff]  ;;  %4760 = vmatprep.subr.bf16.mxu0 %v4759_v44 }
 0x1a2   :  { %4672 = vmatprep.subr.bf16.mxu1 %v4671_v47  ;;  %v4699_v47 = vpack.c.bf16 %v886_v40, %v883_v39  ;;  %v4761_v51 = vpack.c.bf16 %v857_v46, %v854_v45  ;;  %v916_v39 = vld [vmem:[#allocation3 + $0x350] sm:$0xff]  ;;  %v914_v40 = vld [vmem:[#allocation3 + $0x340] sm:$0xff] }
 0x1a4   :  { %4762 = vmatpush3.bf16.msra.mxu0 %v4761_v51 }
 0x1a5   :  { %4674 = vmatpush1.bf16.msra.mxu1 %v4673_v55  ;;  %v892_v55 = vld [vmem:[#allocation3 + $0x290] sm:$0xff]  ;;  %4764 = vmatprep.subr.bf16.mxu0 %v4763_v19 }
 0x1a6   :  { %4676 = vmatprep.subr.bf16.mxu1 %v4675_v56  ;;  %v4701_v56 = vpack.c.bf16 %v885_v50, %v882_v48  ;;  %v4703_v57 = vpack.c.bf16 %v892_v55, %v889_v53  ;;  %v912_v53 = vld [vmem:[#allocation3 + $0x330] sm:$0xff]  ;;  %v915_v55 = vld [vmem:[#allocation3 + $0x348] sm:$0xff] }
 0x1a9   :  { %4678 = vmatpush1.bf16.msra.mxu1 %v4677_v61  ;;  %v898_v61 = vld [vmem:[#allocation3 + $0x2c0] sm:$0xff] }
 0x1aa   :  { %4680 = vmatprep.subr.bf16.mxu1 %v4679_v62  ;;  %v4705_v62 = vpack.c.bf16 %v891_v59, %v888_v58  ;;  %v4707_v63 = vpack.c.bf16 %v898_v61, %v895_v60  ;;  %v922_v59 = vld [vmem:[#allocation3 + $0x380] sm:$0xff]  ;;  %v920_v60 = vld [vmem:[#allocation3 + $0x370] sm:$0xff]  ;;  %v923_v61 = vld [vmem:[#allocation3 + $0x388] sm:$0xff] }
 0x1ad   :  { %4682 = vmatpush1.bf16.msra.mxu1 %v4681_v4  ;;  %v904_v4 = vld [vmem:[#allocation3 + $0x2f0] sm:$0xff] }
 0x1ae   :  { %4684 = vmatprep.subr.bf16.mxu1 %v4683_v5  ;;  %v4709_v5 = vpack.c.bf16 %v897_v2, %v894_v0  ;;  %v4711_v6 = vpack.c.bf16 %v904_v4, %v901_v3  ;;  %v918_v3 = vld [vmem:[#allocation3 + $0x360] sm:$0xff]  ;;  %v921_v4 = vld [vmem:[#allocation3 + $0x378] sm:$0xff] }
 0x1b1   :  { %4686 = vmatpush1.bf16.msra.mxu1 %v4685_v14  ;;  %v907_v14 = vld [vmem:[#allocation3 + $0x308] sm:$0xff] }
 0x1b2   :  { %4688 = vmatprep.subr.bf16.mxu1 %v4687_v15  ;;  %v910_v15 = vld [vmem:[#allocation3 + $0x320] sm:$0xff] }
 0x1b3   :  { %v4715_v16 = vpack.c.bf16 %v910_v15, %v907_v14  ;;  %v4725_v14 = vpack.c.bf16 %v921_v4, %v918_v3  ;;  %v1287_v3 = vld [vmem:[#allocation6 + $0x90] sm:$0xff]  ;;  %v1290_v4 = vld [vmem:[#allocation6 + $0xa8] sm:$0xff] }
 0x1b5   :  { %4690 = vmatpush1.bf16.msra.mxu1 %v4689_v20  ;;  %v6700_v20 = vld [vmem:[%s7398_s5] sm:$0x7] }
 0x1b6   :  { %4692 = vmatprep.subr.bf16.mxu1 %v4691_v21  ;;  %v481_v21 = vrot.slane %v6700_v20, %v6540_v9  ;;  %v485_v22 = vrot.slane %v6700_v20, %v6543_v10 }
 0x1b9   :  { %4694 = vmatpush1.bf16.msra.mxu1 %v4693_v29 }
 0x1ba   :  { %4696 = vmatprep.subr.bf16.mxu1 %v4695_v34  ;;  %v913_v34 = vld [vmem:[#allocation3 + $0x338] sm:$0xff] }
 0x1bb   :  { %v4719_v51 = vpack.c.bf16 %v916_v39, %v913_v34  ;;  %v1269_v39 = vld [vmem:[#allocation6] sm:$0xff] }
 0x1bd   :  { %4698 = vmatpush1.bf16.msra.mxu1 %v4697_v43 }
 0x1be   :  { %4700 = vmatprep.subr.bf16.mxu1 %v4699_v47  ;;  %v4717_v47 = vpack.c.bf16 %v909_v33, %v906_v31  ;;  %v489_v31 = vrot.slane %v6700_v20, %v6549_v12  ;;  %v1282_v20 = vld [vmem:[#allocation6 + $0x68] sm:$0xff] }
 0x1c1   :  { %4702 = vmatpush1.bf16.msra.mxu1 %v4701_v56  ;;  %v4767_v56 = vpack.c.bf16 %v917_v41, %v914_v40  ;;  %v1272_v40 = vld [vmem:[#allocation6 + $0x18] sm:$0xff] }
 0x1c2   :  { %4704 = vmatprep.subr.bf16.mxu1 %v4703_v57  ;;  %v919_v57 = vld [vmem:[#allocation3 + $0x368] sm:$0xff] }
 0x1c3   :  { %v4723_v2 = vpack.c.bf16 %v922_v59, %v919_v57  ;;  %v1284_v59 = vld [vmem:[#allocation6 + $0x78] sm:$0xff] }
 0x1c5   :  { %4706 = vmatpush1.bf16.msra.mxu1 %v4705_v62 }
 0x1c6   :  { %4708 = vmatprep.subr.bf16.mxu1 %v4707_v63  ;;  %v4721_v63 = vpack.c.bf16 %v915_v55, %v912_v53  ;;  %v1278_v53 = vld [vmem:[#allocation6 + $0x48] sm:$0xff]  ;;  %v1285_v55 = vld [vmem:[#allocation6 + $0x80] sm:$0xff] }
 0x1c7   :  { %v4787_v57 = vpack.c.bf16 %v1285_v55, %v1282_v20  ;;  %v1317_v20 = vld [vmem:[#allocation6 + $0x180] sm:$0xff] }
 0x1c9   :  { %4710 = vmatpush1.bf16.msra.mxu1 %v4709_v5  ;;  %v4771_v5 = vpack.c.bf16 %v923_v61, %v920_v60  ;;  %v1288_v60 = vld [vmem:[#allocation6 + $0x98] sm:$0xff]  ;;  %v1291_v61 = vld [vmem:[#allocation6 + $0xb0] sm:$0xff] }
 0x1ca   :  { %4712 = vmatprep.subr.bf16.mxu1 %v4711_v6  ;;  %v925_v6 = vld [vmem:[#allocation3 + $0x398] sm:$0xff] }
 0x1cb   :  { %v4727_v15 = vpack.c.bf16 %v928_v7, %v925_v6  ;;  %v1294_v6 = vld [vmem:[#allocation6 + $0xc8] sm:$0xff]  ;;  %v1297_v7 = vld [vmem:[#allocation6 + $0xe0] sm:$0xff] }
 0x1cd   :  { %4714 = vmatpush1.bf16.msra.mxu1 %v4713_v13  ;;  %v929_v13 = vld [vmem:[#allocation3 + $0x3b8] sm:$0xff] }
 0x1ce   :  { %4716 = vmatprep.subr.bf16.mxu1 %v4715_v16  ;;  %v924_v16 = vld [vmem:[#allocation3 + $0x390] sm:$0xff]  ;;  %v4775_v18 = vpack.c.bf16 %v929_v13, %v926_v11  ;;  %v4795_v11 = vpack.c.bf16 %v1297_v7, %v1294_v6  ;;  %v1293_v13 = vld [vmem:[#allocation6 + $0xc0] sm:$0xff]  ;;  %v1286_v6 = vld [vmem:[#allocation6 + $0x88] sm:$0xff] }
 0x233   :  { %v643_v23 = vpop.f32.mrb[2].mxu1  ;;  %v566_v24 = vpop.f32.mrb[4].mxu0 }
 0x234   :  { %v567_v25 = vadd.f32 %v566_v24, %v481_v21  ;;  %v645_v26 = vpop.f32.mrb[3].mxu1  ;;  %v568_v27 = vpop.f32.mrb[5].mxu0 }
 0x235   :  { %v569_v29 = vadd.f32 %v568_v27, %v485_v22 }
 0x236   :  { %v644_v30 = vadd.f32 %v643_v23, %v567_v25 }
 0x237   :  { %v646_v35 = vadd.f32 %v645_v26, %v569_v29  ;;  %v649_v36 = vpop.f32.mrb[4].mxu1  ;;  %v572_v38 = vpop.f32.mrb[6].mxu0 }
 0x238   :  { %v573_v42 = vadd.f32 %v572_v38, %v481_v21  ;;  %v651_v43 = vpop.f32.mrb[5].mxu1  ;;  %v574_v44 = vpop.f32.mrb[7].mxu0  ;;  %v6708_v48 = vmax.f32 %v644_v30, 0.0  ;;  %v1273_v21 = vld [vmem:[#allocation6 + $0x20] sm:$0xff] }
 0x239   :  { %v6706_v45 = vmax.f32 %v646_v35, 0.0  ;;  %v575_v46 = vadd.f32 %v574_v44, %v485_v22  ;;  %v4729_v22 = vpack.c.bf16 %v927_v17, %v924_v16  ;;  %v1300_v16 = vld [vmem:[#allocation6 + $0xf8] sm:$0xff]  ;;  %v1303_v17 = vld [vmem:[#allocation6 + $0x110] sm:$0xff] }
 0x23a   :  { %v650_v50 = vadd.f32 %v649_v36, %v573_v42  ;;  %v1276_v42 = vld [vmem:[#allocation6 + $0x38] sm:$0xff] }
 0x23b   :  { %v652_v58 = vadd.f32 %v651_v43, %v575_v46  ;;  %1017 = vmatprep.mubr.f32.mxu1 %v6706_v45  ;;  %1171 = vmatprep.mubr.f32.mxu0 %v6706_v45  ;;  %v1279_v43 = vld [vmem:[#allocation6 + $0x50] sm:$0xff]  ;;  %v4781_v46 = vpack.c.bf16 %v1272_v40, %v1269_v39  ;;  %v1322_v39 = vld [vmem:[#allocation6 + $0x1a8] sm:$0xff]  ;;  %v1321_v40 = vld [vmem:[#allocation6 + $0x1a0] sm:$0xff] }
 0x23c   :  { %1018 = vmatmul.mubr.f32.vlgmr.msra.gmra.mrb[12].mxu1 %v6708_v48  ;;  %1172 = vmatmul.mubr.f32.vlgmr.msra.gmra.mrb[8].mxu0 %v6708_v48  ;;  %v6716_v0 = vmax.f32 %v650_v50, 0.0  ;;  %v4783_v50 = vpack.c.bf16 %v1279_v43, %v1276_v42  ;;  %v1271_v42 = vld [vmem:[#allocation6 + $0x10] sm:$0xff]  ;;  %v1274_v43 = vld [vmem:[#allocation6 + $0x28] sm:$0xff] }
 0x23d   :  { %v6714_v62 = vmax.f32 %v652_v58, 0.0  ;;  %4718 = vmatpush1.bf16.msra.mxu1 %v4717_v47  ;;  %4766 = vmatpush3.bf16.msra.mxu0 %v4763_v19  ;;  %v1270_v19 = vld [vmem:[#allocation6 + $0x8] sm:$0xff]  ;;  %v1281_v58 = vld [vmem:[#allocation6 + $0x60] sm:$0xff] }
 0x23e   :  { %4720 = vmatprep.subr.bf16.mxu1 %v4719_v51  ;;  %4768 = vmatprep.subr.bf16.mxu0 %v4767_v56  ;;  %v4779_v23 = vpack.c.bf16 %v1273_v21, %v1270_v19  ;;  %v1275_v51 = vld [vmem:[#allocation6 + $0x30] sm:$0xff]  ;;  %v4799_v19 = vpack.c.bf16 %v1303_v17, %v1300_v16  ;;  %v1302_v21 = vld [vmem:[#allocation6 + $0x108] sm:$0xff] }
 0x23f   :  { %1023 = vmatprep.mubr.f32.mxu1 %v6714_v62  ;;  %1176 = vmatprep.mubr.f32.mxu0 %v6714_v62  ;;  %v1330_v16 = vld [vmem:[#allocation6 + $0x1e8] sm:$0xff] }
 0x240   :  { %1024 = vmatmul.mubr.f32.gmra.mrb[14].mxu1 %v6716_v0  ;;  %1177 = vmatmul.mubr.f32.gmra.mrb[10].mxu0 %v6716_v0 }
 0x241   :  { %4722 = vmatpush1.bf16.msra.mxu1 %v4721_v63  ;;  %4770 = vmatpush3.bf16.msra.mxu0 %v4767_v56  ;;  %v4785_v56 = vpack.c.bf16 %v1278_v53, %v1275_v51  ;;  %v4789_v63 = vpack.c.bf16 %v1284_v59, %v1281_v58  ;;  %v1328_v51 = vld [vmem:[#allocation6 + $0x1d8] sm:$0xff] }
 0x242   :  { %4724 = vmatprep.subr.bf16.mxu1 %v4723_v2  ;;  %4772 = vmatprep.subr.bf16.mxu0 %v4771_v5  ;;  %v4791_v2 = vpack.c.bf16 %v1291_v61, %v1288_v60  ;;  %v1320_v58 = vld [vmem:[#allocation6 + $0x198] sm:$0xff]  ;;  %v1327_v61 = vld [vmem:[#allocation6 + $0x1d0] sm:$0xff] }
 0x243   :  { %1094 = vmatprep.mubr.f32.mxu1 %v5968_v1  ;;  %v1324_v59 = vld [vmem:[#allocation6 + $0x1b8] sm:$0xff]  ;;  %v4813_v7 = vpack.c.bf16 %v1320_v58, %v1317_v20 }
 0x244   :  { %v1280_v60 = vld [vmem:[#allocation6 + $0x58] sm:$0xff] }
 0x245   :  { %4726 = vmatpush1.bf16.msra.mxu1 %v4725_v14  ;;  %4774 = vmatpush3.bf16.msra.mxu0 %v4771_v5  ;;  %v4793_v5 = vpack.c.bf16 %v1290_v4, %v1287_v3  ;;  %v1296_v14 = vld [vmem:[#allocation6 + $0xd8] sm:$0xff]  ;;  %v1334_v3 = vld [vmem:[#allocation6 + $0x208] sm:$0xff] }
 0x246   :  { %4728 = vmatprep.subr.bf16.mxu1 %v4727_v15  ;;  %4776 = vmatprep.subr.bf16.mxu0 %v4775_v18  ;;  %v4797_v15 = vpack.c.bf16 %v1296_v14, %v1293_v13  ;;  %v1337_v13 = vld [vmem:[#allocation6 + $0x220] sm:$0xff]  ;;  %v4815_v14 = vpack.c.bf16 %v1327_v61, %v1324_v59 }
 0x247   :  { %v1341_v59 = vld [vmem:[#allocation6 + $0x240] sm:$0xff] }
 0x249   :  { %4730 = vmatpush1.bf16.msra.mxu1 %v4729_v22  ;;  %4778 = vmatpush3.bf16.msra.mxu0 %v4775_v18  ;;  %v1299_v18 = vld [vmem:[#allocation6 + $0xf0] sm:$0xff]  ;;  %v1306_v22 = vld [vmem:[#allocation6 + $0x128] sm:$0xff] }
 0x24a   :  { %4780 = vmatprep.subr.bf16.mxu0 %v4779_v23  ;;  %v1309_v23 = vld [vmem:[#allocation6 + $0x140] sm:$0xff] }
 0x253   :  { %v4161_v24 = vpop.f32.mrb[6].mxu1 }
 0x254   :  { %v4162_v25 = vpop.f32.mrb[7].mxu1 }
 0x255   :  { %v4163_v26 = vadd.f32 %v4162_v25, %v4161_v24  ;;  %v4801_v24 = vpack.c.bf16 %v1302_v21, %v1299_v18  ;;  %v4803_v25 = vpack.c.bf16 %v1309_v23, %v1306_v22  ;;  %v1340_v18 = vld [vmem:[#allocation6 + $0x238] sm:$0xff]  ;;  %v1289_v22 = vld [vmem:[#allocation6 + $0xa0] sm:$0xff] }
 0x256   :  { %v4871_v21 = vpack.c.bf16 %v1340_v18, %v1337_v13  ;;  %v1292_v23 = vld [vmem:[#allocation6 + $0xb8] sm:$0xff]  ;;  %v1357_v13 = vld [vmem:[#allocation6 + $0x2c0] sm:$0xff] }
 0x257   :  { %v4164_v27 = vpop.f32.mrb[8].mxu1  ;;  %v721_v35 = vadd.f32 %v4163_v26, %v489_v31  ;;  %v1305_v26 = vld [vmem:[#allocation6 + $0x120] sm:$0xff]  ;;  %v1356_v18 = vld [vmem:[#allocation6 + $0x2b8] sm:$0xff] }
 0x258   :  { %v4165_v29 = vpop.f32.mrb[9].mxu1 }
 0x259   :  { %v4166_v30 = vadd.f32 %v4165_v29, %v4164_v27  ;;  %v1308_v27 = vld [vmem:[#allocation6 + $0x138] sm:$0xff] }
 0x25a   :  { %v1312_v29 = vld [vmem:[#allocation6 + $0x158] sm:$0xff] }
 0x25b   :  { %v726_v33 = vadd.f32 %v4166_v30, %v489_v31  ;;  %v1315_v30 = vld [vmem:[#allocation6 + $0x170] sm:$0xff]  ;;  %v4805_v31 = vpack.c.bf16 %v1308_v27, %v1305_v26 }
 0x263   :  { %v4358_v34 = vpop.f32.mrb[10].mxu1 }
 0x264   :  { %v801_v36 = vadd.f32 %v4358_v34, %v726_v33  ;;  %v795_v38 = vpop.f32.mrb[11].mxu1  ;;  %v1311_v33 = vld [vmem:[#allocation6 + $0x150] sm:$0xff] }
 0x265   :  { %v796_v41 = vadd.f32 %v795_v38, %v721_v35  ;;  %v1319_v34 = vld [vmem:[#allocation6 + $0x190] sm:$0xff]  ;;  %v4807_v35 = vpack.c.bf16 %v1315_v30, %v1312_v29  ;;  %v1318_v38 = vld [vmem:[#allocation6 + $0x188] sm:$0xff]  ;;  %v1329_v29 = vld [vmem:[#allocation6 + $0x1e0] sm:$0xff] }
 0x266   :  { %v6727_v47 = vmax.f32 %v801_v36, 0.0  ;;  %v1314_v36 = vld [vmem:[#allocation6 + $0x168] sm:$0xff]  ;;  %v1332_v30 = vld [vmem:[#allocation6 + $0x1f8] sm:$0xff] }
 0x267   :  { %v6725_v44 = vmax.f32 %v796_v41, 0.0  ;;  %v4859_v41 = vpack.c.bf16 %v1322_v39, %v1319_v34  ;;  %v4809_v53 = vpack.c.bf16 %v1314_v36, %v1311_v33  ;;  %v4873_v33 = vpack.c.bf16 %v1292_v23, %v1289_v22  ;;  %v1339_v34 = vld [vmem:[#allocation6 + $0x230] sm:$0xff]  ;;  %v1349_v39 = vld [vmem:[#allocation6 + $0x280] sm:$0xff]  ;;  %v1310_v23 = vld [vmem:[#allocation6 + $0x148] sm:$0xff] }
 0x268   :  { %v1295_v36 = vld [vmem:[#allocation6 + $0xd0] sm:$0xff] }
 0x269   :  { %4071 = vmatmul.mubr.msk.f32.vlgmr.msra.gmra.mrb[12].mxu1 %vm493_vm1, %v6725_v44  ;;  %4375 = vmatprep.mubr.msk.f32.mxu0 %vm493_vm1, %v6725_v44  ;;  %v1307_v22 = vld [vmem:[#allocation6 + $0x130] sm:$0xff] }
 0x26a   :  { %4376 = vmatmul.mubr.msk.f32.vlgmr.msra.gmra.mrb[12].mxu0 %vm493_vm1, %v6727_v47  ;;  %1100 = vmatprep.mubr.f32.mxu1 %v5968_v1 }
 0x26b   :  { %4782 = vmatpush1.bf16.msra.mxu0 %v4781_v46  ;;  %v4861_v46 = vpack.c.bf16 %v1274_v43, %v1271_v42  ;;  %4860 = vmatprep.subr.bf16.mxu1 %v4859_v41  ;;  %v4821_v41 = vpack.c.bf16 %v1332_v30, %v1329_v29  ;;  %v1335_v43 = vld [vmem:[#allocation6 + $0x210] sm:$0xff]  ;;  %v1364_v30 = vld [vmem:[#allocation6 + $0x2f8] sm:$0xff] }
 0x26c   :  { %4784 = vmatprep.subr.bf16.mxu0 %v4783_v50  ;;  %v1325_v50 = vld [vmem:[#allocation6 + $0x1c0] sm:$0xff] }
 0x26d   :  { %4072 = vmatmul.mubr.msk.f32.gmra.mrb[14].mxu1 %vm493_vm1, %v6727_v47  ;;  %v4863_v55 = vpack.c.bf16 %v1328_v51, %v1325_v50  ;;  %v1342_v50 = vld [vmem:[#allocation6 + $0x248] sm:$0xff] }
 0x26e   :  { %4862 = vmatpush3.bf16.msra.mxu1 %v4861_v46  ;;  %v1338_v46 = vld [vmem:[#allocation6 + $0x228] sm:$0xff] }
 0x26f   :  { %4786 = vmatpush1.bf16.msra.mxu0 %v4785_v56  ;;  %v1277_v56 = vld [vmem:[#allocation6 + $0x40] sm:$0xff]  ;;  %4864 = vmatprep.subr.bf16.mxu1 %v4863_v55 }
 0x270   :  { %4788 = vmatprep.subr.bf16.mxu0 %v4787_v57  ;;  %v4811_v57 = vpack.c.bf16 %v1321_v40, %v1318_v38  ;;  %v1298_v38 = vld [vmem:[#allocation6 + $0xe8] sm:$0xff]  ;;  %v1352_v40 = vld [vmem:[#allocation6 + $0x298] sm:$0xff]  ;;  %v1301_v55 = vld [vmem:[#allocation6 + $0x100] sm:$0xff] }
 0x271   :  { %v4877_v51 = vpack.c.bf16 %v1298_v38, %v1295_v36  ;;  %v4879_v20 = vpack.c.bf16 %v1352_v40, %v1349_v39  ;;  %v1313_v36 = vld [vmem:[#allocation6 + $0x160] sm:$0xff]  ;;  %v1316_v38 = vld [vmem:[#allocation6 + $0x178] sm:$0xff]  ;;  %v1366_v40 = vld [vmem:[#allocation6 + $0x308] sm:$0xff] }
 0x272   :  { %v4889_v39 = vpack.c.bf16 %v1316_v38, %v1313_v36  ;;  %v1371_v36 = vld [vmem:[#allocation6 + $0x330] sm:$0xff]  ;;  %v1374_v38 = vld [vmem:[#allocation6 + $0x348] sm:$0xff] }
 0x273   :  { %4790 = vmatpush1.bf16.msra.mxu0 %v4789_v63  ;;  %v4865_v63 = vpack.c.bf16 %v1280_v60, %v1277_v56  ;;  %v1304_v56 = vld [vmem:[#allocation6 + $0x118] sm:$0xff] }
 0x274   :  { %4792 = vmatprep.subr.bf16.mxu0 %v4791_v2  ;;  %v1331_v2 = vld [vmem:[#allocation6 + $0x1f0] sm:$0xff]  ;;  %v1344_v60 = vld [vmem:[#allocation6 + $0x258] sm:$0xff]  ;;  %v4881_v61 = vpack.c.bf16 %v1304_v56, %v1301_v55 }
 0x275   :  { %v4867_v4 = vpack.c.bf16 %v1334_v3, %v1331_v2  ;;  %4866 = vmatpush3.bf16.msra.mxu1 %v4865_v63  ;;  %v1348_v63 = vld [vmem:[#allocation6 + $0x278] sm:$0xff]  ;;  %v1351_v2 = vld [vmem:[#allocation6 + $0x290] sm:$0xff]  ;;  %v4829_v3 = vpack.c.bf16 %v1344_v60, %v1341_v59 }
 0x277   :  { %4794 = vmatpush1.bf16.msra.mxu0 %v4793_v5  ;;  %v1283_v5 = vld [vmem:[#allocation6 + $0x70] sm:$0xff]  ;;  %4868 = vmatprep.subr.bf16.mxu1 %v4867_v4  ;;  %v4831_v4 = vpack.c.bf16 %v1351_v2, %v1348_v63 }
 0x278   :  { %4796 = vmatprep.subr.bf16.mxu0 %v4795_v11  ;;  %v1323_v11 = vld [vmem:[#allocation6 + $0x1b0] sm:$0xff]  ;;  %v4869_v17 = vpack.c.bf16 %v1286_v6, %v1283_v5  ;;  %v1350_v6 = vld [vmem:[#allocation6 + $0x288] sm:$0xff] }
 0x279   :  { %v1347_v5 = vld [vmem:[#allocation6 + $0x270] sm:$0xff] }
 0x27a   :  { %4870 = vmatpush3.bf16.msra.mxu1 %v4869_v17  ;;  %v1353_v17 = vld [vmem:[#allocation6 + $0x2a0] sm:$0xff] }
 0x27b   :  { %4798 = vmatpush1.bf16.msra.mxu0 %v4797_v15  ;;  %v1326_v15 = vld [vmem:[#allocation6 + $0x1c8] sm:$0xff]  ;;  %4872 = vmatprep.subr.bf16.mxu1 %v4871_v21  ;;  %v4837_v21 = vpack.c.bf16 %v1356_v18, %v1353_v17  ;;  %v1368_v17 = vld [vmem:[#allocation6 + $0x318] sm:$0xff] }
 0x27c   :  { %4800 = vmatprep.subr.bf16.mxu0 %v4799_v19  ;;  %v1333_v19 = vld [vmem:[#allocation6 + $0x200] sm:$0xff]  ;;  %v4817_v26 = vpack.c.bf16 %v1326_v15, %v1323_v11  ;;  %v1354_v11 = vld [vmem:[#allocation6 + $0x2a8] sm:$0xff]  ;;  %v1372_v18 = vld [vmem:[#allocation6 + $0x338] sm:$0xff] }
 0x27d   :  { %v4819_v27 = vpack.c.bf16 %v1333_v19, %v1330_v16  ;;  %v4835_v15 = vpack.c.bf16 %v1357_v13, %v1354_v11  ;;  %v1358_v16 = vld [vmem:[#allocation6 + $0x2c8] sm:$0xff] }
 0x27e   :  { %4874 = vmatpush3.bf16.msra.mxu1 %v4873_v33  ;;  %v1362_v33 = vld [vmem:[#allocation6 + $0x2e8] sm:$0xff] }
 0x27f   :  { %4802 = vmatpush1.bf16.msra.mxu0 %v4801_v24  ;;  %v1343_v24 = vld [vmem:[#allocation6 + $0x250] sm:$0xff] }
 0x280   :  { %4804 = vmatprep.subr.bf16.mxu0 %v4803_v25  ;;  %v1346_v25 = vld [vmem:[#allocation6 + $0x268] sm:$0xff] }
 0x283   :  { %4806 = vmatpush1.bf16.msra.mxu0 %v4805_v31  ;;  %v1336_v31 = vld [vmem:[#allocation6 + $0x218] sm:$0xff] }
 0x284   :  { %4808 = vmatprep.subr.bf16.mxu0 %v4807_v35  ;;  %v4875_v35 = vpack.c.bf16 %v1346_v25, %v1343_v24  ;;  %v4823_v42 = vpack.c.bf16 %v1339_v34, %v1336_v31  ;;  %v4885_v24 = vpack.c.bf16 %v1310_v23, %v1307_v22  ;;  %v1360_v25 = vld [vmem:[#allocation6 + $0x2d8] sm:$0xff]  ;;  %v1359_v31 = vld [vmem:[#allocation6 + $0x2d0] sm:$0xff]  ;;  %v1373_v23 = vld [vmem:[#allocation6 + $0x340] sm:$0xff] }
 0x285   :  { %v1375_v22 = vld [vmem:[#allocation6 + $0x350] sm:$0xff] }
 0x286   :  { %4876 = vmatprep.subr.bf16.mxu1 %v4875_v35  ;;  %v4841_v35 = vpack.c.bf16 %v1362_v33, %v1359_v31 }
 0x287   :  { %4810 = vmatpush1.bf16.msra.mxu0 %v4809_v53  ;;  %v1345_v53 = vld [vmem:[#allocation6 + $0x260] sm:$0xff]  ;;  %4878 = vmatpush3.bf16.msra.mxu1 %v4877_v51 }
 0x288   :  { %4812 = vmatprep.subr.bf16.mxu0 %v4811_v57  ;;  %v4825_v57 = vpack.c.bf16 %v1338_v46, %v1335_v43  ;;  %v4827_v58 = vpack.c.bf16 %v1345_v53, %v1342_v50  ;;  %4880 = vmatprep.subr.bf16.mxu1 %v4879_v20  ;;  %v1370_v46 = vld [vmem:[#allocation6 + $0x328] sm:$0xff] }
 0x28b   :  { %4814 = vmatpush1.bf16.msra.mxu0 %v4813_v7  ;;  %4882 = vmatpush3.bf16.msra.mxu1 %v4881_v61  ;;  %v4833_v7 = vpack.c.bf16 %v1350_v6, %v1347_v5 }
 0x28c   :  { %4816 = vmatprep.subr.bf16.mxu0 %v4815_v14  ;;  %v1355_v14 = vld [vmem:[#allocation6 + $0x2b0] sm:$0xff] }
 0x28d   :  { %v4883_v19 = vpack.c.bf16 %v1358_v16, %v1355_v14  ;;  %v1365_v16 = vld [vmem:[#allocation6 + $0x300] sm:$0xff] }
 0x28f   :  { %4818 = vmatpush1.bf16.msra.mxu0 %v4817_v26  ;;  %4884 = vmatprep.subr.bf16.mxu1 %v4883_v19  ;;  %v1363_v26 = vld [vmem:[#allocation6 + $0x2f0] sm:$0xff] }
 0x290   :  { %4820 = vmatprep.subr.bf16.mxu0 %v4819_v27  ;;  %v1361_v27 = vld [vmem:[#allocation6 + $0x2e0] sm:$0xff]  ;;  %4886 = vmatpush3.bf16.msra.mxu1 %v4885_v24  ;;  %v4839_v29 = vpack.c.bf16 %v1363_v26, %v1360_v25  ;;  %v1376_v24 = vld [vmem:[#allocation6 + $0x358] sm:$0xff] }
 0x291   :  { %v4887_v34 = vpack.c.bf16 %v1364_v30, %v1361_v27  ;;  %v4845_v30 = vpack.c.bf16 %v1368_v17, %v1365_v16  ;;  %v1732_v16 = vld [vmem:[#allocation8 + $0x20] sm:$0xff]  ;;  %v1730_v17 = vld [vmem:[#allocation8 + $0x10] sm:$0xff] }
 0x293   :  { %4822 = vmatpush1.bf16.msra.mxu0 %v4821_v41  ;;  %4888 = vmatprep.subr.bf16.mxu1 %v4887_v34  ;;  %v1369_v41 = vld [vmem:[#allocation6 + $0x320] sm:$0xff]  ;;  %v4847_v34 = vpack.c.bf16 %v1375_v22, %v1372_v18  ;;  %v1734_v18 = vld [vmem:[#allocation8 + $0x30] sm:$0xff]  ;;  %v1739_v22 = vld [vmem:[#allocation8 + $0x58] sm:$0xff] }
 0x294   :  { %4824 = vmatprep.subr.bf16.mxu0 %v4823_v42  ;;  %v1367_v42 = vld [vmem:[#allocation6 + $0x310] sm:$0xff]  ;;  %4890 = vmatpush3.bf16.msra.mxu1 %v4889_v39  ;;  %v4843_v43 = vpack.c.bf16 %v1369_v41, %v1366_v40  ;;  %v1378_v40 = vld [vmem:[#allocation6 + $0x368] sm:$0xff]  ;;  %v1381_v41 = vld [vmem:[#allocation6 + $0x380] sm:$0xff] }
 0x295   :  { %v4891_v50 = vpack.c.bf16 %v1370_v46, %v1367_v42  ;;  %v1382_v46 = vld [vmem:[#allocation6 + $0x388] sm:$0xff] }
 0x297   :  { %4826 = vmatpush1.bf16.msra.mxu0 %v4825_v57  ;;  %4892 = vmatprep.subr.bf16.mxu1 %v4891_v50 }
 0x298   :  { %4828 = vmatprep.subr.bf16.mxu0 %v4827_v58  ;;  %v930_v58 = vld [vmem:[%s7400_s7] sm:$0x7] }
 0x299   :  { %v935_v59 = vrot.slane %v930_v58, %v6540_v9  ;;  %v943_v60 = vrot.slane %v930_v58, %v6549_v12  ;;  %v939_v61 = vrot.slane %v930_v58, %v6543_v10  ;;  %v1387_v58 = vld [vmem:[#allocation6 + $0x3b0] sm:$0xff] }
 0x29b   :  { %4830 = vmatpush1.bf16.msra.mxu0 %v4829_v3 }
 0x29c   :  { %4832 = vmatprep.subr.bf16.mxu0 %v4831_v4 }
 0x29f   :  { %4834 = vmatpush1.bf16.msra.mxu0 %v4833_v7 }
 0x2a0   :  { %4836 = vmatprep.subr.bf16.mxu0 %v4835_v15 }
 0x2a3   :  { %4838 = vmatpush1.bf16.msra.mxu0 %v4837_v21 }
 0x2a4   :  { %4840 = vmatprep.subr.bf16.mxu0 %v4839_v29 }
 0x2a7   :  { %4842 = vmatpush1.bf16.msra.mxu0 %v4841_v35  ;;  %v4895_v35 = vpack.c.bf16 %v1376_v24, %v1373_v23  ;;  %v1743_v23 = vld [vmem:[#allocation8 + $0x78] sm:$0xff] }
 0x2a8   :  { %4844 = vmatprep.subr.bf16.mxu0 %v4843_v43  ;;  %v1379_v43 = vld [vmem:[#allocation6 + $0x370] sm:$0xff] }
 0x30f   :  { %v4209_v51 = vpop.f32.mrb[8].mxu0 }
 0x310   :  { %v4210_v53 = vpop.f32.mrb[9].mxu0 }
 0x311   :  { %v4211_v20 = vadd.f32 %v4210_v53, %v4209_v51  ;;  %v4851_v53 = vpack.c.bf16 %v1381_v41, %v1378_v40  ;;  %v1744_v41 = vld [vmem:[#allocation8 + $0x80] sm:$0xff] }
 0x313   :  { %v4212_v55 = vpop.f32.mrb[10].mxu0  ;;  %v1174_v6 = vadd.f32 %v4211_v20, %v943_v60  ;;  %v1377_v20 = vld [vmem:[#allocation6 + $0x360] sm:$0xff] }
 0x314   :  { %v4213_v56 = vpop.f32.mrb[11].mxu0 }
 0x315   :  { %v4214_v57 = vadd.f32 %v4213_v56, %v4212_v55  ;;  %v1380_v55 = vld [vmem:[#allocation6 + $0x378] sm:$0xff] }
 0x316   :  { %v1384_v56 = vld [vmem:[#allocation6 + $0x398] sm:$0xff] }
 0x317   :  { %v1179_v2 = vadd.f32 %v4214_v57, %v943_v60  ;;  %v4899_v57 = vpack.c.bf16 %v1382_v46, %v1379_v43  ;;  %v1388_v60 = vld [vmem:[#allocation6 + $0x3b8] sm:$0xff]  ;;  %v1746_v43 = vld [vmem:[#allocation8 + $0x90] sm:$0xff] }
 0x33c   :  { %v1096_v63 = vpop.f32.mrb[12].mxu1 }
 0x33d   :  { %v5635_v3 = vadd.f32 %v1096_v63, %v935_v59  ;;  %v1098_v4 = vpop.f32.mrb[13].mxu1  ;;  %v4377_v5 = vpop.f32.mrb[12].mxu0  ;;  %v1383_v63 = vld [vmem:[#allocation6 + $0x390] sm:$0xff] }
 0x33e   :  { %v5636_v7 = vadd.f32 %v1098_v4, %v939_v61  ;;  %v6744_v11 = vadd.f32 %v4377_v5, %v1179_v2  ;;  %v1248_v13 = vpop.f32.mrb[13].mxu0  ;;  %v1386_v2 = vld [vmem:[#allocation6 + $0x3a8] sm:$0xff]  ;;  %v1731_v5 = vld [vmem:[#allocation8 + $0x18] sm:$0xff] }
 0x33f   :  { %v1257_v14 = vmax.f32 %v5635_v3, 0.0  ;;  %v1249_v15 = vadd.f32 %v1248_v13, %v1174_v6  ;;  %v1729_v3 = vld [vmem:[#allocation8 + $0x8] sm:$0xff]  ;;  %v1735_v6 = vld [vmem:[#allocation8 + $0x38] sm:$0xff] }
 0x340   :  { %v1258_v19 = vmax.f32 %v5636_v7, 0.0  ;;  %v1102_v21 = vpop.f32.mrb[14].mxu1  ;;  %v1733_v4 = vld [vmem:[#allocation8 + $0x28] sm:$0xff]  ;;  %v1262_v7 = vmax.f32 %v6744_v11, 0.0  ;;  %v4989_v11 = vpack.c.bf16 %v1734_v18, %v1730_v17  ;;  %v1771_v17 = vld [vmem:[#allocation8 + $0x158] sm:$0xff] }
 0x341   :  { %v5637_v25 = vadd.f32 %v1102_v21, %v935_v59  ;;  %v1104_v26 = vpop.f32.mrb[15].mxu1  ;;  %v1263_v31 = vadd.f32 %v1257_v14, %v6566_v28  ;;  %v1259_v42 = vmax.f32 %v1249_v15, 0.0  ;;  %v4849_v28 = vpack.c.bf16 %v1374_v38, %v1371_v36  ;;  %v1385_v59 = vld [vmem:[#allocation6 + $0x3a0] sm:$0xff]  ;;  %v1741_v21 = vld [vmem:[#allocation8 + $0x68] sm:$0xff]  ;;  %v1747_v36 = vld [vmem:[#allocation8 + $0x98] sm:$0xff] }
 0x342   :  { %v1264_v27 = vadd.f32 %v1258_v19, %v6568_v32  ;;  %v5638_v29 = vadd.f32 %v1104_v26, %v939_v61  ;;  %v4907_v13 = vpack.c.bf16 %v1733_v4, %v1729_v3  ;;  %v4987_v14 = vpack.c.bf16 %v1735_v6, %v1731_v5  ;;  %v1728_v15 = vld [vmem:[#allocation8] sm:$0xff]  ;;  %v1737_v19 = vld [vmem:[#allocation8 + $0x48] sm:$0xff]  ;;  %v1751_v38 = vld [vmem:[#allocation8 + $0xb8] sm:$0xff] }
 0x343   :  { %v1260_v33 = vmax.f32 %v5637_v25, 0.0  ;;  %v1265_v61 = vadd.f32 %v1259_v42, %v6570_v37  ;;  %v4857_v37 = vpack.c.bf16 %v1386_v2, %v1383_v63  ;;  %v4909_v24 = vpack.c.bf16 %v1732_v16, %v1728_v15  ;;  %v1748_v42 = vld [vmem:[#allocation8 + $0xa0] sm:$0xff]  ;;  %v1763_v63 = vld [vmem:[#allocation8 + $0x118] sm:$0xff]  ;;  %v1769_v15 = vld [vmem:[#allocation8 + $0x148] sm:$0xff] }
 0x344   :  { %v1261_v39 = vmax.f32 %v5638_v29, 0.0  ;;  %1476 = vmatprep.mubr.f32.mxu0 %v1264_v27  ;;  %1630 = vmatprep.mubr.f32.mxu1 %v1264_v27  ;;  %v1268_v25 = vadd.f32 %v1262_v7, %v6593_v54  ;;  %v4911_v26 = vpack.c.bf16 %v1741_v21, %v1737_v19  ;;  %v1736_v27 = vld [vmem:[#allocation8 + $0x40] sm:$0xff]  ;;  %v4995_v46 = vpack.c.bf16 %v1751_v38, %v1747_v36  ;;  %v1767_v2 = vld [vmem:[#allocation8 + $0x138] sm:$0xff]  ;;  %v1762_v7 = vld [vmem:[#allocation8 + $0x110] sm:$0xff] }
 0x345   :  { %1477 = vmatmul.mubr.f32.vlgmr.msra.gmra.mrb[14].mxu0 %v1263_v31  ;;  %1631 = vmatmul.mubr.f32.vlgmr.msra.gmra.mrb[16].mxu1 %v1263_v31  ;;  %v1266_v51 = vadd.f32 %v1260_v33, %v6585_v49  ;;  %v4855_v49 = vpack.c.bf16 %v1387_v58, %v1384_v56  ;;  %v1740_v29 = vld [vmem:[#allocation8 + $0x60] sm:$0xff]  ;;  %v4991_v31 = vpack.c.bf16 %v1743_v23, %v1739_v22  ;;  %v1742_v33 = vld [vmem:[#allocation8 + $0x70] sm:$0xff]  ;;  %v1773_v16 = vld [vmem:[#allocation8 + $0x168] sm:$0xff] }
 0x346   :  { %v1267_v32 = vadd.f32 %v1261_v39, %v6590_v52  ;;  %4846 = vmatpush1.bf16.msra.mxu0 %v4845_v30  ;;  %4894 = vmatpush3.bf16.msra.mxu1 %v4891_v50  ;;  %v4853_v52 = vpack.c.bf16 %v1380_v55, %v1377_v20  ;;  %v4903_v50 = vpack.c.bf16 %v1388_v60, %v1385_v59  ;;  %v1738_v30 = vld [vmem:[#allocation8 + $0x50] sm:$0xff]  ;;  %v1759_v20 = vld [vmem:[#allocation8 + $0xf8] sm:$0xff]  ;;  %v1752_v58 = vld [vmem:[#allocation8 + $0xc0] sm:$0xff] }
 0x347   :  { %4848 = vmatprep.subr.bf16.mxu0 %v4847_v34  ;;  %4896 = vmatprep.subr.bf16.mxu1 %v4895_v35  ;;  %v1745_v34 = vld [vmem:[#allocation8 + $0x88] sm:$0xff]  ;;  %v4913_v54 = vpack.c.bf16 %v1740_v29, %v1736_v27  ;;  %v4993_v39 = vpack.c.bf16 %v1742_v33, %v1738_v30  ;;  %v4917_v55 = vpack.c.bf16 %v1748_v42, %v1744_v41  ;;  %v1756_v59 = vld [vmem:[#allocation8 + $0xe0] sm:$0xff]  ;;  %v1754_v60 = vld [vmem:[#allocation8 + $0xd0] sm:$0xff] }
 0x348   :  { %1482 = vmatprep.mubr.f32.mxu0 %v1267_v32  ;;  %1635 = vmatprep.mubr.f32.mxu1 %v1267_v32  ;;  %v1750_v32 = vld [vmem:[#allocation8 + $0xb0] sm:$0xff]  ;;  %v4921_v3 = vpack.c.bf16 %v1756_v59, %v1752_v58  ;;  %v1760_v6 = vld [vmem:[#allocation8 + $0x100] sm:$0xff]  ;;  %v1775_v18 = vld [vmem:[#allocation8 + $0x178] sm:$0xff]  ;;  %v4927_v22 = vpack.c.bf16 %v1773_v16, %v1769_v15 }
 0x349   :  { %1483 = vmatmul.mubr.f32.gmra.mrb[16].mxu0 %v1266_v51  ;;  %1636 = vmatmul.mubr.f32.gmra.mrb[18].mxu1 %v1266_v51  ;;  %v1757_v51 = vld [vmem:[#allocation8 + $0xe8] sm:$0xff]  ;;  %v4997_v56 = vpack.c.bf16 %v1750_v32, %v1746_v43  ;;  %v1768_v23 = vld [vmem:[#allocation8 + $0x140] sm:$0xff]  ;;  %v1779_v30 = vld [vmem:[#allocation8 + $0x198] sm:$0xff] }
 0x34a   :  { %4850 = vmatpush1.bf16.msra.mxu0 %v4849_v28  ;;  %4898 = vmatpush3.bf16.msra.mxu1 %v4895_v35  ;;  %v1749_v35 = vld [vmem:[#allocation8 + $0xa8] sm:$0xff]  ;;  %v1776_v36 = vld [vmem:[#allocation8 + $0x180] sm:$0xff]  ;;  %v1787_v43 = vld [vmem:[#allocation8 + $0x1d8] sm:$0xff] }
 0x34b   :  { %4394 = vmatprep.mubr.msk.f32.mxu1 %vm493_vm1, %v1265_v61  ;;  %4852 = vmatprep.subr.bf16.mxu0 %v4851_v53  ;;  %v4915_v40 = vpack.c.bf16 %v1749_v35, %v1745_v34  ;;  %v1753_v28 = vld [vmem:[#allocation8 + $0xc8] sm:$0xff]  ;;  %v1755_v53 = vld [vmem:[#allocation8 + $0xd8] sm:$0xff]  ;;  %v1780_v38 = vld [vmem:[#allocation8 + $0x1a0] sm:$0xff] }
 0x34c   :  { %4900 = vmatprep.subr.bf16.mxu1 %v4899_v57  ;;  %1553 = vmatprep.mubr.f32.mxu0 %v5968_v1  ;;  %v1777_v27 = vld [vmem:[#allocation8 + $0x188] sm:$0xff]  ;;  %v4933_v32 = vpack.c.bf16 %v1780_v38, %v1776_v36  ;;  %v1814_v36 = vld [vmem:[#allocation8 + $0x2b0] sm:$0xff] }
 0x34d   :  { %v1781_v29 = vld [vmem:[#allocation8 + $0x1a8] sm:$0xff] }
 0x34e   :  { %4854 = vmatpush1.bf16.msra.mxu0 %v4853_v52  ;;  %4902 = vmatpush3.bf16.msra.mxu1 %v4899_v57  ;;  %v4919_v57 = vpack.c.bf16 %v1757_v51, %v1753_v28  ;;  %v1758_v52 = vld [vmem:[#allocation8 + $0xf0] sm:$0xff]  ;;  %v4931_v35 = vpack.c.bf16 %v1781_v29, %v1777_v27  ;;  %v1785_v41 = vld [vmem:[#allocation8 + $0x1c8] sm:$0xff] }
 0x34f   :  { %4856 = vmatprep.subr.bf16.mxu0 %v4855_v49  ;;  %4904 = vmatprep.subr.bf16.mxu1 %v4903_v50  ;;  %v1761_v49 = vld [vmem:[#allocation8 + $0x108] sm:$0xff]  ;;  %v5001_v4 = vpack.c.bf16 %v1758_v52, %v1754_v60  ;;  %v1795_v60 = vld [vmem:[#allocation8 + $0x218] sm:$0xff] }
 0x350   :  { %v1789_v42 = vld [vmem:[#allocation8 + $0x1e8] sm:$0xff] }
 0x351   :  { %v4935_v51 = vpack.c.bf16 %v1789_v42, %v1785_v41  ;;  %v1793_v58 = vld [vmem:[#allocation8 + $0x208] sm:$0xff]  ;;  %v1823_v42 = vld [vmem:[#allocation8 + $0x2f8] sm:$0xff] }
 0x352   :  { %4858 = vmatpush1.bf16.msra.mxu0 %v4857_v37  ;;  %4906 = vmatpush3.bf16.msra.mxu1 %v4903_v50  ;;  %v1765_v50 = vld [vmem:[#allocation8 + $0x128] sm:$0xff]  ;;  %v1764_v37 = vld [vmem:[#allocation8 + $0x120] sm:$0xff] }
 0x353   :  { %4908 = vmatprep.subr.bf16.mxu1 %v4907_v13  ;;  %4988 = vmatprep.subr.bf16.mxu0 %v4987_v14  ;;  %v4923_v5 = vpack.c.bf16 %v1765_v50, %v1761_v49  ;;  %v5003_v13 = vpack.c.bf16 %v1767_v2, %v1763_v63  ;;  %v1766_v14 = vld [vmem:[#allocation8 + $0x130] sm:$0xff]  ;;  %v4925_v19 = vpack.c.bf16 %v1764_v37, %v1760_v6  ;;  %v1797_v59 = vld [vmem:[#allocation8 + $0x228] sm:$0xff]  ;;  %v1792_v63 = vld [vmem:[#allocation8 + $0x200] sm:$0xff] }
 0x354   :  { %v5005_v21 = vpack.c.bf16 %v1766_v14, %v1762_v7  ;;  %v4939_v50 = vpack.c.bf16 %v1797_v59, %v1793_v58  ;;  %v1796_v2 = vld [vmem:[#allocation8 + $0x220] sm:$0xff]  ;;  %v1801_v6 = vld [vmem:[#allocation8 + $0x248] sm:$0xff]  ;;  %v1803_v7 = vld [vmem:[#allocation8 + $0x258] sm:$0xff] }
 0x355   :  { %4075 = vmatmul.mubr.msk.f32.vlgmr.msra.gmra.mrb[14].mxu0 %vm493_vm1, %v1265_v61  ;;  %4395 = vmatmul.mubr.msk.f32.vlgmr.msra.gmra.mrb[20].mxu1 %vm493_vm1, %v1268_v25  ;;  %v4999_v61 = vpack.c.bf16 %v1759_v20, %v1755_v53  ;;  %v1784_v53 = vld [vmem:[#allocation8 + $0x1c0] sm:$0xff]  ;;  %v1805_v37 = vld [vmem:[#allocation8 + $0x268] sm:$0xff]  ;;  %v4941_v14 = vpack.c.bf16 %v1796_v2, %v1792_v63  ;;  %v1831_v59 = vld [vmem:[#allocation8 + $0x338] sm:$0xff] }
 0x356   :  { %1559 = vmatprep.mubr.f32.mxu0 %v5968_v1  ;;  %4910 = vmatpush1.bf16.msra.mxu1 %v4909_v24  ;;  %v1772_v24 = vld [vmem:[#allocation8 + $0x160] sm:$0xff]  ;;  %v4943_v16 = vpack.c.bf16 %v1805_v37, %v1801_v6  ;;  %v1830_v63 = vld [vmem:[#allocation8 + $0x330] sm:$0xff]  ;;  %v1833_v2 = vld [vmem:[#allocation8 + $0x348] sm:$0xff] }
 0x357   :  { %4990 = vmatpush1.bf16.msra.mxu0 %v4989_v11  ;;  %4912 = vmatprep.subr.bf16.mxu1 %v4911_v26  ;;  %v5007_v11 = vpack.c.bf16 %v1775_v18, %v1771_v17  ;;  %v1774_v26 = vld [vmem:[#allocation8 + $0x170] sm:$0xff]  ;;  %v4929_v33 = vpack.c.bf16 %v1772_v24, %v1768_v23  ;;  %v1788_v20 = vld [vmem:[#allocation8 + $0x1e0] sm:$0xff]  ;;  %v1809_v23 = vld [vmem:[#allocation8 + $0x288] sm:$0xff] }
 0x358   :  { %4992 = vmatprep.subr.bf16.mxu0 %v4991_v31  ;;  %v1783_v31 = vld [vmem:[#allocation8 + $0x1b8] sm:$0xff]  ;;  %v4937_v52 = vpack.c.bf16 %v1788_v20, %v1784_v53  ;;  %v1800_v17 = vld [vmem:[#allocation8 + $0x240] sm:$0xff]  ;;  %v1813_v24 = vld [vmem:[#allocation8 + $0x2a8] sm:$0xff] }
 0x359   :  { %4076 = vmatmul.mubr.msk.f32.gmra.mrb[16].mxu0 %vm493_vm1, %v1268_v25  ;;  %v1770_v25 = vld [vmem:[#allocation8 + $0x150] sm:$0xff]  ;;  %v1804_v18 = vld [vmem:[#allocation8 + $0x260] sm:$0xff]  ;;  %v4947_v29 = vpack.c.bf16 %v1813_v24, %v1809_v23  ;;  %v1839_v6 = vld [vmem:[#allocation8 + $0x378] sm:$0xff] }
 0x35a   :  { %4914 = vmatpush1.bf16.msra.mxu1 %v4913_v54  ;;  %v5009_v34 = vpack.c.bf16 %v1774_v26, %v1770_v25  ;;  %v1778_v54 = vld [vmem:[#allocation8 + $0x190] sm:$0xff]  ;;  %v1811_v25 = vld [vmem:[#allocation8 + $0x298] sm:$0xff]  ;;  %v4945_v26 = vpack.c.bf16 %v1804_v18, %v1800_v17 }
 0x35b   :  { %4994 = vmatpush1.bf16.msra.mxu0 %v4993_v39  ;;  %4916 = vmatprep.subr.bf16.mxu1 %v4915_v40  ;;  %v5011_v39 = vpack.c.bf16 %v1783_v31, %v1779_v30  ;;  %v1782_v40 = vld [vmem:[#allocation8 + $0x1b0] sm:$0xff]  ;;  %v1808_v31 = vld [vmem:[#allocation8 + $0x280] sm:$0xff]  ;;  %v1847_v24 = vld [vmem:[#allocation8 + $0x3b8] sm:$0xff] }
 0x35c   :  { %4996 = vmatprep.subr.bf16.mxu0 %v4995_v46  ;;  %v1791_v46 = vld [vmem:[#allocation8 + $0x1f8] sm:$0xff]  ;;  %v5013_v28 = vpack.c.bf16 %v1782_v40, %v1778_v54  ;;  %v1817_v54 = vld [vmem:[#allocation8 + $0x2c8] sm:$0xff]  ;;  %v1822_v53 = vld [vmem:[#allocation8 + $0x2f0] sm:$0xff] }
 0x35d   :  { %v1819_v40 = vld [vmem:[#allocation8 + $0x2d8] sm:$0xff]  ;;  %v1838_v17 = vld [vmem:[#allocation8 + $0x370] sm:$0xff] }
 0x35e   :  { %4918 = vmatpush1.bf16.msra.mxu1 %v4917_v55  ;;  %v1786_v55 = vld [vmem:[#allocation8 + $0x1d0] sm:$0xff] }
 0x35f   :  { %4998 = vmatpush1.bf16.msra.mxu0 %v4997_v56  ;;  %4920 = vmatprep.subr.bf16.mxu1 %v4919_v57  ;;  %v5015_v56 = vpack.c.bf16 %v1791_v46, %v1787_v43  ;;  %v1790_v57 = vld [vmem:[#allocation8 + $0x1f0] sm:$0xff]  ;;  %v1816_v43 = vld [vmem:[#allocation8 + $0x2c0] sm:$0xff] }
 0x360   :  { %5000 = vmatprep.subr.bf16.mxu0 %v4999_v61  ;;  %v1799_v61 = vld [vmem:[#allocation8 + $0x238] sm:$0xff]  ;;  %v5017_v49 = vpack.c.bf16 %v1790_v57, %v1786_v55  ;;  %v1820_v46 = vld [vmem:[#allocation8 + $0x2e0] sm:$0xff]  ;;  %v1825_v55 = vld [vmem:[#allocation8 + $0x308] sm:$0xff] }
 0x361   :  { %v1827_v57 = vld [vmem:[#allocation8 + $0x318] sm:$0xff] }
 0x362   :  { %4922 = vmatpush1.bf16.msra.mxu1 %v4921_v3  ;;  %v1794_v3 = vld [vmem:[#allocation8 + $0x210] sm:$0xff] }
 0x363   :  { %5002 = vmatpush1.bf16.msra.mxu0 %v5001_v4  ;;  %4924 = vmatprep.subr.bf16.mxu1 %v4923_v5  ;;  %v5019_v4 = vpack.c.bf16 %v1799_v61, %v1795_v60  ;;  %v1798_v5 = vld [vmem:[#allocation8 + $0x230] sm:$0xff]  ;;  %v1824_v60 = vld [vmem:[#allocation8 + $0x300] sm:$0xff] }
 0x364   :  { %5004 = vmatprep.subr.bf16.mxu0 %v5003_v13  ;;  %v1807_v13 = vld [vmem:[#allocation8 + $0x278] sm:$0xff]  ;;  %v5021_v15 = vpack.c.bf16 %v1798_v5, %v1794_v3  ;;  %v1828_v61 = vld [vmem:[#allocation8 + $0x320] sm:$0xff] }
 0x365   :  { %v1835_v5 = vld [vmem:[#allocation8 + $0x358] sm:$0xff] }
 0x366   :  { %4926 = vmatpush1.bf16.msra.mxu1 %v4925_v19  ;;  %v1802_v19 = vld [vmem:[#allocation8 + $0x250] sm:$0xff] }
 0x367   :  { %5006 = vmatpush1.bf16.msra.mxu0 %v5005_v21  ;;  %4928 = vmatprep.subr.bf16.mxu1 %v4927_v22  ;;  %v5023_v21 = vpack.c.bf16 %v1807_v13, %v1803_v7  ;;  %v1806_v22 = vld [vmem:[#allocation8 + $0x270] sm:$0xff]  ;;  %v5039_v7 = vpack.c.bf16 %v1839_v6, %v1835_v5  ;;  %v1832_v13 = vld [vmem:[#allocation8 + $0x340] sm:$0xff] }
 0x368   :  { %5008 = vmatprep.subr.bf16.mxu0 %v5007_v11  ;;  %v1815_v11 = vld [vmem:[#allocation8 + $0x2b8] sm:$0xff]  ;;  %v5025_v27 = vpack.c.bf16 %v1806_v22, %v1802_v19  ;;  %v1841_v19 = vld [vmem:[#allocation8 + $0x388] sm:$0xff] }
 0x369   :  { %v5027_v30 = vpack.c.bf16 %v1815_v11, %v1811_v25  ;;  %v1843_v22 = vld [vmem:[#allocation8 + $0x398] sm:$0xff]  ;;  %v1840_v25 = vld [vmem:[#allocation8 + $0x380] sm:$0xff] }
 0x36a   :  { %4930 = vmatpush1.bf16.msra.mxu1 %v4929_v33  ;;  %v1812_v33 = vld [vmem:[#allocation8 + $0x2a0] sm:$0xff] }
 0x36b   :  { %5010 = vmatpush1.bf16.msra.mxu0 %v5009_v34  ;;  %4932 = vmatprep.subr.bf16.mxu1 %v4931_v35  ;;  %v1810_v34 = vld [vmem:[#allocation8 + $0x290] sm:$0xff]  ;;  %v4949_v35 = vpack.c.bf16 %v1812_v33, %v1808_v31  ;;  %v1844_v11 = vld [vmem:[#allocation8 + $0x3a0] sm:$0xff]  ;;  %v1849_v33 = vld [vmem:[#allocation8 + $0x3c8] sm:$0xff] }
 0x36c   :  { %5012 = vmatprep.subr.bf16.mxu0 %v5011_v39  ;;  %v5029_v38 = vpack.c.bf16 %v1814_v36, %v1810_v34  ;;  %v1821_v39 = vld [vmem:[#allocation8 + $0x2e8] sm:$0xff] }
 0x36d   :  { %v4951_v41 = vpack.c.bf16 %v1821_v39, %v1817_v54  ;;  %v1853_v34 = vld [vmem:[#allocation8 + $0x3e8] sm:$0xff]  ;;  %v1848_v54 = vld [vmem:[#allocation8 + $0x3c0] sm:$0xff] }
 0x36e   :  { %4934 = vmatpush1.bf16.msra.mxu1 %v4933_v32  ;;  %v5031_v32 = vpack.c.bf16 %v1823_v42, %v1819_v40  ;;  %v4967_v36 = vpack.c.bf16 %v1853_v34, %v1849_v33  ;;  %v1852_v39 = vld [vmem:[#allocation8 + $0x3e0] sm:$0xff]  ;;  %v1850_v42 = vld [vmem:[#allocation8 + $0x3d0] sm:$0xff]  ;;  %v1867_v33 = vld [vmem:[#allocation8 + $0x458] sm:$0xff] }
 0x36f   :  { %5014 = vmatpush1.bf16.msra.mxu0 %v5013_v28  ;;  %4936 = vmatprep.subr.bf16.mxu1 %v4935_v51  ;;  %v4953_v28 = vpack.c.bf16 %v1820_v46, %v1816_v43  ;;  %v1818_v51 = vld [vmem:[#allocation8 + $0x2d0] sm:$0xff]  ;;  %v1871_v34 = vld [vmem:[#allocation8 + $0x478] sm:$0xff] }
 0x370   :  { %5016 = vmatprep.subr.bf16.mxu0 %v5015_v56  ;;  %v5033_v20 = vpack.c.bf16 %v1822_v53, %v1818_v51  ;;  %v1829_v56 = vld [vmem:[#allocation8 + $0x328] sm:$0xff]  ;;  %v1854_v43 = vld [vmem:[#allocation8 + $0x3f0] sm:$0xff]  ;;  %v1859_v51 = vld [vmem:[#allocation8 + $0x418] sm:$0xff] }
 0x371   :  { %v4955_v58 = vpack.c.bf16 %v1829_v56, %v1825_v55  ;;  %v5049_v46 = vpack.c.bf16 %v1854_v43, %v1850_v42  ;;  %v6762_v56 = vld [vmem:[%s7419_s14] sm:$0x3] }
 0x372   :  { %4938 = vmatpush1.bf16.msra.mxu1 %v4937_v52  ;;  %v5035_v52 = vpack.c.bf16 %v1831_v59, %v1827_v57  ;;  %v5969_v57 = vmov 0   ;;  %vm2459_vm2 = vcmp.gt.s32.totalorder %v6762_v56, 0  ;;  %vm2652_vm3 = vcmp.gt.s32.totalorder %v6762_v56, 1  ;;  %v1868_v42 = vld [vmem:[#allocation8 + $0x460] sm:$0xff] }
 0x373   :  { %5018 = vmatpush1.bf16.msra.mxu0 %v5017_v49  ;;  %4940 = vmatprep.subr.bf16.mxu1 %v4939_v50  ;;  %v4957_v49 = vpack.c.bf16 %v1828_v61, %v1824_v60  ;;  %v1826_v50 = vld [vmem:[#allocation8 + $0x310] sm:$0xff]  ;;  %v2653_v59 = vsel %vm2652_vm3, 1, %v5969_v57  ;;  %vm3234_vm4 = vcmp.gt.s32.totalorder %v6762_v56, 4  ;;  %vm3626_vm5 = vcmp.gt.s32.totalorder %v6762_v56, 6 }
 0x374   :  { %5020 = vmatprep.subr.bf16.mxu0 %v5019_v4  ;;  %v5037_v3 = vpack.c.bf16 %v1830_v63, %v1826_v50  ;;  %v1837_v4 = vld [vmem:[#allocation8 + $0x368] sm:$0xff]  ;;  %5681 = vset.pattern.permute.xlu0 %v5969_v57  ;;  %v3235_v60 = vsel %vm3234_vm4, 1, %v5969_v57  ;;  %v3627_v61 = vsel %vm3626_vm5, 1, %v5969_v57  ;;  %vm2851_vm7 = vcmp.gt.s32.totalorder %v6762_v56, 2 }
 0x375   :  { %v4959_v37 = vpack.c.bf16 %v1837_v4, %v1833_v2  ;;  %5682 = vset.pattern.permute.xlu1 %v5969_v57  ;;  %v1389_v4 = vld [vmem:[%s7402_s9] sm:$0x7]  ;;  %vm3050_vm8 = vcmp.gt.s32.totalorder %v6762_v56, 3  ;;  %vm3427_vm9 = vcmp.gt.s32.totalorder %v6762_v56, 5  ;;  %vm3825_vm10 = vcmp.gt.s32.totalorder %v6762_v56, 7 }
 0x376   :  { %4942 = vmatpush1.bf16.msra.mxu1 %v4941_v14  ;;  %v1836_v14 = vld [vmem:[#allocation8 + $0x360] sm:$0xff]  ;;  %v1402_v5 = vrot.slane %v1389_v4, %v6549_v12  ;;  %v1394_v6 = vrot.slane %v1389_v4, %v6540_v9  ;;  %vm3928_vm3 = vcmask 214016   ;;  %vm4040_vm4 = vcmask 1024  }
 0x377   :  { %5022 = vmatpush1.bf16.msra.mxu0 %v5021_v15  ;;  %4944 = vmatprep.subr.bf16.mxu1 %v4943_v16  ;;  %v1834_v15 = vld [vmem:[#allocation8 + $0x350] sm:$0xff]  ;;  %v4961_v16 = vpack.c.bf16 %v1836_v14, %v1832_v13 }
 0x378   :  { %5024 = vmatprep.subr.bf16.mxu0 %v5023_v21  ;;  %v5041_v18 = vpack.c.bf16 %v1838_v17, %v1834_v15  ;;  %v1845_v21 = vld [vmem:[#allocation8 + $0x3a8] sm:$0xff] }
 0x379   :  { %v4963_v23 = vpack.c.bf16 %v1845_v21, %v1841_v19 }
 0x37a   :  { %4946 = vmatpush1.bf16.msra.mxu1 %v4945_v26  ;;  %v5043_v26 = vpack.c.bf16 %v1847_v24, %v1843_v22  ;;  %v1860_v24 = vld [vmem:[#allocation8 + $0x420] sm:$0xff] }
 0x37b   :  { %5026 = vmatpush1.bf16.msra.mxu0 %v5025_v27  ;;  %4948 = vmatprep.subr.bf16.mxu1 %v4947_v29  ;;  %v4965_v27 = vpack.c.bf16 %v1844_v11, %v1840_v25  ;;  %v1842_v29 = vld [vmem:[#allocation8 + $0x390] sm:$0xff] }
 0x37c   :  { %5028 = vmatprep.subr.bf16.mxu0 %v5027_v30  ;;  %v1846_v30 = vld [vmem:[#allocation8 + $0x3b0] sm:$0xff] }
 0x37d   :  { %v5045_v31 = vpack.c.bf16 %v1846_v30, %v1842_v29  ;;  %v1858_v11 = vld [vmem:[#allocation8 + $0x410] sm:$0xff] }
 0x37e   :  { %4950 = vmatpush1.bf16.msra.mxu1 %v4949_v35  ;;  %v1851_v35 = vld [vmem:[#allocation8 + $0x3d8] sm:$0xff] }
 0x37f   :  { %5030 = vmatpush1.bf16.msra.mxu0 %v5029_v38  ;;  %4952 = vmatprep.subr.bf16.mxu1 %v4951_v41  ;;  %v1855_v38 = vld [vmem:[#allocation8 + $0x3f8] sm:$0xff]  ;;  %v4969_v41 = vpack.c.bf16 %v1852_v39, %v1848_v54 }
 0x380   :  { %5032 = vmatprep.subr.bf16.mxu0 %v5031_v32  ;;  %v5047_v40 = vpack.c.bf16 %v1855_v38, %v1851_v35  ;;  %v1857_v32 = vld [vmem:[#allocation8 + $0x408] sm:$0xff] }
 0x382   :  { %4954 = vmatpush1.bf16.msra.mxu1 %v4953_v28  ;;  %v1861_v28 = vld [vmem:[#allocation8 + $0x428] sm:$0xff] }
 0x383   :  { %5034 = vmatpush1.bf16.msra.mxu0 %v5033_v20  ;;  %4956 = vmatprep.subr.bf16.mxu1 %v4955_v58  ;;  %v4971_v53 = vpack.c.bf16 %v1861_v28, %v1857_v32  ;;  %v1863_v20 = vld [vmem:[#allocation8 + $0x438] sm:$0xff]  ;;  %v2460_v58 = vsel %vm2459_vm2, 1, %v5969_v57  ;;  %v5055_v28 = vpack.c.bf16 %v1871_v34, %v1867_v33  ;;  %v2228_v33 = vld [vmem:[#allocation9 + $0x20] sm:$0xff]  ;;  %v2226_v34 = vld [vmem:[#allocation9 + $0x10] sm:$0xff] }
 0x384   :  { %5036 = vmatprep.subr.bf16.mxu0 %v5035_v52  ;;  %v5051_v55 = vpack.c.bf16 %v1863_v20, %v1859_v51  ;;  %2462 = vperm.xlu0 %5681, %v2460_v58   ;;  %v1866_v51 = vld [vmem:[#allocation8 + $0x450] sm:$0xff]  ;;  %v1873_v20 = vld [vmem:[#allocation8 + $0x488] sm:$0xff] }
 0x385   :  { %v1877_v58 = vld [vmem:[#allocation8 + $0x4a8] sm:$0xff] }
 0x386   :  { %4958 = vmatpush1.bf16.msra.mxu1 %v4957_v49 }
 0x387   :  { %5038 = vmatpush1.bf16.msra.mxu0 %v5037_v3  ;;  %4960 = vmatprep.subr.bf16.mxu1 %v4959_v37  ;;  %v1398_v37 = vrot.slane %v1389_v4, %v6543_v10  ;;  %v1878_v4 = vld [vmem:[#allocation8 + $0x4b0] sm:$0xff] }
 0x388   :  { %5040 = vmatprep.subr.bf16.mxu0 %v5039_v7  ;;  %2655 = vperm.xlu0 %5681, %v2653_v59   ;;  %v1875_v59 = vld [vmem:[#allocation8 + $0x498] sm:$0xff] }
 0x38a   :  { %4962 = vmatpush1.bf16.msra.mxu1 %v4961_v16 }
 0x38b   :  { %5042 = vmatpush1.bf16.msra.mxu0 %v5041_v18  ;;  %4964 = vmatprep.subr.bf16.mxu1 %v4963_v23  ;;  %v1856_v23 = vld [vmem:[#allocation8 + $0x400] sm:$0xff] }
 0x38c   :  { %5044 = vmatprep.subr.bf16.mxu0 %v5043_v26  ;;  %3237 = vperm.xlu0 %5681, %v3235_v60   ;;  %v1862_v26 = vld [vmem:[#allocation8 + $0x430] sm:$0xff]  ;;  %v4973_v39 = vpack.c.bf16 %v1860_v24, %v1856_v23  ;;  %v1879_v60 = vld [vmem:[#allocation8 + $0x4b8] sm:$0xff]  ;;  %v2229_v23 = vld [vmem:[#allocation9 + $0x28] sm:$0xff] }
 0x38d   :  { %v2227_v24 = vld [vmem:[#allocation9 + $0x18] sm:$0xff] }
 0x38e   :  { %4966 = vmatpush1.bf16.msra.mxu1 %v4965_v27  ;;  %v1865_v27 = vld [vmem:[#allocation8 + $0x448] sm:$0xff] }
 0x38f   :  { %5046 = vmatpush1.bf16.msra.mxu0 %v5045_v31  ;;  %4968 = vmatprep.subr.bf16.mxu1 %v4967_v36  ;;  %v1869_v31 = vld [vmem:[#allocation8 + $0x468] sm:$0xff] }
 0x390   :  { %5048 = vmatprep.subr.bf16.mxu0 %v5047_v40  ;;  %3629 = vperm.xlu0 %5681, %v3627_v61   ;;  %v5053_v40 = vpack.c.bf16 %v1862_v26, %v1858_v11  ;;  %v4975_v32 = vpack.c.bf16 %v1869_v31, %v1865_v27  ;;  %v2224_v27 = vld [vmem:[#allocation9] sm:$0xff] }
 0x392   :  { %4970 = vmatpush1.bf16.msra.mxu1 %v4969_v41  ;;  %v1864_v41 = vld [vmem:[#allocation8 + $0x440] sm:$0xff] }
 0x393   :  { %5050 = vmatpush1.bf16.msra.mxu0 %v5049_v46  ;;  %4972 = vmatprep.subr.bf16.mxu1 %v4971_v53  ;;  %v1870_v53 = vld [vmem:[#allocation8 + $0x470] sm:$0xff]  ;;  %v4977_v61 = vpack.c.bf16 %v1868_v42, %v1864_v41  ;;  %v2236_v42 = vld [vmem:[#allocation9 + $0x60] sm:$0xff] }
 0x394   :  { %5052 = vmatprep.subr.bf16.mxu0 %v5051_v55 }
 0x418   :  { %v4257_v52 = vpop.f32.mrb[16].mxu1 }
 0x419   :  { %v4258_v49 = vpop.f32.mrb[17].mxu1 }
 0x41a   :  { %v4259_v50 = vadd.f32 %v4258_v49, %v4257_v52  ;;  %v1872_v52 = vld [vmem:[#allocation8 + $0x480] sm:$0xff] }
 0x41b   :  { %v1876_v49 = vld [vmem:[#allocation8 + $0x4a0] sm:$0xff] }
 0x41c   :  { %v4260_v63 = vpop.f32.mrb[18].mxu1  ;;  %v1633_v15 = vadd.f32 %v4259_v50, %v1402_v5 }
 0x41d   :  { %v4261_v2 = vpop.f32.mrb[19].mxu1 }
 0x41e   :  { %v4262_v3 = vadd.f32 %v4261_v2, %v4260_v63  ;;  %v4979_v63 = vpack.c.bf16 %v1877_v58, %v1873_v20  ;;  %v5059_v2 = vpack.c.bf16 %v1879_v60, %v1875_v59  ;;  %v2243_v58 = vld [vmem:[#allocation9 + $0x98] sm:$0xff]  ;;  %v2240_v60 = vld [vmem:[#allocation9 + $0x80] sm:$0xff] }
 0x41f   :  { %v2247_v59 = vld [vmem:[#allocation9 + $0xb8] sm:$0xff] }
 0x420   :  { %v1638_v7 = vadd.f32 %v4262_v3, %v1402_v5  ;;  %v1874_v3 = vld [vmem:[#allocation8 + $0x490] sm:$0xff]  ;;  %v1881_v5 = vld [vmem:[#allocation8 + $0x4c8] sm:$0xff] }
 0x428   :  { %v1555_v13 = vpop.f32.mrb[14].mxu0  ;;  %v4396_v14 = vpop.f32.mrb[20].mxu1 }
 0x429   :  { %v5639_v16 = vadd.f32 %v1555_v13, %v1394_v6  ;;  %v6780_v17 = vadd.f32 %v4396_v14, %v1638_v7  ;;  %v1557_v18 = vpop.f32.mrb[15].mxu0  ;;  %v1707_v19 = vpop.f32.mrb[21].mxu1  ;;  %v4981_v7 = vpack.c.bf16 %v1876_v49, %v1872_v52  ;;  %v5061_v13 = vpack.c.bf16 %v1878_v4, %v1874_v3  ;;  %v1880_v14 = vld [vmem:[#allocation8 + $0x4c0] sm:$0xff]  ;;  %v2242_v49 = vld [vmem:[#allocation9 + $0x90] sm:$0xff]  ;;  %v2251_v3 = vld [vmem:[#allocation9 + $0xd8] sm:$0xff] }
 0x42a   :  { %v5640_v21 = vadd.f32 %v1557_v18, %v1398_v37  ;;  %v6782_v22 = vadd.f32 %v1707_v19, %v1633_v15  ;;  %v1882_v18 = vld [vmem:[#allocation8 + $0x4d0] sm:$0xff]  ;;  %v6820_v52 = vpack.c.bf16 %v2247_v59, %v2243_v58  ;;  %v2255_v4 = vld [vmem:[#allocation9 + $0xf8] sm:$0xff] }
 0x42b   :  { %v1716_v25 = vmax.f32 %v5639_v16, 0.0  ;;  %v1886_v19 = vld [vmem:[#allocation8 + $0x4f0] sm:$0xff] }
 0x42c   :  { %v1717_v29 = vmax.f32 %v5640_v21, 0.0  ;;  %v1561_v30 = vpop.f32.mrb[16].mxu0  ;;  %v2225_v21 = vld [vmem:[#allocation9 + $0x8] sm:$0xff]  ;;  %v5065_v26 = vpack.c.bf16 %v1886_v19, %v1882_v18  ;;  %v2263_v18 = vld [vmem:[#allocation9 + $0x138] sm:$0xff] }
 0x42d   :  { %v5641_v35 = vadd.f32 %v1561_v30, %v1394_v6  ;;  %v1563_v36 = vpop.f32.mrb[17].mxu0  ;;  %v1722_v43 = vadd.f32 %v1716_v25, %v6708_v48  ;;  %v5057_v48 = vpack.c.bf16 %v1870_v53, %v1866_v51  ;;  %v1885_v6 = vld [vmem:[#allocation8 + $0x4e8] sm:$0xff]  ;;  %v2231_v25 = vld [vmem:[#allocation9 + $0x38] sm:$0xff]  ;;  %v6791_v30 = vpack.c.bf16 %v2229_v23, %v2225_v21  ;;  %v2256_v23 = vld [vmem:[#allocation9 + $0x100] sm:$0xff] }
 0x42e   :  { %v1723_v38 = vadd.f32 %v1717_v29, %v6706_v45  ;;  %v5642_v54 = vadd.f32 %v1563_v36, %v1398_v37  ;;  %v1883_v37 = vld [vmem:[#allocation8 + $0x4d8] sm:$0xff]  ;;  %v4983_v15 = vpack.c.bf16 %v1885_v6, %v1881_v5  ;;  %v1718_v29 = vmax.f32 %v6782_v22, 0.0  ;;  %v2233_v36 = vld [vmem:[#allocation9 + $0x48] sm:$0xff]  ;;  %v2232_v22 = vld [vmem:[#allocation9 + $0x40] sm:$0xff] }
 0x42f   :  { %v1719_v46 = vmax.f32 %v5641_v35, 0.0  ;;  %v6793_v31 = vpack.c.bf16 %v2231_v25, %v2227_v24  ;;  %v2230_v35 = vld [vmem:[#allocation9 + $0x30] sm:$0xff]  ;;  %v2241_v51 = vld [vmem:[#allocation9 + $0x88] sm:$0xff]  ;;  %v2248_v6 = vld [vmem:[#allocation9 + $0xc0] sm:$0xff] }
 0x430   :  { %v1720_v55 = vmax.f32 %v5642_v54, 0.0  ;;  %1980 = vmatprep.mubr.f32.mxu1 %v1723_v38  ;;  %2134 = vmatprep.mubr.f32.mxu0 %v1723_v38  ;;  %v2237_v38 = vld [vmem:[#allocation9 + $0x68] sm:$0xff]  ;;  %v2235_v54 = vld [vmem:[#allocation9 + $0x58] sm:$0xff]  ;;  %v6797_v41 = vpack.c.bf16 %v2230_v35, %v2226_v34  ;;  %v2260_v24 = vld [vmem:[#allocation9 + $0x120] sm:$0xff] }
 0x431   :  { %1981 = vmatmul.mubr.f32.vlgmr.msra.gmra.mrb[22].mxu1 %v1722_v43  ;;  %2135 = vmatmul.mubr.f32.vlgmr.msra.gmra.mrb[18].mxu0 %v1722_v43  ;;  %v1725_v50 = vadd.f32 %v1719_v46, %v6716_v0  ;;  %v1884_v0 = vld [vmem:[#allocation8 + $0x4e0] sm:$0xff]  ;;  %v1721_v43 = vmax.f32 %v6780_v17, 0.0  ;;  %v1724_v46 = vadd.f32 %v1718_v29, %v6725_v44  ;;  %v6803_v53 = vpack.c.bf16 %v2237_v38, %v2233_v36  ;;  %v2265_v29 = vld [vmem:[#allocation9 + $0x148] sm:$0xff]  ;;  %v2267_v34 = vld [vmem:[#allocation9 + $0x158] sm:$0xff] }
 0x432   :  { %v1726_v45 = vadd.f32 %v1720_v55, %v6714_v62  ;;  %4974 = vmatpush1.bf16.msra.mxu1 %v4973_v39  ;;  %5054 = vmatpush1.bf16.msra.mxu0 %v5053_v40  ;;  %v1887_v62 = vld [vmem:[#allocation8 + $0x4f8] sm:$0xff]  ;;  %v4985_v11 = vpack.c.bf16 %v1884_v0, %v1880_v14  ;;  %v6795_v40 = vpack.c.bf16 %v2228_v33, %v2224_v27  ;;  %v2245_v55 = vld [vmem:[#allocation9 + $0xa8] sm:$0xff]  ;;  %v2254_v14 = vld [vmem:[#allocation9 + $0xf0] sm:$0xff] }
 0x433   :  { %4976 = vmatprep.subr.bf16.mxu1 %v4975_v32  ;;  %5056 = vmatprep.subr.bf16.mxu0 %v5055_v28  ;;  %v5063_v16 = vpack.c.bf16 %v1887_v62, %v1883_v37  ;;  %v2239_v39 = vld [vmem:[#allocation9 + $0x78] sm:$0xff]  ;;  %v2234_v32 = vld [vmem:[#allocation9 + $0x50] sm:$0xff]  ;;  %v6811_v44 = vpack.c.bf16 %v2236_v42, %v2232_v22  ;;  %v2252_v37 = vld [vmem:[#allocation9 + $0xe0] sm:$0xff]  ;;  %v6854_v36 = vpack.c.bf16 %v2260_v24, %v2256_v23 }
 0x434   :  { %1986 = vmatprep.mubr.f32.mxu1 %v1726_v45  ;;  %2140 = vmatprep.mubr.f32.mxu0 %v1726_v45  ;;  %v2238_v28 = vld [vmem:[#allocation9 + $0x70] sm:$0xff]  ;;  %v6805_v20 = vpack.c.bf16 %v2239_v39, %v2235_v54  ;;  %v2244_v45 = vld [vmem:[#allocation9 + $0xa0] sm:$0xff]  ;;  %v2257_v0 = vld [vmem:[#allocation9 + $0x108] sm:$0xff]  ;;  %v6842_v19 = vpack.c.bf16 %v2252_v37, %v2248_v6 }
 0x435   :  { %1987 = vmatmul.mubr.f32.gmra.mrb[24].mxu1 %v1725_v50  ;;  %2141 = vmatmul.mubr.f32.gmra.mrb[20].mxu0 %v1725_v50  ;;  %v6813_v17 = vpack.c.bf16 %v2238_v28, %v2234_v32  ;;  %v2246_v50 = vld [vmem:[#allocation9 + $0xb0] sm:$0xff]  ;;  %v2269_v33 = vld [vmem:[#allocation9 + $0x168] sm:$0xff]  ;;  %v2271_v35 = vld [vmem:[#allocation9 + $0x178] sm:$0xff] }
 0x436   :  { %4978 = vmatpush1.bf16.msra.mxu1 %v4977_v61  ;;  %5058 = vmatpush1.bf16.msra.mxu0 %v5057_v48  ;;  %v1727_v61 = vadd.f32 %v1721_v43, %v6727_v47  ;;  %v6818_v48 = vpack.c.bf16 %v2245_v55, %v2241_v51  ;;  %v6828_v47 = vpack.c.bf16 %v2244_v45, %v2240_v60  ;;  %v2262_v27 = vld [vmem:[#allocation9 + $0x130] sm:$0xff]  ;;  %v2264_v54 = vld [vmem:[#allocation9 + $0x140] sm:$0xff]  ;;  %v2273_v32 = vld [vmem:[#allocation9 + $0x188] sm:$0xff] }
 0x437   :  { %4980 = vmatprep.subr.bf16.mxu1 %v4979_v63  ;;  %5060 = vmatprep.subr.bf16.mxu0 %v5059_v2  ;;  %v2249_v63 = vld [vmem:[#allocation9 + $0xc8] sm:$0xff]  ;;  %v6830_v5 = vpack.c.bf16 %v2246_v50, %v2242_v49  ;;  %v2268_v39 = vld [vmem:[#allocation9 + $0x160] sm:$0xff]  ;;  %v6860_v22 = vpack.c.bf16 %v2269_v33, %v2265_v29  ;;  %v6862_v42 = vpack.c.bf16 %v2271_v35, %v2267_v34  ;;  %v2266_v43 = vld [vmem:[#allocation9 + $0x150] sm:$0xff]  ;;  %v1904_v34 = vsub.s32 3, %v6537_v8 }
 0x438   :  { %2057 = vmatprep.mubr.f32.mxu1 %v5968_v1  ;;  %2211 = vmatprep.mubr.f32.mxu0 %v5968_v1  ;;  %v2253_v2 = vld [vmem:[#allocation9 + $0xe8] sm:$0xff]  ;;  %v2275_v51 = vld [vmem:[#allocation9 + $0x198] sm:$0xff]  ;;  %v6866_v58 = vpack.c.bf16 %v2268_v39, %v2264_v54  ;;  %v2272_v60 = vld [vmem:[#allocation9 + $0x180] sm:$0xff] }
 0x439   :  { %v6834_v62 = vpack.c.bf16 %v2253_v2, %v2249_v63  ;;  %v2277_v28 = vld [vmem:[#allocation9 + $0x1a8] sm:$0xff]  ;;  %v2279_v55 = vld [vmem:[#allocation9 + $0x1b8] sm:$0xff]  ;;  %v2276_v45 = vld [vmem:[#allocation9 + $0x1a0] sm:$0xff] }
 0x43a   :  { %4982 = vmatpush1.bf16.msra.mxu1 %v4981_v7  ;;  %5062 = vmatpush1.bf16.msra.mxu0 %v5061_v13  ;;  %v6836_v7 = vpack.c.bf16 %v2255_v4, %v2251_v3  ;;  %v2250_v13 = vld [vmem:[#allocation9 + $0xd0] sm:$0xff]  ;;  %v6874_v49 = vpack.c.bf16 %v2279_v55, %v2275_v51  ;;  %v2281_v2 = vld [vmem:[#allocation9 + $0x1c8] sm:$0xff]  ;;  %v2283_v4 = vld [vmem:[#allocation9 + $0x1d8] sm:$0xff]  ;;  %v6878_v37 = vpack.c.bf16 %v2276_v45, %v2272_v60 }
 0x43b   :  { %4984 = vmatprep.subr.bf16.mxu1 %v4983_v15  ;;  %5064 = vmatprep.subr.bf16.mxu0 %v5063_v16  ;;  %v2261_v15 = vld [vmem:[#allocation9 + $0x128] sm:$0xff]  ;;  %v2259_v16 = vld [vmem:[#allocation9 + $0x118] sm:$0xff]  ;;  %v6844_v21 = vpack.c.bf16 %v2254_v14, %v2250_v13  ;;  %v2274_v50 = vld [vmem:[#allocation9 + $0x190] sm:$0xff] }
 0x43c   :  { %v6848_v25 = vpack.c.bf16 %v2261_v15, %v2257_v0  ;;  %v2278_v63 = vld [vmem:[#allocation9 + $0x1b0] sm:$0xff]  ;;  %v2285_v3 = vld [vmem:[#allocation9 + $0x1e8] sm:$0xff]  ;;  %v2287_v6 = vld [vmem:[#allocation9 + $0x1f8] sm:$0xff] }
 0x43d   :  { %v6880_v13 = vpack.c.bf16 %v2278_v63, %v2274_v50  ;;  %v2280_v14 = vld [vmem:[#allocation9 + $0x1c0] sm:$0xff]  ;;  %v6884_v0 = vpack.c.bf16 %v2285_v3, %v2281_v2  ;;  %v6886_v15 = vpack.c.bf16 %v2287_v6, %v2283_v4  ;;  %v2286_v23 = vld [vmem:[#allocation9 + $0x1f0] sm:$0xff] }
 0x43e   :  { %4986 = vmatpush1.bf16.msra.mxu1 %v4985_v11  ;;  %5066 = vmatpush1.bf16.msra.mxu0 %v5065_v26  ;;  %v6850_v11 = vpack.c.bf16 %v2263_v18, %v2259_v16  ;;  %v2258_v26 = vld [vmem:[#allocation9 + $0x110] sm:$0xff]  ;;  %v2284_v16 = vld [vmem:[#allocation9 + $0x1e0] sm:$0xff] }
 0x43f   :  { %5068 = vmatprep.subr.bf16.mxu1 %v6791_v30  ;;  %5100 = vmatprep.subr.bf16.mxu0 %v6793_v31  ;;  %v6856_v38 = vpack.c.bf16 %v2262_v27, %v2258_v26  ;;  %v2282_v18 = vld [vmem:[#allocation9 + $0x1d0] sm:$0xff]  ;;  %v6890_v24 = vpack.c.bf16 %v2284_v16, %v2280_v14  ;;  %v1888_v27 = vld [vmem:[%s7405_s12] sm:$0xf] }
 0x440   :  { %v6892_v26 = vpack.c.bf16 %v2286_v23, %v2282_v18  ;;  %v1893_v39 = vrot.slane %v1888_v27, %v6540_v9 }
 0x441   :  { %4079 = vmatmul.mubr.msk.f32.vlgmr.msra.gmra.mrb[22].mxu1 %vm493_vm1, %v1724_v46  ;;  %4081 = vmatmul.mubr.msk.f32.vlgmr.msra.gmra.mrb[18].mxu0 %vm493_vm1, %v1724_v46  ;;  %v2270_v46 = vld [vmem:[#allocation9 + $0x170] sm:$0xff] }
 0x442   :  { %5070 = vmatpush1.bf16.msra.mxu1 %v6795_v40  ;;  %5102 = vmatpush1.bf16.msra.mxu0 %v6797_v41  ;;  %v6868_v59 = vpack.c.bf16 %v2270_v46, %v2266_v43  ;;  %v1901_v43 = vrot.slane %v1888_v27, %v6549_v12  ;;  %v1897_v46 = vrot.slane %v1888_v27, %v6543_v10 }
 0x443   :  { %2063 = vmatprep.mubr.f32.mxu1 %v5968_v1  ;;  %2217 = vmatprep.mubr.f32.mxu0 %v5968_v1 }
 0x444   :  { %5072 = vmatprep.subr.bf16.mxu1 %v6803_v53  ;;  %5104 = vmatprep.subr.bf16.mxu0 %v6805_v20 }
 0x445   :  { %4080 = vmatmul.mubr.msk.f32.gmra.mrb[24].mxu1 %vm493_vm1, %v1727_v61  ;;  %4082 = vmatmul.mubr.msk.f32.gmra.mrb[20].mxu0 %vm493_vm1, %v1727_v61  ;;  %v6872_v61 = vpack.c.bf16 %v2277_v28, %v2273_v32  ;;  %v1905_v32 = vrot.slane %v1888_v27, %v1904_v34  ;;  %vm5971_vm1 = vmmov 0  }
 0x446   :  { %5074 = vmatpush1.bf16.msra.mxu1 %v6811_v44  ;;  %5106 = vmatpush1.bf16.msra.mxu0 %v6813_v17 }
 0x447   :  { %5076 = vmatprep.subr.bf16.mxu1 %v6818_v48  ;;  %5108 = vmatprep.subr.bf16.mxu0 %v6820_v52 }
 0x448   :  { %2353 = vmatprep.mubr.f32.mxu1 %v5968_v1  ;;  %2424 = vmatprep.mubr.f32.mxu0 %v5968_v1 }
 0x44a   :  { %5078 = vmatpush1.bf16.msra.mxu1 %v6828_v47  ;;  %5110 = vmatpush1.bf16.msra.mxu0 %v6830_v5 }
 0x44b   :  { %5080 = vmatprep.subr.bf16.mxu1 %v6834_v62  ;;  %5112 = vmatprep.subr.bf16.mxu0 %v6836_v7 }
 0x44e   :  { %5082 = vmatpush1.bf16.msra.mxu1 %v6842_v19  ;;  %5114 = vmatpush1.bf16.msra.mxu0 %v6844_v21 }
 0x44f   :  { %5084 = vmatprep.subr.bf16.mxu1 %v6848_v25  ;;  %5116 = vmatprep.subr.bf16.mxu0 %v6850_v11 }
 0x452   :  { %5086 = vmatpush1.bf16.msra.mxu1 %v6854_v36  ;;  %5118 = vmatpush1.bf16.msra.mxu0 %v6856_v38 }
 0x453   :  { %5088 = vmatprep.subr.bf16.mxu1 %v6860_v22  ;;  %5120 = vmatprep.subr.bf16.mxu0 %v6862_v42 }
 0x456   :  { %5090 = vmatpush1.bf16.msra.mxu1 %v6866_v58  ;;  %5122 = vmatpush1.bf16.msra.mxu0 %v6868_v59 }
 0x457   :  { %5092 = vmatprep.subr.bf16.mxu1 %v6872_v61  ;;  %5124 = vmatprep.subr.bf16.mxu0 %v6874_v49 }
 0x45a   :  { %5094 = vmatpush1.bf16.msra.mxu1 %v6878_v37  ;;  %5126 = vmatpush1.bf16.msra.mxu0 %v6880_v13 }
 0x45b   :  { %5096 = vmatprep.subr.bf16.mxu1 %v6884_v0  ;;  %5128 = vmatprep.subr.bf16.mxu0 %v6886_v15 }
 0x45e   :  { %5098 = vmatpush1.bf16.msra.mxu1 %v6890_v24  ;;  %5130 = vmatpush1.bf16.msra.mxu0 %v6892_v26 }
 0x45f   :  { %5132 = vmatprep.subr.bf16.mxu1 %v6791_v30  ;;  %5164 = vmatprep.subr.bf16.mxu0 %v6793_v31 }
 0x461   :  { %2354 = vmatmul.mubr.f32.vlgmr.msra.gmra.mrb[26].mxu1 %v5968_v1  ;;  %2425 = vmatmul.mubr.f32.vlgmr.msra.gmra.mrb[22].mxu0 %v5968_v1 }
 0x462   :  { %5134 = vmatpush1.bf16.msra.mxu1 %v6795_v40  ;;  %5166 = vmatpush1.bf16.msra.mxu0 %v6797_v41 }
 0x463   :  { %5136 = vmatprep.subr.bf16.mxu1 %v6803_v53  ;;  %5168 = vmatprep.subr.bf16.mxu0 %v6805_v20 }
 0x464   :  { %2531 = vmatprep.mubr.f32.mxu1 %v5968_v1  ;;  %2602 = vmatprep.mubr.f32.mxu0 %v5968_v1 }
 0x466   :  { %5138 = vmatpush1.bf16.msra.mxu1 %v6811_v44  ;;  %5170 = vmatpush1.bf16.msra.mxu0 %v6813_v17 }
 0x467   :  { %5140 = vmatprep.subr.bf16.mxu1 %v6818_v48  ;;  %5172 = vmatprep.subr.bf16.mxu0 %v6820_v52 }
 0x46a   :  { %5142 = vmatpush1.bf16.msra.mxu1 %v6828_v47  ;;  %5174 = vmatpush1.bf16.msra.mxu0 %v6830_v5 }
 0x46b   :  { %5144 = vmatprep.subr.bf16.mxu1 %v6834_v62  ;;  %5176 = vmatprep.subr.bf16.mxu0 %v6836_v7 }
 0x46e   :  { %5146 = vmatpush1.bf16.msra.mxu1 %v6842_v19  ;;  %5178 = vmatpush1.bf16.msra.mxu0 %v6844_v21 }
 0x46f   :  { %5148 = vmatprep.subr.bf16.mxu1 %v6848_v25  ;;  %5180 = vmatprep.subr.bf16.mxu0 %v6850_v11 }
 0x472   :  { %5150 = vmatpush1.bf16.msra.mxu1 %v6854_v36  ;;  %5182 = vmatpush1.bf16.msra.mxu0 %v6856_v38 }
 0x473   :  { %5152 = vmatprep.subr.bf16.mxu1 %v6860_v22  ;;  %5184 = vmatprep.subr.bf16.mxu0 %v6862_v42 }
 0x476   :  { %5154 = vmatpush1.bf16.msra.mxu1 %v6866_v58  ;;  %5186 = vmatpush1.bf16.msra.mxu0 %v6868_v59 }
 0x477   :  { %5156 = vmatprep.subr.bf16.mxu1 %v6872_v61  ;;  %5188 = vmatprep.subr.bf16.mxu0 %v6874_v49 }
 0x47a   :  { %5158 = vmatpush1.bf16.msra.mxu1 %v6878_v37  ;;  %5190 = vmatpush1.bf16.msra.mxu0 %v6880_v13 }
 0x47b   :  { %5160 = vmatprep.subr.bf16.mxu1 %v6884_v0  ;;  %5192 = vmatprep.subr.bf16.mxu0 %v6886_v15 }
 0x47e   :  { %5162 = vmatpush1.bf16.msra.mxu1 %v6890_v24  ;;  %5194 = vmatpush1.bf16.msra.mxu0 %v6892_v26 }
 0x47f   :  { %5196 = vmatprep.subr.bf16.mxu1 %v6791_v30  ;;  %5228 = vmatprep.subr.bf16.mxu0 %v6793_v31 }
 0x514   :  { %v2059_v29 = vpop.f32.mrb[22].mxu1  ;;  %v2213_v33 = vpop.f32.mrb[18].mxu0 }
 0x515   :  { %v2061_v35 = vpop.f32.mrb[23].mxu1  ;;  %v2215_v54 = vpop.f32.mrb[19].mxu0  ;;  %v6951_v2 = vadd.f32 %v2059_v29, %v1893_v39  ;;  %v6960_v29 = vadd.f32 %v2213_v33, %v1901_v43 }
 0x516   :  { %v6953_v9 = vadd.f32 %v2061_v35, %v1897_v46  ;;  %v6957_v23 = vadd.f32 %v2215_v54, %v1905_v32 }
 0x518   :  { %v2065_v28 = vpop.f32.mrb[24].mxu1  ;;  %v2219_v51 = vpop.f32.mrb[20].mxu0 }
 0x519   :  { %v6943_v55 = vadd.f32 %v2065_v28, %v1893_v39  ;;  %v6945_v60 = vadd.f32 %v2219_v51, %v1901_v43  ;;  %v2067_v45 = vpop.f32.mrb[25].mxu1  ;;  %v2221_v50 = vpop.f32.mrb[21].mxu0 }
 0x51a   :  { %v6947_v63 = vadd.f32 %v2067_v45, %v1897_v46  ;;  %v6949_v8 = vadd.f32 %v2221_v50, %v1905_v32  ;;  %v2463_v32 = vpop.permute.xlu0 %2462 }
 0x51b   :  { %vm2464_vm6 = vcmp.eq.s32.totalorder %v2463_v32, 1 }
 0x534   :  { %v2355_v12 = vpop.f32.mrb[26].mxu1  ;;  %v2426_v3 = vpop.f32.mrb[22].mxu0 }
 0x535   :  { %v2431_v10 = vadd.f32 %v6951_v2, %v2355_v12  ;;  %v2357_v4 = vpop.f32.mrb[27].mxu1  ;;  %v2428_v6 = vpop.f32.mrb[23].mxu0  ;;  %v2433_v35 = vadd.f32 %v6960_v29, %v2426_v3 }
 0x536   :  { %v2432_v14 = vadd.f32 %v6953_v9, %v2357_v4  ;;  %v2434_v27 = vadd.f32 %v6957_v23, %v2428_v6 }
 0x537   :  { %v4083_v16 = vmul.f32 -1.442695, %v2431_v10 }
 0x538   :  { %v4084_v18 = vmul.f32 -1.442695, %v2432_v14  ;;  %v4085_v34 = vmul.f32 -1.442695, %v2434_v27  ;;  %v2852_v27 = vsel %vm2851_vm7, 1, %v5969_v57 }
 0x539   :  { %5683 = vpow2.f32 %v4083_v16  ;;  %2854 = vperm.xlu1 %5682, %v2852_v27  }
 0x53a   :  { %5685 = vpow2.f32 %v4084_v18 }
 0x53b   :  { %5687 = vpow2.f32 %v4085_v34  ;;  %v3051_v34 = vsel %vm3050_vm8, 1, %v5969_v57 }
 0x53c   :  { %5689 = vtanh.f32 %v2433_v35  ;;  %v3428_v35 = vsel %vm3427_vm9, 1, %v5969_v57 }
 0x53d   :  { %3053 = vperm.xlu1 %5682, %v3051_v34  }
 0x541   :  { %3430 = vperm.xlu1 %5682, %v3428_v35  }
 0x543   :  { %v5684_v39 = vpop.eup %5683 }
 0x544   :  { %v5686_v46 = vpop.eup %5685  ;;  %v2438_v28 = vadd.f32 1.0, %v5684_v39  ;;  %v3826_v39 = vsel %vm3825_vm10, 1, %v5969_v57 }
 0x545   :  { %v2444_v51 = vadd.f32 1.0, %v5686_v46  ;;  %v5688_v45 = vpop.eup %5687  ;;  %3828 = vperm.xlu1 %5682, %v3826_v39  }
 0x546   :  { %5691 = vrcp.f32 %v2438_v28  ;;  %v5690_v50 = vpop.eup %5689  ;;  %v2451_v10 = vadd.f32 1.0, %v5688_v45 }
 0x547   :  { %5693 = vrcp.f32 %v2444_v51 }
 0x548   :  { %5695 = vrcp.f32 %v2451_v10 }
 0x550   :  { %v5692_v54 = vpop.eup %5691 }
 0x551   :  { %v5694_v12 = vpop.eup %5693  ;;  %v2455_v4 = vmul.f32 %v5692_v54, %v5690_v50 }
 0x552   :  { %v2454_v33 = vmul.f32 0.0, %v5694_v12  ;;  %v5696_v6 = vpop.eup %5695 }
 0x554   :  { %v2456_v43 = vadd.f32 %v2455_v4, %v2454_v33 }
 0x556   :  { %5697 = vtanh.f32 %v2456_v43  ;;  %v6963_v3 = vsel %vm2464_vm6, %v2456_v43, 0.0 }
 0x560   :  { %v5698_v14 = vpop.eup %5697 }
 0x561   :  { %v2458_v16 = vmul.f32 %v5698_v14, %v5696_v6 }
 0x563   :  { %v6965_v18 = vsel %vm2464_vm6, %v2458_v16, 0.0  ;;  %4086 = vmatmul.mubr.msk.f32.vlgmr.msra.gmra.mrb[28].mxu1 %vm2464_vm6, %v2458_v16  ;;  %4087 = vmatmul.mubr.msk.f32.vlgmr.msra.gmra.mrb[24].mxu0 %vm2464_vm6, %v2458_v16 }
 0x564   :  { %5198 = vmatpush1.bf16.msra.mxu1 %v6795_v40  ;;  %5230 = vmatpush1.bf16.msra.mxu0 %v6797_v41 }
 0x565   :  { %5200 = vmatprep.subr.bf16.mxu1 %v6803_v53  ;;  %5232 = vmatprep.subr.bf16.mxu0 %v6805_v20 }
 0x566   :  { %2730 = vmatprep.mubr.f32.mxu1 %v5968_v1  ;;  %2801 = vmatprep.mubr.f32.mxu0 %v5968_v1 }
 0x568   :  { %5202 = vmatpush1.bf16.msra.mxu1 %v6811_v44  ;;  %5234 = vmatpush1.bf16.msra.mxu0 %v6813_v17 }
 0x569   :  { %5204 = vmatprep.subr.bf16.mxu1 %v6818_v48  ;;  %5236 = vmatprep.subr.bf16.mxu0 %v6820_v52 }
 0x56c   :  { %5206 = vmatpush1.bf16.msra.mxu1 %v6828_v47  ;;  %5238 = vmatpush1.bf16.msra.mxu0 %v6830_v5 }
 0x56d   :  { %5208 = vmatprep.subr.bf16.mxu1 %v6834_v62  ;;  %5240 = vmatprep.subr.bf16.mxu0 %v6836_v7 }
 0x570   :  { %5210 = vmatpush1.bf16.msra.mxu1 %v6842_v19  ;;  %5242 = vmatpush1.bf16.msra.mxu0 %v6844_v21 }
 0x571   :  { %5212 = vmatprep.subr.bf16.mxu1 %v6848_v25  ;;  %5244 = vmatprep.subr.bf16.mxu0 %v6850_v11 }
 0x574   :  { %5214 = vmatpush1.bf16.msra.mxu1 %v6854_v36  ;;  %5246 = vmatpush1.bf16.msra.mxu0 %v6856_v38 }
 0x575   :  { %5216 = vmatprep.subr.bf16.mxu1 %v6860_v22  ;;  %5248 = vmatprep.subr.bf16.mxu0 %v6862_v42 }
 0x578   :  { %5218 = vmatpush1.bf16.msra.mxu1 %v6866_v58  ;;  %5250 = vmatpush1.bf16.msra.mxu0 %v6868_v59 }
 0x579   :  { %5220 = vmatprep.subr.bf16.mxu1 %v6872_v61  ;;  %5252 = vmatprep.subr.bf16.mxu0 %v6874_v49 }
 0x57c   :  { %5222 = vmatpush1.bf16.msra.mxu1 %v6878_v37  ;;  %5254 = vmatpush1.bf16.msra.mxu0 %v6880_v13 }
 0x57d   :  { %5224 = vmatprep.subr.bf16.mxu1 %v6884_v0  ;;  %5256 = vmatprep.subr.bf16.mxu0 %v6886_v15 }
 0x580   :  { %5226 = vmatpush1.bf16.msra.mxu1 %v6890_v24  ;;  %5258 = vmatpush1.bf16.msra.mxu0 %v6892_v26 }
 0x581   :  { %5260 = vmatprep.subr.bf16.mxu1 %v6791_v30  ;;  %5292 = vmatprep.subr.bf16.mxu0 %v6793_v31 }
 0x636   :  { %v2533_v46 = vpop.f32.mrb[28].mxu1  ;;  %v2604_v28 = vpop.f32.mrb[24].mxu0 }
 0x637   :  { %v2613_v51 = vrot.slane %v2533_v46, 6  ;;  %v2535_v45 = vpop.f32.mrb[29].mxu1  ;;  %v2606_v50 = vpop.f32.mrb[25].mxu0  ;;  %v2615_v43 = vrot.slane %v2604_v28, 6 }
 0x638   :  { %v2614_v54 = vrot.slane %v2535_v45, 6  ;;  %v2616_v33 = vrot.slane %v2606_v50, 6 }
 0x639   :  { %v2621_v32 = vadd.f32 %v6951_v2, %v2613_v51  ;;  %v2623_v6 = vadd.f32 %v6960_v29, %v2615_v43  ;;  %v2645_v51 = vrot.slane %v6963_v3, 6 }
 0x63a   :  { %v2622_v12 = vadd.f32 %v6953_v9, %v2614_v54  ;;  %v2624_v56 = vadd.f32 %v6957_v23, %v2616_v33 }
 0x63b   :  { %v4088_v10 = vmul.f32 -1.442695, %v2621_v32 }
 0x63c   :  { %v4089_v4 = vmul.f32 -1.442695, %v2622_v12  ;;  %v4090_v57 = vmul.f32 -1.442695, %v2624_v56  ;;  %v2656_v12 = vpop.permute.xlu0 %2655 }
 0x63d   :  { %5699 = vpow2.f32 %v4088_v10  ;;  %vm2657_vm11 = vcmp.eq.s32.totalorder %v2656_v12, 1 }
 0x63e   :  { %5701 = vpow2.f32 %v4089_v4 }
 0x63f   :  { %5703 = vpow2.f32 %v4090_v57 }
 0x640   :  { %5705 = vtanh.f32 %v2623_v6 }
 0x647   :  { %v5700_v14 = vpop.eup %5699 }
 0x648   :  { %v5702_v16 = vpop.eup %5701  ;;  %v2628_v27 = vadd.f32 1.0, %v5700_v14 }
 0x649   :  { %v2634_v34 = vadd.f32 1.0, %v5702_v16  ;;  %v5704_v35 = vpop.eup %5703 }
 0x64a   :  { %5707 = vrcp.f32 %v2628_v27  ;;  %v5706_v39 = vpop.eup %5705  ;;  %v2641_v54 = vadd.f32 1.0, %v5704_v35 }
 0x64b   :  { %5709 = vrcp.f32 %v2634_v34 }
 0x64c   :  { %5711 = vrcp.f32 %v2641_v54 }
 0x654   :  { %v5708_v46 = vpop.eup %5707 }
 0x655   :  { %v5710_v45 = vpop.eup %5709  ;;  %v2648_v50 = vmul.f32 %v5708_v46, %v5706_v39 }
 0x656   :  { %v2647_v28 = vmul.f32 %v5710_v45, %v2645_v51  ;;  %v5712_v33 = vpop.eup %5711 }
 0x658   :  { %v2649_v32 = vadd.f32 %v2648_v50, %v2647_v28 }
 0x65a   :  { %5713 = vtanh.f32 %v2649_v32  ;;  %v2663_v10 = vrot.slane %v2649_v32, 2 }
 0x65c   :  { %v7015_v4 = vsel %vm2657_vm11, %v2663_v10, %v6963_v3 }
 0x664   :  { %v5714_v56 = vpop.eup %5713 }
 0x665   :  { %v2651_v43 = vmul.f32 %v5714_v56, %v5712_v33 }
 0x667   :  { %v2659_v57 = vrot.slane %v2651_v43, 2 }
 0x669   :  { %v7018_v6 = vsel %vm2657_vm11, %v2659_v57, %v6965_v18 }
 0x66a   :  { %2731 = vmatmul.mubr.f32.vlgmr.msra.gmra.mrb[30].mxu1 %v7018_v6  ;;  %2802 = vmatmul.mubr.f32.vlgmr.msra.gmra.mrb[26].mxu0 %v7018_v6 }
 0x66b   :  { %5262 = vmatpush1.bf16.msra.mxu1 %v6795_v40  ;;  %5294 = vmatpush1.bf16.msra.mxu0 %v6797_v41 }
 0x66c   :  { %5264 = vmatprep.subr.bf16.mxu1 %v6803_v53  ;;  %5296 = vmatprep.subr.bf16.mxu0 %v6805_v20 }
 0x66d   :  { %2929 = vmatprep.mubr.f32.mxu1 %v5968_v1  ;;  %3000 = vmatprep.mubr.f32.mxu0 %v5968_v1 }
 0x66f   :  { %5266 = vmatpush1.bf16.msra.mxu1 %v6811_v44  ;;  %5298 = vmatpush1.bf16.msra.mxu0 %v6813_v17 }
 0x670   :  { %5268 = vmatprep.subr.bf16.mxu1 %v6818_v48  ;;  %5300 = vmatprep.subr.bf16.mxu0 %v6820_v52 }
 0x673   :  { %5270 = vmatpush1.bf16.msra.mxu1 %v6828_v47  ;;  %5302 = vmatpush1.bf16.msra.mxu0 %v6830_v5 }
 0x674   :  { %5272 = vmatprep.subr.bf16.mxu1 %v6834_v62  ;;  %5304 = vmatprep.subr.bf16.mxu0 %v6836_v7 }
 0x677   :  { %5274 = vmatpush1.bf16.msra.mxu1 %v6842_v19  ;;  %5306 = vmatpush1.bf16.msra.mxu0 %v6844_v21 }
 0x678   :  { %5276 = vmatprep.subr.bf16.mxu1 %v6848_v25  ;;  %5308 = vmatprep.subr.bf16.mxu0 %v6850_v11 }
 0x67b   :  { %5278 = vmatpush1.bf16.msra.mxu1 %v6854_v36  ;;  %5310 = vmatpush1.bf16.msra.mxu0 %v6856_v38 }
 0x67c   :  { %5280 = vmatprep.subr.bf16.mxu1 %v6860_v22  ;;  %5312 = vmatprep.subr.bf16.mxu0 %v6862_v42 }
 0x67f   :  { %5282 = vmatpush1.bf16.msra.mxu1 %v6866_v58  ;;  %5314 = vmatpush1.bf16.msra.mxu0 %v6868_v59 }
 0x680   :  { %5284 = vmatprep.subr.bf16.mxu1 %v6872_v61  ;;  %5316 = vmatprep.subr.bf16.mxu0 %v6874_v49 }
 0x683   :  { %5286 = vmatpush1.bf16.msra.mxu1 %v6878_v37  ;;  %5318 = vmatpush1.bf16.msra.mxu0 %v6880_v13 }
 0x684   :  { %5288 = vmatprep.subr.bf16.mxu1 %v6884_v0  ;;  %5320 = vmatprep.subr.bf16.mxu0 %v6886_v15 }
 0x687   :  { %5290 = vmatpush1.bf16.msra.mxu1 %v6890_v24  ;;  %5322 = vmatpush1.bf16.msra.mxu0 %v6892_v26 }
 0x688   :  { %5324 = vmatprep.subr.bf16.mxu1 %v6791_v30  ;;  %5356 = vmatprep.subr.bf16.mxu0 %v6793_v31 }
 0x73d   :  { %v2732_v3 = vpop.f32.mrb[30].mxu1  ;;  %v2803_v18 = vpop.f32.mrb[26].mxu0 }
 0x73e   :  { %v2812_v14 = vrot.slane %v2732_v3, 4  ;;  %v2734_v16 = vpop.f32.mrb[31].mxu1  ;;  %v2805_v27 = vpop.f32.mrb[27].mxu0  ;;  %v2814_v54 = vrot.slane %v2803_v18, 4 }
 0x73f   :  { %v2813_v34 = vrot.slane %v2734_v16, 4  ;;  %v2815_v45 = vrot.slane %v2805_v27, 4  ;;  %v2855_v18 = vpop.permute.xlu1 %2854 }
 0x740   :  { %v2820_v35 = vadd.f32 %v6951_v2, %v2812_v14  ;;  %v2822_v32 = vadd.f32 %v6960_v29, %v2814_v54  ;;  %v2844_v14 = vrot.slane %v7015_v4, 4  ;;  %vm2856_vm12 = vcmp.eq.s32.totalorder %v2855_v18, 1 }
 0x741   :  { %v2821_v39 = vadd.f32 %v6953_v9, %v2813_v34  ;;  %v2823_v50 = vadd.f32 %v6957_v23, %v2815_v45 }
 0x742   :  { %v4091_v46 = vmul.f32 -1.442695, %v2820_v35 }
 0x743   :  { %v4092_v51 = vmul.f32 -1.442695, %v2821_v39  ;;  %v4093_v28 = vmul.f32 -1.442695, %v2823_v50 }
 0x744   :  { %5715 = vpow2.f32 %v4091_v46 }
 0x745   :  { %5717 = vpow2.f32 %v4092_v51 }
 0x746   :  { %5719 = vpow2.f32 %v4093_v28 }
 0x747   :  { %5721 = vtanh.f32 %v2822_v32 }
 0x74e   :  { %v5716_v12 = vpop.eup %5715 }
 0x74f   :  { %v5718_v10 = vpop.eup %5717  ;;  %v2827_v33 = vadd.f32 1.0, %v5716_v12 }
 0x750   :  { %v2833_v56 = vadd.f32 1.0, %v5718_v10  ;;  %v5720_v43 = vpop.eup %5719 }
 0x751   :  { %5723 = vrcp.f32 %v2827_v33  ;;  %v5722_v57 = vpop.eup %5721  ;;  %v2840_v27 = vadd.f32 1.0, %v5720_v43 }
 0x752   :  { %5725 = vrcp.f32 %v2833_v56 }
 0x753   :  { %5727 = vrcp.f32 %v2840_v27 }
 0x75b   :  { %v5724_v3 = vpop.eup %5723 }
 0x75c   :  { %v5726_v16 = vpop.eup %5725  ;;  %v2847_v34 = vmul.f32 %v5724_v3, %v5722_v57 }
 0x75d   :  { %v2846_v35 = vmul.f32 %v5726_v16, %v2844_v14  ;;  %v5728_v45 = vpop.eup %5727 }
 0x75f   :  { %v2848_v39 = vadd.f32 %v2847_v34, %v2846_v35 }
 0x761   :  { %5729 = vtanh.f32 %v2848_v39  ;;  %v2862_v46 = vrot.slane %v2848_v39, 4 }
 0x763   :  { %v7062_v51 = vsel %vm2856_vm12, %v2862_v46, %v7015_v4 }
 0x76b   :  { %v5730_v50 = vpop.eup %5729 }
 0x76c   :  { %v2850_v54 = vmul.f32 %v5730_v50, %v5728_v45 }
 0x76e   :  { %v2858_v28 = vrot.slane %v2850_v54, 4 }
 0x770   :  { %v7065_v32 = vsel %vm2856_vm12, %v2858_v28, %v7018_v6  ;;  %v3043_v28 = vrot.slane %v7062_v51, 2 }
 0x771   :  { %2930 = vmatmul.mubr.f32.vlgmr.msra.gmra.mrb[32].mxu1 %v7065_v32  ;;  %3001 = vmatmul.mubr.f32.vlgmr.msra.gmra.mrb[28].mxu0 %v7065_v32 }
 0x772   :  { %5326 = vmatpush1.bf16.msra.mxu1 %v6795_v40  ;;  %5358 = vmatpush1.bf16.msra.mxu0 %v6797_v41 }
 0x773   :  { %5328 = vmatprep.subr.bf16.mxu1 %v6803_v53  ;;  %5360 = vmatprep.subr.bf16.mxu0 %v6805_v20 }
 0x774   :  { %3128 = vmatprep.mubr.f32.mxu1 %v5968_v1  ;;  %3199 = vmatprep.mubr.f32.mxu0 %v5968_v1 }
 0x776   :  { %5330 = vmatpush1.bf16.msra.mxu1 %v6811_v44  ;;  %5362 = vmatpush1.bf16.msra.mxu0 %v6813_v17 }
 0x777   :  { %5332 = vmatprep.subr.bf16.mxu1 %v6818_v48  ;;  %5364 = vmatprep.subr.bf16.mxu0 %v6820_v52 }
 0x77a   :  { %5334 = vmatpush1.bf16.msra.mxu1 %v6828_v47  ;;  %5366 = vmatpush1.bf16.msra.mxu0 %v6830_v5 }
 0x77b   :  { %5336 = vmatprep.subr.bf16.mxu1 %v6834_v62  ;;  %5368 = vmatprep.subr.bf16.mxu0 %v6836_v7 }
 0x77e   :  { %5338 = vmatpush1.bf16.msra.mxu1 %v6842_v19  ;;  %5370 = vmatpush1.bf16.msra.mxu0 %v6844_v21 }
 0x77f   :  { %5340 = vmatprep.subr.bf16.mxu1 %v6848_v25  ;;  %5372 = vmatprep.subr.bf16.mxu0 %v6850_v11 }
 0x782   :  { %5342 = vmatpush1.bf16.msra.mxu1 %v6854_v36  ;;  %5374 = vmatpush1.bf16.msra.mxu0 %v6856_v38 }
 0x783   :  { %5344 = vmatprep.subr.bf16.mxu1 %v6860_v22  ;;  %5376 = vmatprep.subr.bf16.mxu0 %v6862_v42 }
 0x786   :  { %5346 = vmatpush1.bf16.msra.mxu1 %v6866_v58  ;;  %5378 = vmatpush1.bf16.msra.mxu0 %v6868_v59 }
 0x787   :  { %5348 = vmatprep.subr.bf16.mxu1 %v6872_v61  ;;  %5380 = vmatprep.subr.bf16.mxu0 %v6874_v49 }
 0x78a   :  { %5350 = vmatpush1.bf16.msra.mxu1 %v6878_v37  ;;  %5382 = vmatpush1.bf16.msra.mxu0 %v6880_v13 }
 0x78b   :  { %5352 = vmatprep.subr.bf16.mxu1 %v6884_v0  ;;  %5384 = vmatprep.subr.bf16.mxu0 %v6886_v15 }
 0x78e   :  { %5354 = vmatpush1.bf16.msra.mxu1 %v6890_v24  ;;  %5386 = vmatpush1.bf16.msra.mxu0 %v6892_v26 }
 0x78f   :  { %5388 = vmatprep.subr.bf16.mxu1 %v6791_v30  ;;  %5420 = vmatprep.subr.bf16.mxu0 %v6793_v31 }
 0x844   :  { %v2931_v4 = vpop.f32.mrb[32].mxu1  ;;  %v3002_v6 = vpop.f32.mrb[28].mxu0 }
 0x845   :  { %v3011_v12 = vrot.slane %v2931_v4, 2  ;;  %v2933_v10 = vpop.f32.mrb[33].mxu1  ;;  %v3004_v33 = vpop.f32.mrb[29].mxu0  ;;  %v3013_v34 = vrot.slane %v3002_v6, 2 }
 0x846   :  { %v3012_v56 = vrot.slane %v2933_v10, 2  ;;  %v3014_v16 = vrot.slane %v3004_v33, 2 }
 0x847   :  { %v3019_v43 = vadd.f32 %v6951_v2, %v3011_v12  ;;  %v3021_v35 = vadd.f32 %v6960_v29, %v3013_v34  ;;  %v3054_v29 = vpop.permute.xlu1 %3053 }
 0x848   :  { %v3020_v57 = vadd.f32 %v6953_v9, %v3012_v56  ;;  %v3022_v27 = vadd.f32 %v6957_v23, %v3014_v16  ;;  %vm3055_vm13 = vcmp.eq.s32.totalorder %v3054_v29, 1 }
 0x849   :  { %v4094_v3 = vmul.f32 -1.442695, %v3019_v43 }
 0x84a   :  { %v4095_v14 = vmul.f32 -1.442695, %v3020_v57  ;;  %v4096_v18 = vmul.f32 -1.442695, %v3022_v27 }
 0x84b   :  { %5731 = vpow2.f32 %v4094_v3 }
 0x84c   :  { %5733 = vpow2.f32 %v4095_v14 }
 0x84d   :  { %5735 = vpow2.f32 %v4096_v18 }
 0x84e   :  { %5737 = vtanh.f32 %v3021_v35 }
 0x855   :  { %v5732_v39 = vpop.eup %5731 }
 0x856   :  { %v5734_v46 = vpop.eup %5733  ;;  %v3026_v45 = vadd.f32 1.0, %v5732_v39 }
 0x857   :  { %v3032_v50 = vadd.f32 1.0, %v5734_v46  ;;  %v5736_v2 = vpop.eup %5735 }
 0x858   :  { %5739 = vrcp.f32 %v3026_v45  ;;  %v5738_v9 = vpop.eup %5737  ;;  %v3039_v23 = vadd.f32 1.0, %v5736_v2 }
 0x859   :  { %5741 = vrcp.f32 %v3032_v50 }
 0x85a   :  { %5743 = vrcp.f32 %v3039_v23 }
 0x862   :  { %v5740_v54 = vpop.eup %5739 }
 0x863   :  { %v5742_v4 = vpop.eup %5741  ;;  %v3046_v12 = vmul.f32 %v5740_v54, %v5738_v9 }
 0x864   :  { %v3045_v6 = vmul.f32 %v5742_v4, %v3043_v28  ;;  %v5744_v43 = vpop.eup %5743 }
 0x866   :  { %v3047_v10 = vadd.f32 %v3046_v12, %v3045_v6 }
 0x868   :  { %5745 = vtanh.f32 %v3047_v10  ;;  %v3061_v33 = vrot.slane %v3047_v10, 6 }
 0x86a   :  { %v7109_v56 = vsel %vm3055_vm13, %v3061_v33, %v7062_v51 }
 0x872   :  { %v5746_v57 = vpop.eup %5745 }
 0x873   :  { %v3049_v3 = vmul.f32 %v5746_v57, %v5744_v43  ;;  %v3238_v57 = vpop.permute.xlu0 %3237 }
 0x874   :  { %vm3239_vm14 = vcmp.eq.s32.totalorder %v3238_v57, 1 }
 0x875   :  { %v3057_v14 = vrot.slane %v3049_v3, 6 }
 0x877   :  { %v7112_v16 = vsel %vm3055_vm13, %v3057_v14, %v7065_v32 }
 0x878   :  { %3129 = vmatmul.mubr.f32.vlgmr.msra.gmra.mrb[34].mxu1 %v7112_v16  ;;  %3200 = vmatmul.mubr.f32.vlgmr.msra.gmra.mrb[30].mxu0 %v7112_v16 }
 0x879   :  { %5390 = vmatpush1.bf16.msra.mxu1 %v6795_v40  ;;  %5422 = vmatpush1.bf16.msra.mxu0 %v6797_v41 }
 0x87a   :  { %5392 = vmatprep.subr.bf16.mxu1 %v6803_v53  ;;  %5424 = vmatprep.subr.bf16.mxu0 %v6805_v20 }
 0x87b   :  { %3306 = vmatprep.mubr.f32.mxu1 %v5968_v1  ;;  %3377 = vmatprep.mubr.f32.mxu0 %v5968_v1 }
 0x87d   :  { %5394 = vmatpush1.bf16.msra.mxu1 %v6811_v44  ;;  %5426 = vmatpush1.bf16.msra.mxu0 %v6813_v17 }
 0x87e   :  { %5396 = vmatprep.subr.bf16.mxu1 %v6818_v48  ;;  %5428 = vmatprep.subr.bf16.mxu0 %v6820_v52 }
 0x881   :  { %5398 = vmatpush1.bf16.msra.mxu1 %v6828_v47  ;;  %5430 = vmatpush1.bf16.msra.mxu0 %v6830_v5 }
 0x882   :  { %5400 = vmatprep.subr.bf16.mxu1 %v6834_v62  ;;  %5432 = vmatprep.subr.bf16.mxu0 %v6836_v7 }
 0x885   :  { %5402 = vmatpush1.bf16.msra.mxu1 %v6842_v19  ;;  %5434 = vmatpush1.bf16.msra.mxu0 %v6844_v21 }
 0x886   :  { %5404 = vmatprep.subr.bf16.mxu1 %v6848_v25  ;;  %5436 = vmatprep.subr.bf16.mxu0 %v6850_v11 }
 0x889   :  { %5406 = vmatpush1.bf16.msra.mxu1 %v6854_v36  ;;  %5438 = vmatpush1.bf16.msra.mxu0 %v6856_v38 }
 0x88a   :  { %5408 = vmatprep.subr.bf16.mxu1 %v6860_v22  ;;  %5440 = vmatprep.subr.bf16.mxu0 %v6862_v42 }
 0x88d   :  { %5410 = vmatpush1.bf16.msra.mxu1 %v6866_v58  ;;  %5442 = vmatpush1.bf16.msra.mxu0 %v6868_v59 }
 0x88e   :  { %5412 = vmatprep.subr.bf16.mxu1 %v6872_v61  ;;  %5444 = vmatprep.subr.bf16.mxu0 %v6874_v49 }
 0x891   :  { %5414 = vmatpush1.bf16.msra.mxu1 %v6878_v37  ;;  %5446 = vmatpush1.bf16.msra.mxu0 %v6880_v13 }
 0x892   :  { %5416 = vmatprep.subr.bf16.mxu1 %v6884_v0  ;;  %5448 = vmatprep.subr.bf16.mxu0 %v6886_v15 }
 0x895   :  { %5418 = vmatpush1.bf16.msra.mxu1 %v6890_v24  ;;  %5450 = vmatpush1.bf16.msra.mxu0 %v6892_v26 }
 0x896   :  { %5452 = vmatprep.subr.bf16.mxu1 %v6791_v30  ;;  %5484 = vmatprep.subr.bf16.mxu0 %v6793_v31 }
 0x94b   :  { %v3130_v51 = vpop.f32.mrb[34].mxu1  ;;  %v3201_v32 = vpop.f32.mrb[30].mxu0 }
 0x94c   :  { %v3206_v27 = vadd.f32 %v6943_v55, %v3130_v51  ;;  %v3132_v34 = vpop.f32.mrb[35].mxu1  ;;  %v3203_v18 = vpop.f32.mrb[31].mxu0  ;;  %v3208_v2 = vadd.f32 %v6945_v60, %v3201_v32 }
 0x94d   :  { %v3207_v35 = vadd.f32 %v6947_v63, %v3132_v34  ;;  %v3209_v45 = vadd.f32 %v6949_v8, %v3203_v18 }
 0x94e   :  { %v4097_v39 = vmul.f32 -1.442695, %v3206_v27 }
 0x94f   :  { %v4098_v46 = vmul.f32 -1.442695, %v3207_v35  ;;  %v4099_v50 = vmul.f32 -1.442695, %v3209_v45 }
 0x950   :  { %5747 = vpow2.f32 %v4097_v39 }
 0x951   :  { %5749 = vpow2.f32 %v4098_v46 }
 0x952   :  { %5751 = vpow2.f32 %v4099_v50 }
 0x953   :  { %5753 = vtanh.f32 %v3208_v2 }
 0x95a   :  { %v5748_v9 = vpop.eup %5747 }
 0x95b   :  { %v5750_v54 = vpop.eup %5749  ;;  %v3213_v28 = vadd.f32 1.0, %v5748_v9 }
 0x95c   :  { %v3219_v4 = vadd.f32 1.0, %v5750_v54  ;;  %v5752_v12 = vpop.eup %5751 }
 0x95d   :  { %5755 = vrcp.f32 %v3213_v28  ;;  %v5754_v23 = vpop.eup %5753  ;;  %v3226_v33 = vadd.f32 1.0, %v5752_v12 }
 0x95e   :  { %5757 = vrcp.f32 %v3219_v4 }
 0x95f   :  { %5759 = vrcp.f32 %v3226_v33 }
 0x967   :  { %v5756_v6 = vpop.eup %5755 }
 0x968   :  { %v5758_v10 = vpop.eup %5757  ;;  %v3230_v29 = vmul.f32 %v5756_v6, %v5754_v23 }
 0x969   :  { %v3229_v43 = vmul.f32 %v5758_v10, %v7109_v56  ;;  %v5760_v51 = vpop.eup %5759 }
 0x96b   :  { %v3231_v3 = vadd.f32 %v3230_v29, %v3229_v43 }
 0x96d   :  { %v7156_v14 = vsel %vm3239_vm14, %v3231_v3, %v7109_v56  ;;  %5761 = vtanh.f32 %v3231_v3 }
 0x96e   :  { %v3420_v57 = vrot.slane %v7156_v14, 6 }
 0x977   :  { %v5762_v32 = vpop.eup %5761 }
 0x978   :  { %v3233_v27 = vmul.f32 %v5762_v32, %v5760_v51 }
 0x97a   :  { %v7159_v34 = vsel %vm3239_vm14, %v3233_v27, %v7112_v16 }
 0x97b   :  { %3307 = vmatmul.mubr.f32.vlgmr.msra.gmra.mrb[36].mxu1 %v7159_v34  ;;  %3378 = vmatmul.mubr.f32.vlgmr.msra.gmra.mrb[32].mxu0 %v7159_v34 }
 0x97c   :  { %5454 = vmatpush1.bf16.msra.mxu1 %v6795_v40  ;;  %5486 = vmatpush1.bf16.msra.mxu0 %v6797_v41 }
 0x97d   :  { %5456 = vmatprep.subr.bf16.mxu1 %v6803_v53  ;;  %5488 = vmatprep.subr.bf16.mxu0 %v6805_v20 }
 0x97e   :  { %3505 = vmatprep.mubr.f32.mxu1 %v5968_v1  ;;  %3576 = vmatprep.mubr.f32.mxu0 %v5968_v1 }
 0x980   :  { %5458 = vmatpush1.bf16.msra.mxu1 %v6811_v44  ;;  %5490 = vmatpush1.bf16.msra.mxu0 %v6813_v17 }
 0x981   :  { %5460 = vmatprep.subr.bf16.mxu1 %v6818_v48  ;;  %5492 = vmatprep.subr.bf16.mxu0 %v6820_v52 }
 0x984   :  { %5462 = vmatpush1.bf16.msra.mxu1 %v6828_v47  ;;  %5494 = vmatpush1.bf16.msra.mxu0 %v6830_v5 }
 0x985   :  { %5464 = vmatprep.subr.bf16.mxu1 %v6834_v62  ;;  %5496 = vmatprep.subr.bf16.mxu0 %v6836_v7 }
 0x988   :  { %5466 = vmatpush1.bf16.msra.mxu1 %v6842_v19  ;;  %5498 = vmatpush1.bf16.msra.mxu0 %v6844_v21 }
 0x989   :  { %5468 = vmatprep.subr.bf16.mxu1 %v6848_v25  ;;  %5500 = vmatprep.subr.bf16.mxu0 %v6850_v11 }
 0x98c   :  { %5470 = vmatpush1.bf16.msra.mxu1 %v6854_v36  ;;  %5502 = vmatpush1.bf16.msra.mxu0 %v6856_v38 }
 0x98d   :  { %5472 = vmatprep.subr.bf16.mxu1 %v6860_v22  ;;  %5504 = vmatprep.subr.bf16.mxu0 %v6862_v42 }
 0x990   :  { %5474 = vmatpush1.bf16.msra.mxu1 %v6866_v58  ;;  %5506 = vmatpush1.bf16.msra.mxu0 %v6868_v59 }
 0x991   :  { %5476 = vmatprep.subr.bf16.mxu1 %v6872_v61  ;;  %5508 = vmatprep.subr.bf16.mxu0 %v6874_v49 }
 0x994   :  { %5478 = vmatpush1.bf16.msra.mxu1 %v6878_v37  ;;  %5510 = vmatpush1.bf16.msra.mxu0 %v6880_v13 }
 0x995   :  { %5480 = vmatprep.subr.bf16.mxu1 %v6884_v0  ;;  %5512 = vmatprep.subr.bf16.mxu0 %v6886_v15 }
 0x998   :  { %5482 = vmatpush1.bf16.msra.mxu1 %v6890_v24  ;;  %5514 = vmatpush1.bf16.msra.mxu0 %v6892_v26 }
 0x999   :  { %5516 = vmatprep.subr.bf16.mxu1 %v6791_v30  ;;  %5548 = vmatprep.subr.bf16.mxu0 %v6793_v31 }
 0xa4e   :  { %v3308_v56 = vpop.f32.mrb[36].mxu1  ;;  %v3379_v16 = vpop.f32.mrb[32].mxu0 }
 0xa4f   :  { %v3388_v18 = vrot.slane %v3308_v56, 6  ;;  %v3310_v35 = vpop.f32.mrb[37].mxu1  ;;  %v3381_v39 = vpop.f32.mrb[33].mxu0  ;;  %v3390_v30 = vrot.slane %v3379_v16, 6 }
 0xa50   :  { %v3389_v46 = vrot.slane %v3310_v35, 6  ;;  %v3391_v54 = vrot.slane %v3381_v39, 6  ;;  %v3431_v16 = vpop.permute.xlu1 %3430 }
 0xa51   :  { %v3396_v45 = vadd.f32 %v6943_v55, %v3388_v18  ;;  %v3398_v31 = vadd.f32 %v6945_v60, %v3390_v30  ;;  %vm3432_vm15 = vcmp.eq.s32.totalorder %v3431_v16, 1  ;;  %v3945_v16 = vld [vmem:[%s7408_s15 + $0x20] sm:$0xff] }
 0xa52   :  { %v3397_v50 = vadd.f32 %v6947_v63, %v3389_v46  ;;  %v3399_v28 = vadd.f32 %v6949_v8, %v3391_v54 }
 0xa53   :  { %v4100_v2 = vmul.f32 -1.442695, %v3396_v45 }
 0xa54   :  { %v4101_v9 = vmul.f32 -1.442695, %v3397_v50  ;;  %v4102_v4 = vmul.f32 -1.442695, %v3399_v28 }
 0xa55   :  { %5763 = vpow2.f32 %v4100_v2 }
 0xa56   :  { %5765 = vpow2.f32 %v4101_v9 }
 0xa57   :  { %5767 = vpow2.f32 %v4102_v4  ;;  %v3835_v4 = vld [vmem:[%s7406_s13] sm:$0xff] }
 0xa58   :  { %5769 = vtanh.f32 %v3398_v31  ;;  %v3836_v31 = vld [vmem:[%s7406_s13 + $0x8] sm:$0xff] }
 0xa5f   :  { %v5764_v12 = vpop.eup %5763 }
 0xa60   :  { %v5766_v23 = vpop.eup %5765  ;;  %v3403_v6 = vadd.f32 1.0, %v5764_v12  ;;  %v3941_v12 = vld [vmem:[%s7408_s15] sm:$0xff] }
 0xa61   :  { %v3409_v10 = vadd.f32 1.0, %v5766_v23  ;;  %v5768_v29 = vpop.eup %5767  ;;  %v5580_v23 = vpack.c.bf16 %v3836_v31, %v3835_v4 }
 0xa62   :  { %5771 = vrcp.f32 %v3403_v6  ;;  %v5770_v33 = vpop.eup %5769  ;;  %v3416_v32 = vadd.f32 1.0, %v5768_v29  ;;  %v3942_v6 = vld [vmem:[%s7408_s15 + $0x8] sm:$0xff] }
 0xa63   :  { %5773 = vrcp.f32 %v3409_v10  ;;  %v5970_v10 = vmov 0.0|0.0   ;;  %v5604_v29 = vpack.c.bf16 %v3942_v6, %v3941_v12 }
 0xa64   :  { %5775 = vrcp.f32 %v3416_v32 }
 0xa6c   :  { %v5772_v43 = vpop.eup %5771 }
 0xa6d   :  { %v5774_v3 = vpop.eup %5773  ;;  %v3423_v51 = vmul.f32 %v5772_v43, %v5770_v33  ;;  %v3837_v33 = vld [vmem:[%s7406_s13 + $0x10] sm:$0xff]  ;;  %v3838_v43 = vld [vmem:[%s7406_s13 + $0x18] sm:$0xff] }
 0xa6e   :  { %v3422_v27 = vmul.f32 %v5774_v3, %v3420_v57  ;;  %v5776_v39 = vpop.eup %5775  ;;  %v3943_v57 = vld [vmem:[%s7408_s15 + $0x10] sm:$0xff]  ;;  %v5583_v3 = vpack.c.bf16 %v3838_v43, %v3837_v33 }
 0xa70   :  { %v3424_v56 = vadd.f32 %v3423_v51, %v3422_v27  ;;  %v3944_v51 = vld [vmem:[%s7408_s15 + $0x18] sm:$0xff]  ;;  %v3839_v27 = vld [vmem:[%s7406_s13 + $0x20] sm:$0xff] }
 0xa71   :  { %v5607_v32 = vpack.c.bf16 %v3944_v51, %v3943_v57 }
 0xa72   :  { %v3438_v18 = vrot.slane %v3424_v56, 2  ;;  %5777 = vtanh.f32 %v3424_v56  ;;  %v3840_v56 = vld [vmem:[%s7406_s13 + $0x28] sm:$0xff] }
 0xa74   :  { %v7203_v35 = vsel %vm3432_vm15, %v3438_v18, %v7156_v14  ;;  %v5586_v18 = vpack.c.bf16 %v3840_v56, %v3839_v27 }
 0xa7c   :  { %v5778_v46 = vpop.eup %5777 }
 0xa7d   :  { %v3426_v45 = vmul.f32 %v5778_v46, %v5776_v39  ;;  %v3841_v46 = vld [vmem:[%s7406_s13 + $0x30] sm:$0xff] }
 0xa7f   :  { %v3434_v50 = vrot.slane %v3426_v45, 2  ;;  %v3842_v45 = vld [vmem:[%s7406_s13 + $0x38] sm:$0xff] }
 0xa81   :  { %v7206_v2 = vsel %vm3432_vm15, %v3434_v50, %v7159_v34  ;;  %v3947_v50 = vld [vmem:[%s7408_s15 + $0x30] sm:$0xff] }
 0xa82   :  { %3506 = vmatmul.mubr.f32.vlgmr.msra.gmra.mrb[38].mxu1 %v7206_v2  ;;  %3577 = vmatmul.mubr.f32.vlgmr.msra.gmra.mrb[34].mxu0 %v7206_v2 }
 0xa83   :  { %5518 = vmatpush1.bf16.msra.mxu1 %v6795_v40  ;;  %5550 = vmatpush1.bf16.msra.mxu0 %v6797_v41 }
 0xa84   :  { %5520 = vmatprep.subr.bf16.mxu1 %v6803_v53  ;;  %5552 = vmatprep.subr.bf16.mxu0 %v6805_v20 }
 0xa85   :  { %3704 = vmatprep.mubr.f32.mxu1 %v5968_v1  ;;  %3775 = vmatprep.mubr.f32.mxu0 %v5968_v1 }
 0xa87   :  { %5522 = vmatpush1.bf16.msra.mxu1 %v6811_v44  ;;  %5554 = vmatpush1.bf16.msra.mxu0 %v6813_v17 }
 0xa88   :  { %5524 = vmatprep.subr.bf16.mxu1 %v6818_v48  ;;  %5556 = vmatprep.subr.bf16.mxu0 %v6820_v52 }
 0xa8b   :  { %5526 = vmatpush1.bf16.msra.mxu1 %v6828_v47  ;;  %5558 = vmatpush1.bf16.msra.mxu0 %v6830_v5 }
 0xa8c   :  { %5528 = vmatprep.subr.bf16.mxu1 %v6834_v62  ;;  %5560 = vmatprep.subr.bf16.mxu0 %v6836_v7 }
 0xa8f   :  { %5530 = vmatpush1.bf16.msra.mxu1 %v6842_v19  ;;  %5562 = vmatpush1.bf16.msra.mxu0 %v6844_v21 }
 0xa90   :  { %5532 = vmatprep.subr.bf16.mxu1 %v6848_v25  ;;  %5564 = vmatprep.subr.bf16.mxu0 %v6850_v11 }
 0xa93   :  { %5534 = vmatpush1.bf16.msra.mxu1 %v6854_v36  ;;  %5566 = vmatpush1.bf16.msra.mxu0 %v6856_v38 }
 0xa94   :  { %5536 = vmatprep.subr.bf16.mxu1 %v6860_v22  ;;  %5568 = vmatprep.subr.bf16.mxu0 %v6862_v42 }
 0xa97   :  { %5538 = vmatpush1.bf16.msra.mxu1 %v6866_v58  ;;  %5570 = vmatpush1.bf16.msra.mxu0 %v6868_v59 }
 0xa98   :  { %5540 = vmatprep.subr.bf16.mxu1 %v6872_v61  ;;  %5572 = vmatprep.subr.bf16.mxu0 %v6874_v49  ;;  %v3619_v61 = vrot.slane %v7203_v35, 4 }
 0xa9b   :  { %5542 = vmatpush1.bf16.msra.mxu1 %v6878_v37  ;;  %5574 = vmatpush1.bf16.msra.mxu0 %v6880_v13 }
 0xa9c   :  { %5544 = vmatprep.subr.bf16.mxu1 %v6884_v0  ;;  %5576 = vmatprep.subr.bf16.mxu0 %v6886_v15  ;;  %v3630_v15 = vpop.permute.xlu0 %3629 }
 0xa9d   :  { %vm3631_vm0 = vcmp.eq.s32.totalorder %v3630_v15, 1 }
 0xa9f   :  { %5546 = vmatpush1.bf16.msra.mxu1 %v6890_v24  ;;  %5578 = vmatpush1.bf16.msra.mxu0 %v6892_v26 }
 0xaa0   :  { %5579 = vmatprep.subr.bf16.mxu1 %v5970_v10  ;;  %5603 = vmatprep.subr.bf16.mxu0 %v5970_v10 }
 0xb55   :  { %v3507_v40 = vpop.f32.mrb[38].mxu1  ;;  %v3578_v41 = vpop.f32.mrb[34].mxu0 }
 0xb56   :  { %v3587_v53 = vrot.slane %v3507_v40, 4  ;;  %v3509_v20 = vpop.f32.mrb[39].mxu1  ;;  %v3580_v44 = vpop.f32.mrb[35].mxu0  ;;  %v3589_v19 = vrot.slane %v3578_v41, 4  ;;  %v3948_v40 = vld [vmem:[%s7408_s15 + $0x38] sm:$0xff] }
 0xb57   :  { %v3588_v17 = vrot.slane %v3509_v20, 4  ;;  %v3590_v62 = vrot.slane %v3580_v44, 4  ;;  %v5613_v41 = vpack.c.bf16 %v3948_v40, %v3947_v50  ;;  %v3844_v20 = vld [vmem:[%s7406_s13 + $0x48] sm:$0xff]  ;;  %v3949_v44 = vld [vmem:[%s7408_s15 + $0x40] sm:$0xff] }
 0xb58   :  { %v3595_v48 = vadd.f32 %v6943_v55, %v3587_v53  ;;  %v3597_v25 = vadd.f32 %v6945_v60, %v3589_v19  ;;  %v3843_v53 = vld [vmem:[%s7406_s13 + $0x40] sm:$0xff] }
 0xb59   :  { %v3596_v52 = vadd.f32 %v6947_v63, %v3588_v17  ;;  %v3598_v7 = vadd.f32 %v6949_v8, %v3590_v62  ;;  %v5592_v17 = vpack.c.bf16 %v3844_v20, %v3843_v53  ;;  %v3951_v62 = vld [vmem:[%s7408_s15 + $0x50] sm:$0xff]  ;;  %v4109_v50 = vld [vmem:[#allocation11] ss:$0 sm:$0xff] }
 0xb5a   :  { %v4103_v47 = vmul.f32 -1.442695, %v3595_v48  ;;  %v3950_v48 = vld [vmem:[%s7408_s15 + $0x48] sm:$0xff] }
 0xb5b   :  { %v4104_v5 = vmul.f32 -1.442695, %v3596_v52  ;;  %v4105_v21 = vmul.f32 -1.442695, %v3598_v7  ;;  %v3845_v52 = vld [vmem:[%s7406_s13 + $0x50] sm:$0xff]  ;;  %v3952_v7 = vld [vmem:[%s7408_s15 + $0x58] sm:$0xff] }
 0xb5c   :  { %5779 = vpow2.f32 %v4103_v47  ;;  %v3846_v47 = vld [vmem:[%s7406_s13 + $0x58] sm:$0xff] }
 0xb5d   :  { %5781 = vpow2.f32 %v4104_v5  ;;  %v5616_v5 = vpack.c.bf16 %v3950_v48, %v3949_v44  ;;  %v5595_v19 = vpack.c.bf16 %v3846_v47, %v3845_v52 }
 0xb5e   :  { %5783 = vpow2.f32 %v4105_v21  ;;  %v5619_v21 = vpack.c.bf16 %v3952_v7, %v3951_v62 }
 0xb5f   :  { %5785 = vtanh.f32 %v3597_v25  ;;  %v3847_v25 = vld [vmem:[%s7406_s13 + $0x60] sm:$0xff] }
 0xb66   :  { %v5780_v11 = vpop.eup %5779 }
 0xb67   :  { %v5782_v36 = vpop.eup %5781  ;;  %v3602_v38 = vadd.f32 1.0, %v5780_v11  ;;  %v3848_v11 = vld [vmem:[%s7406_s13 + $0x68] sm:$0xff] }
 0xb68   :  { %v3608_v22 = vadd.f32 1.0, %v5782_v36  ;;  %v5784_v42 = vpop.eup %5783  ;;  %v3954_v36 = vld [vmem:[%s7408_s15 + $0x68] sm:$0xff] }
 0xb69   :  { %5787 = vrcp.f32 %v3602_v38  ;;  %v5786_v58 = vpop.eup %5785  ;;  %v3615_v13 = vadd.f32 1.0, %v5784_v42  ;;  %v5598_v38 = vpack.c.bf16 %v3848_v11, %v3847_v25  ;;  %v3849_v42 = vld [vmem:[%s7406_s13 + $0x70] sm:$0xff] }
 0xb6a   :  { %5789 = vrcp.f32 %v3608_v22 }
 0xb6b   :  { %5791 = vrcp.f32 %v3615_v13 }
 0xb73   :  { %v5788_v59 = vpop.eup %5787 }
 0xb74   :  { %v5790_v49 = vpop.eup %5789  ;;  %v3622_v37 = vmul.f32 %v5788_v59, %v5786_v58  ;;  %v3850_v58 = vld [vmem:[%s7406_s13 + $0x78] sm:$0xff]  ;;  %v3955_v59 = vld [vmem:[%s7408_s15 + $0x70] sm:$0xff] }
 0xb75   :  { %v3621_v0 = vmul.f32 %v5790_v49, %v3619_v61  ;;  %v5792_v34 = vpop.eup %5791  ;;  %v3956_v61 = vld [vmem:[%s7408_s15 + $0x78] sm:$0xff]  ;;  %v5601_v49 = vpack.c.bf16 %v3850_v58, %v3849_v42 }
 0xb77   :  { %v3623_v24 = vadd.f32 %v3622_v37, %v3621_v0  ;;  %v5625_v37 = vpack.c.bf16 %v3956_v61, %v3955_v59 }
 0xb79   :  { %v3637_v26 = vrot.slane %v3623_v24, 4  ;;  %5793 = vtanh.f32 %v3623_v24 }
 0xb7b   :  { %v7248_v14 = vsel %vm3631_vm0, %v3637_v26, %v7203_v35  ;;  %v3946_v35 = vld [vmem:[%s7408_s15 + $0x28] sm:$0xff] }
 0xb7c   :  { %v5610_v39 = vpack.c.bf16 %v3946_v35, %v3945_v16  ;;  %v3818_v51 = vrot.slane %v7248_v14, 2  ;;  %v3829_v35 = vpop.permute.xlu1 %3828 }
 0xb7d   :  { %vm3830_vm2 = vcmp.eq.s32.totalorder %v3829_v35, 1 }
 0xb83   :  { %v5794_v9 = vpop.eup %5793 }
 0xb84   :  { %v3625_v54 = vmul.f32 %v5794_v9, %v5792_v34 }
 0xb86   :  { %v3633_v28 = vrot.slane %v3625_v54, 4 }
 0xb88   :  { %v7251_v30 = vsel %vm3631_vm0, %v3633_v28, %v7206_v2  ;;  %v5589_v2 = vpack.c.bf16 %v3842_v45, %v3841_v46 }
 0xb89   :  { %3705 = vmatmul.mubr.f32.vlgmr.msra.gmra.mrb[40].mxu1 %v7251_v30  ;;  %3776 = vmatmul.mubr.f32.vlgmr.msra.gmra.mrb[36].mxu0 %v7251_v30 }
 0xb8a   :  { %5581 = vmatpush3.bf16.msra.mxu1 %v5580_v23  ;;  %5605 = vmatpush3.bf16.msra.mxu0 %v5604_v29 }
 0xb8b   :  { %5582 = vmatprep.subr.bf16.mxu1 %v5970_v10  ;;  %5606 = vmatprep.subr.bf16.mxu0 %v5970_v10 }
 0xb8c   :  { %4429 = vmatprep.mubr.msk.f32.mxu1 %vm5971_vm1, %v5968_v1  ;;  %4464 = vmatprep.mubr.msk.f32.mxu0 %vm5971_vm1, %v5968_v1  ;;  %v3953_v1 = vld [vmem:[%s7408_s15 + $0x60] sm:$0xff] }
 0xb8d   :  { %v5622_v22 = vpack.c.bf16 %v3954_v36, %v3953_v1 }
 0xb8e   :  { %5584 = vmatpush3.bf16.msra.mxu1 %v5583_v3  ;;  %5608 = vmatpush3.bf16.msra.mxu0 %v5607_v32 }
 0xb8f   :  { %5585 = vmatprep.subr.bf16.mxu1 %v5970_v10  ;;  %5609 = vmatprep.subr.bf16.mxu0 %v5970_v10 }
 0xb92   :  { %5587 = vmatpush3.bf16.msra.mxu1 %v5586_v18  ;;  %5611 = vmatpush3.bf16.msra.mxu0 %v5610_v39 }
 0xb93   :  { %5588 = vmatprep.subr.bf16.mxu1 %v5970_v10  ;;  %5612 = vmatprep.subr.bf16.mxu0 %v5970_v10 }
 0xb96   :  { %5590 = vmatpush3.bf16.msra.mxu1 %v5589_v2  ;;  %5614 = vmatpush3.bf16.msra.mxu0 %v5613_v41  ;;  %v4110_v2 = vld [vmem:[#allocation2] ss:$0 sm:$0xff] }
 0xb97   :  { %5591 = vmatprep.subr.bf16.mxu1 %v5970_v10  ;;  %5615 = vmatprep.subr.bf16.mxu0 %v5970_v10 }
 0xb9a   :  { %5593 = vmatpush3.bf16.msra.mxu1 %v5592_v17  ;;  %5617 = vmatpush3.bf16.msra.mxu0 %v5616_v5 }
 0xb9b   :  { %5594 = vmatprep.subr.bf16.mxu1 %v5970_v10  ;;  %5618 = vmatprep.subr.bf16.mxu0 %v5970_v10 }
 0xb9e   :  { %5596 = vmatpush3.bf16.msra.mxu1 %v5595_v19  ;;  %5620 = vmatpush3.bf16.msra.mxu0 %v5619_v21 }
 0xb9f   :  { %5597 = vmatprep.subr.bf16.mxu1 %v5970_v10  ;;  %5621 = vmatprep.subr.bf16.mxu0 %v5970_v10 }
 0xba2   :  { %5599 = vmatpush3.bf16.msra.mxu1 %v5598_v38  ;;  %5623 = vmatpush3.bf16.msra.mxu0 %v5622_v22 }
 0xba3   :  { %5600 = vmatprep.subr.bf16.mxu1 %v5970_v10  ;;  %5624 = vmatprep.subr.bf16.mxu0 %v5970_v10 }
 0xba6   :  { %5602 = vmatpush3.bf16.msra.mxu1 %v5601_v49  ;;  %5626 = vmatpush3.bf16.msra.mxu0 %v5625_v37 }
 0xc5c   :  { %v3706_v13 = vpop.f32.mrb[40].mxu1  ;;  %v3777_v0 = vpop.f32.mrb[36].mxu0 }
 0xc5d   :  { %v3786_v15 = vrot.slane %v3706_v13, 2  ;;  %v3708_v24 = vpop.f32.mrb[41].mxu1  ;;  %v3779_v26 = vpop.f32.mrb[37].mxu0  ;;  %v3788_v23 = vrot.slane %v3777_v0, 2 }
 0xc5e   :  { %v3787_v34 = vrot.slane %v3708_v24, 2  ;;  %v3789_v31 = vrot.slane %v3779_v26, 2 }
 0xc5f   :  { %v3794_v9 = vadd.f32 %v6943_v55, %v3786_v15  ;;  %v3796_v10 = vadd.f32 %v6945_v60, %v3788_v23 }
 0xc60   :  { %v3795_v54 = vadd.f32 %v6947_v63, %v3787_v34  ;;  %v3797_v12 = vadd.f32 %v6949_v8, %v3789_v31 }
 0xc61   :  { %v4106_v28 = vmul.f32 -1.442695, %v3794_v9 }
 0xc62   :  { %v4107_v4 = vmul.f32 -1.442695, %v3795_v54  ;;  %v4108_v6 = vmul.f32 -1.442695, %v3797_v12 }
 0xc63   :  { %5795 = vpow2.f32 %v4106_v28 }
 0xc64   :  { %5797 = vpow2.f32 %v4107_v4 }
 0xc65   :  { %5799 = vpow2.f32 %v4108_v6 }
 0xc66   :  { %5801 = vtanh.f32 %v3796_v10 }
 0xc6d   :  { %v5796_v29 = vpop.eup %5795 }
 0xc6e   :  { %v5798_v33 = vpop.eup %5797  ;;  %v3801_v43 = vadd.f32 1.0, %v5796_v29 }
 0xc6f   :  { %v3807_v57 = vadd.f32 1.0, %v5798_v33  ;;  %v5800_v55 = vpop.eup %5799 }
 0xc70   :  { %5803 = vrcp.f32 %v3801_v43  ;;  %v5802_v63 = vpop.eup %5801  ;;  %v3814_v8 = vadd.f32 1.0, %v5800_v55 }
 0xc71   :  { %5805 = vrcp.f32 %v3807_v57 }
 0xc72   :  { %5807 = vrcp.f32 %v3814_v8 }
 0xc7a   :  { %v5804_v3 = vpop.eup %5803 }
 0xc7b   :  { %v5806_v32 = vpop.eup %5805  ;;  %v3821_v27 = vmul.f32 %v5804_v3, %v5802_v63 }
 0xc7c   :  { %v3820_v56 = vmul.f32 %v5806_v32, %v3818_v51  ;;  %v5808_v60 = vpop.eup %5807 }
 0xc7e   :  { %v3822_v16 = vadd.f32 %v3821_v27, %v3820_v56 }
 0xc80   :  { %5809 = vtanh.f32 %v3822_v16 }
 0xc8a   :  { %v5810_v18 = vpop.eup %5809 }
 0xc8b   :  { %v3824_v39 = vmul.f32 %v5810_v18, %v5808_v60 }
 0xc8d   :  { %v3832_v46 = vrot.slane %v3824_v39, 6 }
 0xc8f   :  { %v3834_v45 = vsel %vm3830_vm2, %v3832_v46, %v7251_v30 }
 0xc90   :  { %4430 = vmatmul.mubr.f32.vlgmr.msra.gmra.mrb[42].mxu1 %v3834_v45  ;;  %4465 = vmatmul.mubr.f32.vlgmr.msra.gmra.mrb[38].mxu0 %v3834_v45 }
 0xd63   :  { %v3924_v14 = vpop.f32.mrb[42].mxu1  ;;  %v4030_v40 = vpop.f32.mrb[38].mxu0 }
 0xd64   :  { %v3925_v41 = vadd.f32 %v4109_v50, %v3924_v14  ;;  %v4031_v53 = vadd.f32 %v4110_v2, %v4030_v40  ;;  %v4431_v20 = vpop.f32.mrb[43].mxu1  ;;  %v4466_v44 = vpop.f32.mrb[39].mxu0 }
 0xd66   :  { %v4111_v17 = vmul.f32 -1.442695, %v4031_v53  ;;  %v3929_v48 = vsel %vm3928_vm3, %v3925_v41, -inf }
 0xd67   :  { %3930 = vmax.xlane.f32.xlu0 %v3929_v48 }
 0xd68   :  { %5811 = vpow2.f32 %v4111_v17 }
 0xd72   :  { %v5812_v52 = vpop.eup %5811 }
 0xd73   :  { %v4037_v47 = vadd.f32 1.0, %v5812_v52 }
 0xd75   :  { %5813 = vrcp.f32 %v4037_v47 }
 0xd7f   :  { %v5814_v30 = vpop.eup %5813 }
 0xd80   :  { %4041 = vst.msk [vmem:[%s7411_s18] sm:$0x3] %vm4040_vm4, %v5814_v30 }
 0xdf4   :  { %v3931_v5 = vpop.xlane.xlu0 %3930 }
 0xdf5   :  { %v3932_v62 = vsub.f32 %v3925_v41, %v3931_v5 }
 0xdf7   :  { %v3933_v7 = vmul.f32 1.442695, %v3932_v62 }
 0xdf9   :  { %5815 = vpow2.f32 %v3933_v7 }
 0xe03   :  { %v5816_v19 = vpop.eup %5815 }
 0xe04   :  { %v3935_v21 = vsel %vm3928_vm3, %v5816_v19, 0.0 }
 0xe05   :  { %3936 = vadd.xlane.f32.xlu1 %v3935_v21 }
 0xe92   :  { %v3937_v25 = vpop.xlane.xlu1 %3936 }
 0xe93   :  { %5817 = vrcp.f32 %v3937_v25 }
 0xe9d   :  { %v5818_v11 = vpop.eup %5817 }
 0xe9e   :  { %v3939_v1 = vmul.f32 %v5818_v11, %v5816_v19 }
 0xea0   :  { %3940 = vst.msk [vmem:[#allocation12] sm:$0x3] %vm3928_vm3, %v3939_v1 }
 0xea1   :  { %5940 = shalt.err (!%p5937_p2)
}
 0xea2   :  { %s5941_s26 = scalar_lea.hbm %s7410_s17, 32 }
 0xea3   :  { %p5942_p3 = scmp.ne.s32.totalorder %s7410_s17, %s5941_s26  ;;  %p5945_p4 = scmp.lt.u32.totalorder %s5941_s26, %s7410_s17 }
 0xea5   :  { %p5947_p5 = pnand %p5945_p4, %p5942_p3 }
 0xea7   :  { %5950 = shalt.err (!%p5947_p5)
}
 0xea8   :  { %4051 = dma.vmem_to_hbm [thread:$0]  %s4049_s10, 32, %s7410_s17, [#allocation5]  }
 0xea9   :  { %5957 = dma.done.wait [#allocation5], 32  }
 0xeaa   :  { %5958 = vsyncadd [#allocation5], 4294967264 }
 0xeab   :  { %4059 = vsyncpa [#allocation4], 1 }
 0xeac   :  { %4060 = vsyncpa [#allocation7], 1 }
 0xead   :  { %4061 = vsyncpa [#allocation10], 1 }
 0xeae   :  { %4062 = vsyncpa [#allocation5], 1 }

</bundles_post_ra>
